<compile_context>
chip_gen: v7x
topology: tpu7x:2x2x1
jax: 0.10.0
libtpu: 0.0.40
codegen_flags: <defaults>
</compile_context>

<pallas_src>
import functools

import numpy as np

import jax
import jax.numpy as jnp
from jax.experimental import pallas as pl
from jax.experimental.pallas import tpu as pltpu


# Scoped-VMEM cap: 32 MiB is safe on v5e / v6e / v7x.  Every per-step working
# set below is <~8 MiB (1024-row matmul tiles, per-image fused blocks), so a
# larger cap would not be binding; the row-tile size was raised instead.
_VMEM_LIMIT = 32 * 1024 * 1024
_ROW_TILE = 1024                 # rows per 1x1-conv matmul block (near roofline)


# ----------------------------------------------------------------------------
# Pallas kernels
# ----------------------------------------------------------------------------

def _mm_bn_act_kernel(x_ref, w_ref, s_ref, b_ref, o_ref, *, relu6):
    """Fused (x @ w) * scale + bias [+ ReLU6] on one row-tile."""
    acc = jnp.dot(x_ref[...], w_ref[...], preferred_element_type=jnp.float32)
    y = acc * s_ref[...] + b_ref[...]
    if relu6:
        y = jnp.clip(y, 0.0, 6.0)
    o_ref[...] = y.astype(o_ref.dtype)


def _mm_bn_act_res_kernel(x_ref, w_ref, s_ref, b_ref, r_ref, o_ref, *, relu6):
    """Same as above, with a residual add fused in."""
    acc = jnp.dot(x_ref[...], w_ref[...], preferred_element_type=jnp.float32)
    y = acc * s_ref[...] + b_ref[...]
    if relu6:
        y = jnp.clip(y, 0.0, 6.0)
    y = y + r_ref[...].astype(jnp.float32)
    o_ref[...] = y.astype(o_ref.dtype)


def _fused_block_kernel(*refs, K, W, Wp, pad, has_expand, has_residual):
    """Stride-1 ds/ir block, fully fused, one image per grid step.

    Inputs (flattened padded pixel frame, Lp = (H+2p)*(W+2p) rows):
      x      : [1, Lp, Cin]   zero-padded input pixels (bf16)
      mask   : [Lp, 1]        1.0 on real pixels, 0.0 on the padded ring
                              (only passed when has_expand)
      exp_*  : 1x1 expand weight [Cin, Cmid] + folded-BN scale/bias [1, Cmid]
      dw_*   : depthwise weight [K, K, Cmid] + folded-BN scale/bias [1, Cmid]
      pw_*   : 1x1 project weight [Cmid, Cout] + folded-BN scale/bias [1, Cout]
    Output   : [1, H, W, Cout]
    Scratch  : mid_ref [Lp + 2*pad, Cmid] f32 (expanded activation, VMEM only).

    The dw taps use the identity  flat(i+dy, j+dx) = flat(i, j) + dy*Wp + dx
    on the padded frame, so every tap is a contiguous slice of the scratch.
    Junk columns (the padded ring) ride along and are dropped by the per-row
    output stores.
    """
    if has_expand:
        (x_ref, mask_ref, ew_ref, es_ref, eb_ref,
         dw_ref, dws_ref, dwb_ref, pw_ref, pws_ref, pwb_ref,
         o_ref, mid_ref) = refs
    else:
        (x_ref, dw_ref, dws_ref, dwb_ref, pw_ref, pws_ref, pwb_ref,
         o_ref, mid_ref) = refs

    _, H, _, Cout = o_ref.shape
    Lp = x_ref.shape[1]
    Cmid = dw_ref.shape[-1]
    Lo = H * Wp                      # flattened output frame (incl. junk cols)

    xf = x_ref[0]                    # [Lp, Cin] bf16

    # ---- 1x1 expand + BN + ReLU6 (computed on the padded frame) ------------
    if has_expand:
        m = jnp.dot(xf, ew_ref[...], preferred_element_type=jnp.float32)
        m = m * es_ref[...] + eb_ref[...]
        m = jnp.clip(m, 0.0, 6.0) * mask_ref[...]   # re-zero the padded ring
    else:
        m = xf.astype(jnp.float32)                  # dw input is x itself

    mid_ref[pl.ds(0, Lp), :] = m
    mid_ref[pl.ds(Lp, 2 * pad), :] = jnp.zeros((2 * pad, Cmid), jnp.float32)

    # ---- depthwise KxK (stride 1) + BN + ReLU6 ------------------------------
    dw = dw_ref[...].astype(jnp.float32)            # [K, K, Cmid], cast once
    acc = jnp.zeros((Lo, Cmid), jnp.float32)
    for dy in range(K):
        for dx in range(K):
            acc = acc + mid_ref[pl.ds(dy * Wp + dx, Lo), :] * dw[dy, dx]
    y = acc * dws_ref[...] + dwb_ref[...]
    y = jnp.clip(y, 0.0, 6.0).astype(jnp.bfloat16)

    # ---- 1x1 project + BN (no act) + residual -------------------------------
    out = jnp.dot(y, pw_ref[...], preferred_element_type=jnp.float32)
    out = out * pws_ref[...] + pwb_ref[...]
    if has_residual:
        out = out + xf[pad * Wp + pad:pad * Wp + pad + Lo, :].astype(jnp.float32)
    out = out.astype(o_ref.dtype)

    # Drop the junk columns with per-output-row stores.
    # TODO(synk): for large H switch to a row-band grid instead of unrolling.
    for i in range(H):
        o_ref[0, i] = out[i * Wp:i * Wp + W, :]


def _dw_bn_act_kernel(x_ref, w_ref, s_ref, b_ref, o_ref, *, K, stride, relu6):
    """Depthwise KxK conv (stride >= 1) + folded-BN + optional ReLU6, one image.

    x_ref: [stride*stride, Hph, Wph, C] phase-decomposed padded input.
    Output pixel (i, j), tap (dy, dx) reads phase (dy%stride, dx%stride) at
    (i + dy//stride, j + dx//stride) -> all in-kernel slices are contiguous.
    """
    w = w_ref[...].astype(jnp.float32)
    _, Ho, Wo, C = o_ref.shape
    nph = stride * stride
    # Hoisted: one bf16->f32 cast per phase slab (not one per tap).
    phases = [x_ref[p].astype(jnp.float32) for p in range(nph)]
    acc = jnp.zeros((Ho, Wo, C), jnp.float32)
    for dy in range(K):
        for dx in range(K):
            ph = (dy % stride) * stride + (dx % stride)
            patch = phases[ph][dy // stride:dy // stride + Ho,
                               dx // stride:dx // stride + Wo, :]
            acc = acc + patch * w[dy, dx, :]
    y = acc * s_ref[...] + b_ref[...]
    if relu6:
        y = jnp.clip(y, 0.0, 6.0)
    o_ref[0] = y.astype(o_ref.dtype)


def _stem_kernel(xph_ref, w_ref, s_ref, b_ref, o_ref, *, K, stride):
    """Stem 3x3/stride-2 conv + folded-BN + ReLU6 for one image.

    xph_ref: [stride*stride, Hph, Wph, Cin] phase-decomposed padded input.
    With Cin = 3 the conv is cheapest as K*K*Cin broadcast-FMAs on the VPU
    (im2col never materialized in HBM).
    """
    _, Ho, Wo, Cout = o_ref.shape
    Cin = xph_ref.shape[-1]
    w = w_ref[...].astype(jnp.float32)              # [K, K, Cin, Cout]
    acc = jnp.zeros((Ho, Wo, Cout), jnp.float32)
    for dy in range(K):
        for dx in range(K):
            ph = (dy % stride) * stride + (dx % stride)
            patch = xph_ref[ph, pl.ds(dy // stride, Ho),
                            pl.ds(dx // stride, Wo), :].astype(jnp.float32)
            for c in range(Cin):
                acc = acc + patch[:, :, c:c + 1] * w[dy, dx, c].reshape(1, 1, Cout)
    y = acc * s_ref[...] + b_ref[...]
    o_ref[0] = jnp.clip(y, 0.0, 6.0).astype(o_ref.dtype)


def _head_pool_fc_kernel(x_ref, w_ref, s_ref, b_ref, fcw_ref, fcb_ref, o_ref):
    """conv_head 1x1 + BN + ReLU6 + global avg-pool + Linear, one image."""
    h = jnp.dot(x_ref[0], w_ref[...], preferred_element_type=jnp.float32)
    h = h * s_ref[...] + b_ref[...]
    h = jnp.clip(h, 0.0, 6.0)                       # [HW, F]
    pooled = jnp.mean(h, axis=0, keepdims=True)     # [1, F]
    logits = jnp.dot(pooled, fcw_ref[...],
                     preferred_element_type=jnp.float32) + fcb_ref[...]
    o_ref[...] = logits.astype(o_ref.dtype)


# ----------------------------------------------------------------------------
# Thin wrappers around pallas_call
# ----------------------------------------------------------------------------

def matmul_bn_act(x2d, w, scale, bias, *, relu6, shortcut=None,
                  out_dtype=jnp.bfloat16):
    M, K = x2d.shape
    N = w.shape[1]
    # Fixed row tile + cdiv grid; a ragged last block is handled by Pallas'
    # masked writeback.  Safe because K is not tiled (no accumulator can pick
    # up garbage rows from the padded block).
    tm = M if M <= _ROW_TILE else _ROW_TILE
    grid = (pl.cdiv(M, tm),)

    in_specs = [pl.BlockSpec((tm, K), lambda i: (i, 0)),
                pl.BlockSpec((K, N), lambda i: (0, 0)),
                pl.BlockSpec((1, N), lambda i: (0, 0)),
                pl.BlockSpec((1, N), lambda i: (0, 0))]
    args = [x2d, w, scale.reshape(1, N), bias.reshape(1, N)]
    if shortcut is None:
        kernel = functools.partial(_mm_bn_act_kernel, relu6=relu6)
        res_bytes = 0
    else:
        kernel = functools.partial(_mm_bn_act_res_kernel, relu6=relu6)
        in_specs.append(pl.BlockSpec((tm, N), lambda i: (i, 0)))
        args.append(shortcut)
        res_bytes = shortcut.size * shortcut.dtype.itemsize

    cost = pl.CostEstimate(
        flops=2 * M * K * N,
        transcendentals=0,
        bytes_accessed=int(x2d.size * x2d.dtype.itemsize
                           + w.size * w.dtype.itemsize
                           + 2 * N * 4
                           + M * N * jnp.dtype(out_dtype).itemsize
                           + res_bytes))

    return pl.pallas_call(
        kernel,
        out_shape=jax.ShapeDtypeStruct((M, N), out_dtype),
        grid=grid,
        in_specs=in_specs,
        out_specs=pl.BlockSpec((tm, N), lambda i: (i, 0)),
        compiler_params=pltpu.CompilerParams(
            dimension_semantics=("parallel",),
            vmem_limit_bytes=_VMEM_LIMIT),
        cost_estimate=cost,
    )(*args)


def pointwise(x, w, scale, bias, *, relu6, shortcut=None, out_dtype=jnp.bfloat16):
    # x: [N,H,W,Cin], w: [Cin,Cout]; optional residual fused into the same call.
    N, H, W, Cin = x.shape
    Cout = w.shape[1]
    sc2d = None if shortcut is None else shortcut.reshape(N * H * W, Cout)
    y = matmul_bn_act(x.reshape(N * H * W, Cin), w, scale, bias,
                      relu6=relu6, shortcut=sc2d, out_dtype=out_dtype)
    return y.reshape(N, H, W, Cout)


def fused_block(x, blk, *, out_dtype=jnp.bfloat16):
    """Stride-1 ds/ir block: [expand] -> dw -> project [+residual], one kernel."""
    N, H, W, Cin = x.shape
    K = blk['dw_w'].shape[0]
    pad = K // 2
    Hp, Wp = H + 2 * pad, W + 2 * pad
    Lp = Hp * Wp
    has_expand = blk['type'] == 'ir'
    has_residual = blk['has_residual']
    if has_expand:
        exp_w = blk['exp_w']; exp_s, exp_b = blk['exp_bn']
        proj_w = blk['proj_w']; proj_s, proj_b = blk['proj_bn']
        Cmid = exp_w.shape[1]
    else:
        proj_w = blk['pw_w']; proj_s, proj_b = blk['pw_bn']
        Cmid = Cin
    Cout = proj_w.shape[1]
    dw_w = blk['dw_w']; dw_s, dw_b = blk['dw_bn']

    # Zero-pad the (narrow) input once in HBM; the e*-wide mid activation
    # never leaves VMEM.
    xp = jnp.pad(x, ((0, 0), (pad, pad), (pad, pad), (0, 0)))
    xp = xp.reshape(N, Lp, Cin)

    args = [xp]
    in_specs = [pl.BlockSpec((1, Lp, Cin), lambda n: (n, 0, 0))]
    if has_expand:
        mask = np.zeros((Hp, Wp), np.float32)
        mask[pad:pad + H, pad:pad + W] = 1.0
        mask = jnp.asarray(mask.reshape(Lp, 1))
        args += [mask, exp_w, exp_s.reshape(1, Cmid), exp_b.reshape(1, Cmid)]
        in_specs += [pl.BlockSpec((Lp, 1), lambda n: (0, 0)),
                     pl.BlockSpec((Cin, Cmid), lambda n: (0, 0)),
                     pl.BlockSpec((1, Cmid), lambda n: (0, 0)),
                     pl.BlockSpec((1, Cmid), lambda n: (0, 0))]
    args += [dw_w, dw_s.reshape(1, Cmid), dw_b.reshape(1, Cmid),
             proj_w, proj_s.reshape(1, Cout), proj_b.reshape(1, Cout)]
    in_specs += [pl.BlockSpec((K, K, Cmid), lambda n: (0, 0, 0)),
                 pl.BlockSpec((1, Cmid), lambda n: (0, 0)),
                 pl.BlockSpec((1, Cmid), lambda n: (0, 0)),
                 pl.BlockSpec((Cmid, Cout), lambda n: (0, 0)),
                 pl.BlockSpec((1, Cout), lambda n: (0, 0)),
                 pl.BlockSpec((1, Cout), lambda n: (0, 0))]

    kernel = functools.partial(_fused_block_kernel, K=K, W=W, Wp=Wp, pad=pad,
                               has_expand=has_expand, has_residual=has_residual)
    Lo = H * Wp
    flops = 2 * N * ((Lp * Cin * Cmid if has_expand else 0)
                     + Lo * Cmid * K * K + Lo * Cmid * Cout)
    cost = pl.CostEstimate(
        flops=int(flops),
        transcendentals=0,
        bytes_accessed=int(xp.size * xp.dtype.itemsize
                           + (Cin * Cmid + Cmid * Cout + K * K * Cmid) * 2
                           + N * H * W * Cout * jnp.dtype(out_dtype).itemsize))

    return pl.pallas_call(
        kernel,
        out_shape=jax.ShapeDtypeStruct((N, H, W, Cout), out_dtype),
        grid=(N,),
        in_specs=in_specs,
        out_specs=pl.BlockSpec((1, H, W, Cout), lambda n: (n, 0, 0, 0)),
        scratch_shapes=[pltpu.VMEM((Lp + 2 * pad, Cmid), jnp.float32)],
        compiler_params=pltpu.CompilerParams(
            dimension_semantics=("parallel",),
            vmem_limit_bytes=_VMEM_LIMIT),
        cost_estimate=cost,
    )(*args)


def depthwise(x, w, scale, bias, *, stride, relu6, out_dtype=jnp.bfloat16):
    # x: [N,H,W,C], w: [K,K,C].  Used for stride>1 blocks only.
    K = w.shape[0]
    s = stride
    pad = ((s - 1) + (K - 1)) // 2          # timm get_padding
    xp = jnp.pad(x, ((0, 0), (pad, pad), (pad, pad), (0, 0)))
    N, Hp, Wp, C = xp.shape
    Ho = (Hp - K) // s + 1
    Wo = (Wp - K) // s + 1
    Hph = -(-Hp // s)
    Wph = -(-Wp // s)

    if s == 1:
        xph = xp                                           # single phase
    else:
        # TODO(synk): wrapper-side phase decomposition re-materializes the
        # padded activation in HBM; fold this into the producing kernel.
        phases = []
        for a in range(s):
            for b in range(s):
                ph = xp[:, a::s, b::s, :]
                ph = jnp.pad(ph, ((0, 0), (0, Hph - ph.shape[1]),
                                  (0, Wph - ph.shape[2]), (0, 0)))
                phases.append(ph)
        xph = jnp.stack(phases, axis=1).reshape(N * s * s, Hph, Wph, C)
    nph = s * s

    kernel = functools.partial(_dw_bn_act_kernel, K=K, stride=s, relu6=relu6)
    cost = pl.CostEstimate(
        flops=2 * N * Ho * Wo * C * K * K,
        transcendentals=0,
        bytes_accessed=int(xph.size * xph.dtype.itemsize
                           + w.size * w.dtype.itemsize + 2 * C * 4
                           + N * Ho * Wo * C * jnp.dtype(out_dtype).itemsize))

    return pl.pallas_call(
        kernel,
        out_shape=jax.ShapeDtypeStruct((N, Ho, Wo, C), out_dtype),
        grid=(N,),
        in_specs=[pl.BlockSpec((nph, Hph, Wph, C), lambda n: (n, 0, 0, 0)),
                  pl.BlockSpec((K, K, C), lambda n: (0, 0, 0)),
                  pl.BlockSpec((1, 1, C), lambda n: (0, 0, 0)),
                  pl.BlockSpec((1, 1, C), lambda n: (0, 0, 0))],
        out_specs=pl.BlockSpec((1, Ho, Wo, C), lambda n: (n, 0, 0, 0)),
        compiler_params=pltpu.CompilerParams(
            dimension_semantics=("parallel",),
            vmem_limit_bytes=_VMEM_LIMIT),
        cost_estimate=cost,
    )(xph, w, scale.reshape(1, 1, C), bias.reshape(1, 1, C))


def stem_conv(x, w, scale, bias, *, out_dtype=jnp.bfloat16):
    # Full 3x3/stride-2 conv + BN + ReLU6, computed in-kernel from a
    # phase-decomposed padded input (no 9x im2col HBM materialization).
    K, stride = 3, 2
    pad = ((stride - 1) + (K - 1)) // 2
    xp = jnp.pad(x, ((0, 0), (pad, pad), (pad, pad), (0, 0)))
    N, Hp, Wp, Cin = xp.shape
    Ho = (Hp - K) // stride + 1
    Wo = (Wp - K) // stride + 1
    Hph = -(-Hp // stride)
    Wph = -(-Wp // stride)
    phases = []
    for a in range(stride):
        for b in range(stride):
            ph = xp[:, a::stride, b::stride, :]
            ph = jnp.pad(ph, ((0, 0), (0, Hph - ph.shape[1]),
                              (0, Wph - ph.shape[2]), (0, 0)))
            phases.append(ph)
    xph = jnp.stack(phases, axis=1).reshape(N * stride * stride, Hph, Wph, Cin)
    Cout = w.shape[-1]

    kernel = functools.partial(_stem_kernel, K=K, stride=stride)
    return pl.pallas_call(
        kernel,
        out_shape=jax.ShapeDtypeStruct((N, Ho, Wo, Cout), out_dtype),
        grid=(N,),
        in_specs=[pl.BlockSpec((stride * stride, Hph, Wph, Cin),
                               lambda n: (n, 0, 0, 0)),
                  pl.BlockSpec((K, K, Cin, Cout), lambda n: (0, 0, 0, 0)),
                  pl.BlockSpec((1, 1, Cout), lambda n: (0, 0, 0)),
                  pl.BlockSpec((1, 1, Cout), lambda n: (0, 0, 0))],
        out_specs=pl.BlockSpec((1, Ho, Wo, Cout), lambda n: (n, 0, 0, 0)),
        compiler_params=pltpu.CompilerParams(
            dimension_semantics=("parallel",),
            vmem_limit_bytes=_VMEM_LIMIT),
    )(xph, w, scale.reshape(1, 1, Cout), bias.reshape(1, 1, Cout))


def head_pool_classify(x, w, scale, bias, fc_w, fc_b):
    # x: [N,H,W,Cin] -> conv_head 1x1 + BN + ReLU6 + avg-pool + FC -> [N, classes]
    N, H, W, Cin = x.shape
    F = w.shape[1]
    C = fc_w.shape[1]
    x3 = x.reshape(N, H * W, Cin)
    return pl.pallas_call(
        _head_pool_fc_kernel,
        out_shape=jax.ShapeDtypeStruct((N, C), jnp.float32),
        grid=(N,),
        in_specs=[pl.BlockSpec((1, H * W, Cin), lambda n: (n, 0, 0)),
                  pl.BlockSpec((Cin, F), lambda n: (0, 0)),
                  pl.BlockSpec((1, F), lambda n: (0, 0)),
                  pl.BlockSpec((1, F), lambda n: (0, 0)),
                  pl.BlockSpec((F, C), lambda n: (0, 0)),
                  pl.BlockSpec((1, C), lambda n: (0, 0))],
        out_specs=pl.BlockSpec((1, C), lambda n: (n, 0)),
        compiler_params=pltpu.CompilerParams(
            dimension_semantics=("parallel",),
            vmem_limit_bytes=_VMEM_LIMIT),
    )(x3, w, scale.reshape(1, F), bias.reshape(1, F), fc_w, fc_b.reshape(1, C))


# ----------------------------------------------------------------------------
# Deterministic synthetic parameters (mirrors BaseNet.__init__ structure)
# ----------------------------------------------------------------------------

def _conv_init(key, shape, depthwise_conv=False, dtype=jnp.bfloat16):
    if depthwise_conv:                     # (K,K,C)
        fan_out = shape[0] * shape[1]
    elif len(shape) == 4:                  # (K,K,Cin,Cout)
        fan_out = shape[0] * shape[1] * shape[3]
    else:                                  # (Cin,Cout)
        fan_out = shape[1]
    std = (2.0 / fan_out) ** 0.5
    return (std * jax.random.normal(key, shape, jnp.float32)).astype(dtype)


def _fold_bn(key, dim, eps=1e-5):
    k1, k2, k3, k4 = jax.random.split(key, 4)
    gamma = 1.0 + 0.1 * jax.random.normal(k1, (dim,), jnp.float32)
    beta = 0.1 * jax.random.normal(k2, (dim,), jnp.float32)
    mean = 0.1 * jax.random.normal(k3, (dim,), jnp.float32)
    var = 0.5 + jax.random.uniform(k4, (dim,), jnp.float32)
    scale = gamma / jnp.sqrt(var + eps)
    bias = beta - mean * scale
    return scale, bias


def build_params(key, arch_def, stem_size=32, num_features=64, num_classes=16):
    keys = iter(jax.random.split(key, 512))
    params = {'stem': {'w': _conv_init(next(keys), (3, 3, 3, stem_size)),
                       'bn': _fold_bn(next(keys), stem_size)}}
    blocks = []
    c_in = stem_size
    for blks in arch_def:
        block = blks[0]
        parts = block.split('_')
        btype = parts[0]
        if btype == 'ds':
            r, k, s, c_out = (int(parts[1][1:]), int(parts[2][1:]),
                              int(parts[3][1:]), int(parts[4][1:]))
            for i in range(r):
                st = s if i == 0 else 1
                blocks.append({
                    'type': 'ds', 's': st,
                    'has_residual': (st == 1 and c_in == c_out),
                    'dw_w': _conv_init(next(keys), (k, k, c_in), depthwise_conv=True),
                    'dw_bn': _fold_bn(next(keys), c_in),
                    'pw_w': _conv_init(next(keys), (c_in, c_out)),
                    'pw_bn': _fold_bn(next(keys), c_out)})
                c_in = c_out
        elif btype == 'ir':
            r, k, s, e, c_out = (int(parts[1][1:]), int(parts[2][1:]),
                                 int(parts[3][1:]), int(parts[4][1:]),
                                 int(parts[5][1:]))
            for i in range(r):
                st = s if i == 0 else 1
                mid = c_in * e
                blocks.append({
                    'type': 'ir', 's': st,
                    'has_residual': (st == 1 and c_in == c_out),
                    'exp_w': _conv_init(next(keys), (c_in, mid)),
                    'exp_bn': _fold_bn(next(keys), mid),
                    'dw_w': _conv_init(next(keys), (k, k, mid), depthwise_conv=True),
                    'dw_bn': _fold_bn(next(keys), mid),
                    'proj_w': _conv_init(next(keys), (mid, c_out)),
                    'proj_bn': _fold_bn(next(keys), c_out)})
                c_in = c_out
        else:
            # TODO(synk): 'sa' (SABlock windowed self-attention) not implemented.
            raise NotImplementedError(f"block type '{btype}' is not supported")
    params['blocks'] = blocks
    params['head'] = {'w': _conv_init(next(keys), (c_in, num_features)),
                      'bn': _fold_bn(next(keys), num_features)}
    params['classifier'] = {
        'w': 0.01 * jax.random.normal(next(keys), (num_features, num_classes),
                                      jnp.float32),
        'b': jnp.zeros((num_classes,), jnp.float32)}
    return params


# ----------------------------------------------------------------------------
# Forward pass (mirrors BaseNet.forward)
# ----------------------------------------------------------------------------

def basenet_forward(params, x_nchw):
    x = jnp.transpose(x_nchw, (0, 2, 3, 1)).astype(jnp.bfloat16)  # NCHW -> NHWC
    # stem: conv3x3/s2 + BN + ReLU6 (single fused kernel)
    x = stem_conv(x, params['stem']['w'], *params['stem']['bn'])
    for blk in params['blocks']:
        if blk['s'] == 1:
            # fully fused ds/ir block (mid activation stays in VMEM)
            x = fused_block(x, blk)
        elif blk['type'] == 'ds':
            y = depthwise(x, blk['dw_w'], *blk['dw_bn'],
                          stride=blk['s'], relu6=True)
            x = pointwise(y, blk['pw_w'], *blk['pw_bn'], relu6=False)
        else:  # 'ir', stride > 1 (never has a residual)
            y = pointwise(x, blk['exp_w'], *blk['exp_bn'], relu6=True)
            y = depthwise(y, blk['dw_w'], *blk['dw_bn'],
                          stride=blk['s'], relu6=True)
            x = pointwise(y, blk['proj_w'], *blk['proj_bn'], relu6=False)
    # conv_head 1x1 + BN + ReLU6 + global avg pool + Linear classifier (fused)
    return head_pool_classify(x, params['head']['w'], *params['head']['bn'],
                              params['classifier']['w'],
                              params['classifier']['b'])


# ----------------------------------------------------------------------------

if __name__ == "__main__":
    key = jax.random.PRNGKey(0)
    k_params, k_x = jax.random.split(key)

    # small MobileNetV2-like arch_def ('ds' + 'ir' blocks)
    arch_def = [['ds_r1_k3_s1_c16'], ['ir_r2_k3_s2_e4_c24']]

    params = build_params(k_params, arch_def,
                          stem_size=32, num_features=64, num_classes=16)

    x = jax.random.normal(k_x, (2, 3, 16, 16), jnp.float32)   # NCHW like PyTorch

    logits = basenet_forward(params, x)
    logits = jax.block_until_ready(logits)
    assert logits.shape == (2, 16)
    print("KERNEL_OK")
</pallas_src>

<mosaic_0001>
module attributes {stable_mosaic.version = 11 : i64} {
  func.func @_stem_kernel(%arg0: i32, %arg1: memref<4x9x9x3xbf16, #tpu.memory_space<vmem>>, %arg2: memref<3x3x3x32xbf16, #tpu.memory_space<vmem>>, %arg3: memref<1x1x32xf32, #tpu.memory_space<vmem>>, %arg4: memref<1x1x32xf32, #tpu.memory_space<vmem>>, %arg5: memref<1x8x8x32xbf16, #tpu.memory_space<vmem>>) attributes {dimension_semantics = [#tpu.dimension_semantics<parallel>], iteration_bounds = array<i64: 2>, scalar_prefetch = 0 : i64, scratch_operands = 0 : i64, tpu.core_type = #tpu.core_type<tc>, window_params = [{transform_indices = @transform_0, window_bounds = array<i64: 4, 9, 9, 3>}, {pipeline_mode = #tpu.pipeline_mode<synchronous>, transform_indices = @transform_1, window_bounds = array<i64: 3, 3, 3, 32>}, {pipeline_mode = #tpu.pipeline_mode<synchronous>, transform_indices = @transform_2, window_bounds = array<i64: 1, 1, 32>}, {pipeline_mode = #tpu.pipeline_mode<synchronous>, transform_indices = @transform_3, window_bounds = array<i64: 1, 1, 32>}, {transform_indices = @transform_4, window_bounds = array<i64: 1, 8, 8, 32>}]} {
    %c0 = arith.constant 0 : index
    %c0_0 = arith.constant 0 : index
    %c0_1 = arith.constant 0 : index
    %c0_2 = arith.constant 0 : index
    %0 = vector.load %arg2[%c0, %c0_0, %c0_1, %c0_2] : memref<3x3x3x32xbf16, #tpu.memory_space<vmem>>, vector<3x3x3x32xbf16>
    %1 = arith.extf %0 : vector<3x3x3x32xbf16> to vector<3x3x3x32xf32>
    %cst = arith.constant 0.000000e+00 : f32
    %2 = vector.broadcast %cst : f32 to vector<8x8x32xf32>
    %c0_3 = arith.constant 0 : index
    %c0_4 = arith.constant 0 : index
    %c0_5 = arith.constant 0 : index
    %c0_6 = arith.constant 0 : index
    %3 = vector.load %arg1[%c0_3, %c0_4, %c0_5, %c0_6] : memref<4x9x9x3xbf16, #tpu.memory_space<vmem>>, vector<1x8x8x3xbf16>
    %4 = vector.shape_cast %3 : vector<1x8x8x3xbf16> to vector<8x8x3xbf16>
    %5 = arith.extf %4 : vector<8x8x3xbf16> to vector<8x8x3xf32>
    %6 = vector.extract_strided_slice %5 {offsets = [0, 0, 0], sizes = [8, 8, 1], strides = [1, 1, 1]} : vector<8x8x3xf32> to vector<8x8x1xf32>
    %7 = vector.extract_strided_slice %1 {offsets = [0, 0, 0, 0], sizes = [1, 1, 1, 32], strides = [1, 1, 1, 1]} : vector<3x3x3x32xf32> to vector<1x1x1x32xf32>
    %8 = vector.shape_cast %7 : vector<1x1x1x32xf32> to vector<32xf32>
    %9 = vector.shape_cast %8 : vector<32xf32> to vector<1x1x32xf32>
    %10 = vector.broadcast %6 : vector<8x8x1xf32> to vector<8x8x32xf32>
    %11 = vector.broadcast %9 : vector<1x1x32xf32> to vector<8x8x32xf32>
    %12 = arith.mulf %10, %11 : vector<8x8x32xf32>
    %13 = arith.addf %2, %12 : vector<8x8x32xf32>
    %14 = vector.extract_strided_slice %5 {offsets = [0, 0, 1], sizes = [8, 8, 1], strides = [1, 1, 1]} : vector<8x8x3xf32> to vector<8x8x1xf32>
    %15 = vector.extract_strided_slice %1 {offsets = [0, 0, 1, 0], sizes = [1, 1, 1, 32], strides = [1, 1, 1, 1]} : vector<3x3x3x32xf32> to vector<1x1x1x32xf32>
    %16 = vector.shape_cast %15 : vector<1x1x1x32xf32> to vector<32xf32>
    %17 = vector.shape_cast %16 : vector<32xf32> to vector<1x1x32xf32>
    %18 = vector.broadcast %14 : vector<8x8x1xf32> to vector<8x8x32xf32>
    %19 = vector.broadcast %17 : vector<1x1x32xf32> to vector<8x8x32xf32>
    %20 = arith.mulf %18, %19 : vector<8x8x32xf32>
    %21 = arith.addf %13, %20 : vector<8x8x32xf32>
    %22 = vector.extract_strided_slice %5 {offsets = [0, 0, 2], sizes = [8, 8, 1], strides = [1, 1, 1]} : vector<8x8x3xf32> to vector<8x8x1xf32>
    %23 = vector.extract_strided_slice %1 {offsets = [0, 0, 2, 0], sizes = [1, 1, 1, 32], strides = [1, 1, 1, 1]} : vector<3x3x3x32xf32> to vector<1x1x1x32xf32>
    %24 = vector.shape_cast %23 : vector<1x1x1x32xf32> to vector<32xf32>
    %25 = vector.shape_cast %24 : vector<32xf32> to vector<1x1x32xf32>
    %26 = vector.broadcast %22 : vector<8x8x1xf32> to vector<8x8x32xf32>
    %27 = vector.broadcast %25 : vector<1x1x32xf32> to vector<8x8x32xf32>
    %28 = arith.mulf %26, %27 : vector<8x8x32xf32>
    %29 = arith.addf %21, %28 : vector<8x8x32xf32>
    %c1 = arith.constant 1 : index
    %c0_7 = arith.constant 0 : index
    %c0_8 = arith.constant 0 : index
    %c0_9 = arith.constant 0 : index
    %30 = vector.load %arg1[%c1, %c0_7, %c0_8, %c0_9] : memref<4x9x9x3xbf16, #tpu.memory_space<vmem>>, vector<1x8x8x3xbf16>
    %31 = vector.shape_cast %30 : vector<1x8x8x3xbf16> to vector<8x8x3xbf16>
    %32 = arith.extf %31 : vector<8x8x3xbf16> to vector<8x8x3xf32>
    %33 = vector.extract_strided_slice %32 {offsets = [0, 0, 0], sizes = [8, 8, 1], strides = [1, 1, 1]} : vector<8x8x3xf32> to vector<8x8x1xf32>
    %34 = vector.extract_strided_slice %1 {offsets = [0, 1, 0, 0], sizes = [1, 1, 1, 32], strides = [1, 1, 1, 1]} : vector<3x3x3x32xf32> to vector<1x1x1x32xf32>
    %35 = vector.shape_cast %34 : vector<1x1x1x32xf32> to vector<32xf32>
    %36 = vector.shape_cast %35 : vector<32xf32> to vector<1x1x32xf32>
    %37 = vector.broadcast %33 : vector<8x8x1xf32> to vector<8x8x32xf32>
    %38 = vector.broadcast %36 : vector<1x1x32xf32> to vector<8x8x32xf32>
    %39 = arith.mulf %37, %38 : vector<8x8x32xf32>
    %40 = arith.addf %29, %39 : vector<8x8x32xf32>
    %41 = vector.extract_strided_slice %32 {offsets = [0, 0, 1], sizes = [8, 8, 1], strides = [1, 1, 1]} : vector<8x8x3xf32> to vector<8x8x1xf32>
    %42 = vector.extract_strided_slice %1 {offsets = [0, 1, 1, 0], sizes = [1, 1, 1, 32], strides = [1, 1, 1, 1]} : vector<3x3x3x32xf32> to vector<1x1x1x32xf32>
    %43 = vector.shape_cast %42 : vector<1x1x1x32xf32> to vector<32xf32>
    %44 = vector.shape_cast %43 : vector<32xf32> to vector<1x1x32xf32>
    %45 = vector.broadcast %41 : vector<8x8x1xf32> to vector<8x8x32xf32>
    %46 = vector.broadcast %44 : vector<1x1x32xf32> to vector<8x8x32xf32>
    %47 = arith.mulf %45, %46 : vector<8x8x32xf32>
    %48 = arith.addf %40, %47 : vector<8x8x32xf32>
    %49 = vector.extract_strided_slice %32 {offsets = [0, 0, 2], sizes = [8, 8, 1], strides = [1, 1, 1]} : vector<8x8x3xf32> to vector<8x8x1xf32>
    %50 = vector.extract_strided_slice %1 {offsets = [0, 1, 2, 0], sizes = [1, 1, 1, 32], strides = [1, 1, 1, 1]} : vector<3x3x3x32xf32> to vector<1x1x1x32xf32>
    %51 = vector.shape_cast %50 : vector<1x1x1x32xf32> to vector<32xf32>
    %52 = vector.shape_cast %51 : vector<32xf32> to vector<1x1x32xf32>
    %53 = vector.broadcast %49 : vector<8x8x1xf32> to vector<8x8x32xf32>
    %54 = vector.broadcast %52 : vector<1x1x32xf32> to vector<8x8x32xf32>
    %55 = arith.mulf %53, %54 : vector<8x8x32xf32>
    %56 = arith.addf %48, %55 : vector<8x8x32xf32>
    %c0_10 = arith.constant 0 : index
    %c0_11 = arith.constant 0 : index
    %c1_12 = arith.constant 1 : index
    %c0_13 = arith.constant 0 : index
    %57 = vector.load %arg1[%c0_10, %c0_11, %c1_12, %c0_13] : memref<4x9x9x3xbf16, #tpu.memory_space<vmem>>, vector<1x8x8x3xbf16>
    %58 = vector.shape_cast %57 : vector<1x8x8x3xbf16> to vector<8x8x3xbf16>
    %59 = arith.extf %58 : vector<8x8x3xbf16> to vector<8x8x3xf32>
    %60 = vector.extract_strided_slice %59 {offsets = [0, 0, 0], sizes = [8, 8, 1], strides = [1, 1, 1]} : vector<8x8x3xf32> to vector<8x8x1xf32>
    %61 = vector.extract_strided_slice %1 {offsets = [0, 2, 0, 0], sizes = [1, 1, 1, 32], strides = [1, 1, 1, 1]} : vector<3x3x3x32xf32> to vector<1x1x1x32xf32>
    %62 = vector.shape_cast %61 : vector<1x1x1x32xf32> to vector<32xf32>
    %63 = vector.shape_cast %62 : vector<32xf32> to vector<1x1x32xf32>
    %64 = vector.broadcast %60 : vector<8x8x1xf32> to vector<8x8x32xf32>
    %65 = vector.broadcast %63 : vector<1x1x32xf32> to vector<8x8x32xf32>
    %66 = arith.mulf %64, %65 : vector<8x8x32xf32>
    %67 = arith.addf %56, %66 : vector<8x8x32xf32>
    %68 = vector.extract_strided_slice %59 {offsets = [0, 0, 1], sizes = [8, 8, 1], strides = [1, 1, 1]} : vector<8x8x3xf32> to vector<8x8x1xf32>
    %69 = vector.extract_strided_slice %1 {offsets = [0, 2, 1, 0], sizes = [1, 1, 1, 32], strides = [1, 1, 1, 1]} : vector<3x3x3x32xf32> to vector<1x1x1x32xf32>
    %70 = vector.shape_cast %69 : vector<1x1x1x32xf32> to vector<32xf32>
    %71 = vector.shape_cast %70 : vector<32xf32> to vector<1x1x32xf32>
    %72 = vector.broadcast %68 : vector<8x8x1xf32> to vector<8x8x32xf32>
    %73 = vector.broadcast %71 : vector<1x1x32xf32> to vector<8x8x32xf32>
    %74 = arith.mulf %72, %73 : vector<8x8x32xf32>
    %75 = arith.addf %67, %74 : vector<8x8x32xf32>
    %76 = vector.extract_strided_slice %59 {offsets = [0, 0, 2], sizes = [8, 8, 1], strides = [1, 1, 1]} : vector<8x8x3xf32> to vector<8x8x1xf32>
    %77 = vector.extract_strided_slice %1 {offsets = [0, 2, 2, 0], sizes = [1, 1, 1, 32], strides = [1, 1, 1, 1]} : vector<3x3x3x32xf32> to vector<1x1x1x32xf32>
    %78 = vector.shape_cast %77 : vector<1x1x1x32xf32> to vector<32xf32>
    %79 = vector.shape_cast %78 : vector<32xf32> to vector<1x1x32xf32>
    %80 = vector.broadcast %76 : vector<8x8x1xf32> to vector<8x8x32xf32>
    %81 = vector.broadcast %79 : vector<1x1x32xf32> to vector<8x8x32xf32>
    %82 = arith.mulf %80, %81 : vector<8x8x32xf32>
    %83 = arith.addf %75, %82 : vector<8x8x32xf32>
    %c2 = arith.constant 2 : index
    %c0_14 = arith.constant 0 : index
    %c0_15 = arith.constant 0 : index
    %c0_16 = arith.constant 0 : index
    %84 = vector.load %arg1[%c2, %c0_14, %c0_15, %c0_16] : memref<4x9x9x3xbf16, #tpu.memory_space<vmem>>, vector<1x8x8x3xbf16>
    %85 = vector.shape_cast %84 : vector<1x8x8x3xbf16> to vector<8x8x3xbf16>
    %86 = arith.extf %85 : vector<8x8x3xbf16> to vector<8x8x3xf32>
    %87 = vector.extract_strided_slice %86 {offsets = [0, 0, 0], sizes = [8, 8, 1], strides = [1, 1, 1]} : vector<8x8x3xf32> to vector<8x8x1xf32>
    %88 = vector.extract_strided_slice %1 {offsets = [1, 0, 0, 0], sizes = [1, 1, 1, 32], strides = [1, 1, 1, 1]} : vector<3x3x3x32xf32> to vector<1x1x1x32xf32>
    %89 = vector.shape_cast %88 : vector<1x1x1x32xf32> to vector<32xf32>
    %90 = vector.shape_cast %89 : vector<32xf32> to vector<1x1x32xf32>
    %91 = vector.broadcast %87 : vector<8x8x1xf32> to vector<8x8x32xf32>
    %92 = vector.broadcast %90 : vector<1x1x32xf32> to vector<8x8x32xf32>
    %93 = arith.mulf %91, %92 : vector<8x8x32xf32>
    %94 = arith.addf %83, %93 : vector<8x8x32xf32>
    %95 = vector.extract_strided_slice %86 {offsets = [0, 0, 1], sizes = [8, 8, 1], strides = [1, 1, 1]} : vector<8x8x3xf32> to vector<8x8x1xf32>
    %96 = vector.extract_strided_slice %1 {offsets = [1, 0, 1, 0], sizes = [1, 1, 1, 32], strides = [1, 1, 1, 1]} : vector<3x3x3x32xf32> to vector<1x1x1x32xf32>
    %97 = vector.shape_cast %96 : vector<1x1x1x32xf32> to vector<32xf32>
    %98 = vector.shape_cast %97 : vector<32xf32> to vector<1x1x32xf32>
    %99 = vector.broadcast %95 : vector<8x8x1xf32> to vector<8x8x32xf32>
    %100 = vector.broadcast %98 : vector<1x1x32xf32> to vector<8x8x32xf32>
    %101 = arith.mulf %99, %100 : vector<8x8x32xf32>
    %102 = arith.addf %94, %101 : vector<8x8x32xf32>
    %103 = vector.extract_strided_slice %86 {offsets = [0, 0, 2], sizes = [8, 8, 1], strides = [1, 1, 1]} : vector<8x8x3xf32> to vector<8x8x1xf32>
    %104 = vector.extract_strided_slice %1 {offsets = [1, 0, 2, 0], sizes = [1, 1, 1, 32], strides = [1, 1, 1, 1]} : vector<3x3x3x32xf32> to vector<1x1x1x32xf32>
    %105 = vector.shape_cast %104 : vector<1x1x1x32xf32> to vector<32xf32>
    %106 = vector.shape_cast %105 : vector<32xf32> to vector<1x1x32xf32>
    %107 = vector.broadcast %103 : vector<8x8x1xf32> to vector<8x8x32xf32>
    %108 = vector.broadcast %106 : vector<1x1x32xf32> to vector<8x8x32xf32>
    %109 = arith.mulf %107, %108 : vector<8x8x32xf32>
    %110 = arith.addf %102, %109 : vector<8x8x32xf32>
    %c3 = arith.constant 3 : index
    %c0_17 = arith.constant 0 : index
    %c0_18 = arith.constant 0 : index
    %c0_19 = arith.constant 0 : index
    %111 = vector.load %arg1[%c3, %c0_17, %c0_18, %c0_19] : memref<4x9x9x3xbf16, #tpu.memory_space<vmem>>, vector<1x8x8x3xbf16>
    %112 = vector.shape_cast %111 : vector<1x8x8x3xbf16> to vector<8x8x3xbf16>
    %113 = arith.extf %112 : vector<8x8x3xbf16> to vector<8x8x3xf32>
    %114 = vector.extract_strided_slice %113 {offsets = [0, 0, 0], sizes = [8, 8, 1], strides = [1, 1, 1]} : vector<8x8x3xf32> to vector<8x8x1xf32>
    %115 = vector.extract_strided_slice %1 {offsets = [1, 1, 0, 0], sizes = [1, 1, 1, 32], strides = [1, 1, 1, 1]} : vector<3x3x3x32xf32> to vector<1x1x1x32xf32>
    %116 = vector.shape_cast %115 : vector<1x1x1x32xf32> to vector<32xf32>
    %117 = vector.shape_cast %116 : vector<32xf32> to vector<1x1x32xf32>
    %118 = vector.broadcast %114 : vector<8x8x1xf32> to vector<8x8x32xf32>
    %119 = vector.broadcast %117 : vector<1x1x32xf32> to vector<8x8x32xf32>
    %120 = arith.mulf %118, %119 : vector<8x8x32xf32>
    %121 = arith.addf %110, %120 : vector<8x8x32xf32>
    %122 = vector.extract_strided_slice %113 {offsets = [0, 0, 1], sizes = [8, 8, 1], strides = [1, 1, 1]} : vector<8x8x3xf32> to vector<8x8x1xf32>
    %123 = vector.extract_strided_slice %1 {offsets = [1, 1, 1, 0], sizes = [1, 1, 1, 32], strides = [1, 1, 1, 1]} : vector<3x3x3x32xf32> to vector<1x1x1x32xf32>
    %124 = vector.shape_cast %123 : vector<1x1x1x32xf32> to vector<32xf32>
    %125 = vector.shape_cast %124 : vector<32xf32> to vector<1x1x32xf32>
    %126 = vector.broadcast %122 : vector<8x8x1xf32> to vector<8x8x32xf32>
    %127 = vector.broadcast %125 : vector<1x1x32xf32> to vector<8x8x32xf32>
    %128 = arith.mulf %126, %127 : vector<8x8x32xf32>
    %129 = arith.addf %121, %128 : vector<8x8x32xf32>
    %130 = vector.extract_strided_slice %113 {offsets = [0, 0, 2], sizes = [8, 8, 1], strides = [1, 1, 1]} : vector<8x8x3xf32> to vector<8x8x1xf32>
    %131 = vector.extract_strided_slice %1 {offsets = [1, 1, 2, 0], sizes = [1, 1, 1, 32], strides = [1, 1, 1, 1]} : vector<3x3x3x32xf32> to vector<1x1x1x32xf32>
    %132 = vector.shape_cast %131 : vector<1x1x1x32xf32> to vector<32xf32>
    %133 = vector.shape_cast %132 : vector<32xf32> to vector<1x1x32xf32>
    %134 = vector.broadcast %130 : vector<8x8x1xf32> to vector<8x8x32xf32>
    %135 = vector.broadcast %133 : vector<1x1x32xf32> to vector<8x8x32xf32>
    %136 = arith.mulf %134, %135 : vector<8x8x32xf32>
    %137 = arith.addf %129, %136 : vector<8x8x32xf32>
    %c2_20 = arith.constant 2 : index
    %c0_21 = arith.constant 0 : index
    %c1_22 = arith.constant 1 : index
    %c0_23 = arith.constant 0 : index
    %138 = vector.load %arg1[%c2_20, %c0_21, %c1_22, %c0_23] : memref<4x9x9x3xbf16, #tpu.memory_space<vmem>>, vector<1x8x8x3xbf16>
    %139 = vector.shape_cast %138 : vector<1x8x8x3xbf16> to vector<8x8x3xbf16>
    %140 = arith.extf %139 : vector<8x8x3xbf16> to vector<8x8x3xf32>
    %141 = vector.extract_strided_slice %140 {offsets = [0, 0, 0], sizes = [8, 8, 1], strides = [1, 1, 1]} : vector<8x8x3xf32> to vector<8x8x1xf32>
    %142 = vector.extract_strided_slice %1 {offsets = [1, 2, 0, 0], sizes = [1, 1, 1, 32], strides = [1, 1, 1, 1]} : vector<3x3x3x32xf32> to vector<1x1x1x32xf32>
    %143 = vector.shape_cast %142 : vector<1x1x1x32xf32> to vector<32xf32>
    %144 = vector.shape_cast %143 : vector<32xf32> to vector<1x1x32xf32>
    %145 = vector.broadcast %141 : vector<8x8x1xf32> to vector<8x8x32xf32>
    %146 = vector.broadcast %144 : vector<1x1x32xf32> to vector<8x8x32xf32>
    %147 = arith.mulf %145, %146 : vector<8x8x32xf32>
    %148 = arith.addf %137, %147 : vector<8x8x32xf32>
    %149 = vector.extract_strided_slice %140 {offsets = [0, 0, 1], sizes = [8, 8, 1], strides = [1, 1, 1]} : vector<8x8x3xf32> to vector<8x8x1xf32>
    %150 = vector.extract_strided_slice %1 {offsets = [1, 2, 1, 0], sizes = [1, 1, 1, 32], strides = [1, 1, 1, 1]} : vector<3x3x3x32xf32> to vector<1x1x1x32xf32>
    %151 = vector.shape_cast %150 : vector<1x1x1x32xf32> to vector<32xf32>
    %152 = vector.shape_cast %151 : vector<32xf32> to vector<1x1x32xf32>
    %153 = vector.broadcast %149 : vector<8x8x1xf32> to vector<8x8x32xf32>
    %154 = vector.broadcast %152 : vector<1x1x32xf32> to vector<8x8x32xf32>
    %155 = arith.mulf %153, %154 : vector<8x8x32xf32>
    %156 = arith.addf %148, %155 : vector<8x8x32xf32>
    %157 = vector.extract_strided_slice %140 {offsets = [0, 0, 2], sizes = [8, 8, 1], strides = [1, 1, 1]} : vector<8x8x3xf32> to vector<8x8x1xf32>
    %158 = vector.extract_strided_slice %1 {offsets = [1, 2, 2, 0], sizes = [1, 1, 1, 32], strides = [1, 1, 1, 1]} : vector<3x3x3x32xf32> to vector<1x1x1x32xf32>
    %159 = vector.shape_cast %158 : vector<1x1x1x32xf32> to vector<32xf32>
    %160 = vector.shape_cast %159 : vector<32xf32> to vector<1x1x32xf32>
    %161 = vector.broadcast %157 : vector<8x8x1xf32> to vector<8x8x32xf32>
    %162 = vector.broadcast %160 : vector<1x1x32xf32> to vector<8x8x32xf32>
    %163 = arith.mulf %161, %162 : vector<8x8x32xf32>
    %164 = arith.addf %156, %163 : vector<8x8x32xf32>
    %c0_24 = arith.constant 0 : index
    %c1_25 = arith.constant 1 : index
    %c0_26 = arith.constant 0 : index
    %c0_27 = arith.constant 0 : index
    %165 = vector.load %arg1[%c0_24, %c1_25, %c0_26, %c0_27] : memref<4x9x9x3xbf16, #tpu.memory_space<vmem>>, vector<1x8x8x3xbf16>
    %166 = vector.shape_cast %165 : vector<1x8x8x3xbf16> to vector<8x8x3xbf16>
    %167 = arith.extf %166 : vector<8x8x3xbf16> to vector<8x8x3xf32>
    %168 = vector.extract_strided_slice %167 {offsets = [0, 0, 0], sizes = [8, 8, 1], strides = [1, 1, 1]} : vector<8x8x3xf32> to vector<8x8x1xf32>
    %169 = vector.extract_strided_slice %1 {offsets = [2, 0, 0, 0], sizes = [1, 1, 1, 32], strides = [1, 1, 1, 1]} : vector<3x3x3x32xf32> to vector<1x1x1x32xf32>
    %170 = vector.shape_cast %169 : vector<1x1x1x32xf32> to vector<32xf32>
    %171 = vector.shape_cast %170 : vector<32xf32> to vector<1x1x32xf32>
    %172 = vector.broadcast %168 : vector<8x8x1xf32> to vector<8x8x32xf32>
    %173 = vector.broadcast %171 : vector<1x1x32xf32> to vector<8x8x32xf32>
    %174 = arith.mulf %172, %173 : vector<8x8x32xf32>
    %175 = arith.addf %164, %174 : vector<8x8x32xf32>
    %176 = vector.extract_strided_slice %167 {offsets = [0, 0, 1], sizes = [8, 8, 1], strides = [1, 1, 1]} : vector<8x8x3xf32> to vector<8x8x1xf32>
    %177 = vector.extract_strided_slice %1 {offsets = [2, 0, 1, 0], sizes = [1, 1, 1, 32], strides = [1, 1, 1, 1]} : vector<3x3x3x32xf32> to vector<1x1x1x32xf32>
    %178 = vector.shape_cast %177 : vector<1x1x1x32xf32> to vector<32xf32>
    %179 = vector.shape_cast %178 : vector<32xf32> to vector<1x1x32xf32>
    %180 = vector.broadcast %176 : vector<8x8x1xf32> to vector<8x8x32xf32>
    %181 = vector.broadcast %179 : vector<1x1x32xf32> to vector<8x8x32xf32>
    %182 = arith.mulf %180, %181 : vector<8x8x32xf32>
    %183 = arith.addf %175, %182 : vector<8x8x32xf32>
    %184 = vector.extract_strided_slice %167 {offsets = [0, 0, 2], sizes = [8, 8, 1], strides = [1, 1, 1]} : vector<8x8x3xf32> to vector<8x8x1xf32>
    %185 = vector.extract_strided_slice %1 {offsets = [2, 0, 2, 0], sizes = [1, 1, 1, 32], strides = [1, 1, 1, 1]} : vector<3x3x3x32xf32> to vector<1x1x1x32xf32>
    %186 = vector.shape_cast %185 : vector<1x1x1x32xf32> to vector<32xf32>
    %187 = vector.shape_cast %186 : vector<32xf32> to vector<1x1x32xf32>
    %188 = vector.broadcast %184 : vector<8x8x1xf32> to vector<8x8x32xf32>
    %189 = vector.broadcast %187 : vector<1x1x32xf32> to vector<8x8x32xf32>
    %190 = arith.mulf %188, %189 : vector<8x8x32xf32>
    %191 = arith.addf %183, %190 : vector<8x8x32xf32>
    %c1_28 = arith.constant 1 : index
    %c1_29 = arith.constant 1 : index
    %c0_30 = arith.constant 0 : index
    %c0_31 = arith.constant 0 : index
    %192 = vector.load %arg1[%c1_28, %c1_29, %c0_30, %c0_31] : memref<4x9x9x3xbf16, #tpu.memory_space<vmem>>, vector<1x8x8x3xbf16>
    %193 = vector.shape_cast %192 : vector<1x8x8x3xbf16> to vector<8x8x3xbf16>
    %194 = arith.extf %193 : vector<8x8x3xbf16> to vector<8x8x3xf32>
    %195 = vector.extract_strided_slice %194 {offsets = [0, 0, 0], sizes = [8, 8, 1], strides = [1, 1, 1]} : vector<8x8x3xf32> to vector<8x8x1xf32>
    %196 = vector.extract_strided_slice %1 {offsets = [2, 1, 0, 0], sizes = [1, 1, 1, 32], strides = [1, 1, 1, 1]} : vector<3x3x3x32xf32> to vector<1x1x1x32xf32>
    %197 = vector.shape_cast %196 : vector<1x1x1x32xf32> to vector<32xf32>
    %198 = vector.shape_cast %197 : vector<32xf32> to vector<1x1x32xf32>
    %199 = vector.broadcast %195 : vector<8x8x1xf32> to vector<8x8x32xf32>
    %200 = vector.broadcast %198 : vector<1x1x32xf32> to vector<8x8x32xf32>
    %201 = arith.mulf %199, %200 : vector<8x8x32xf32>
    %202 = arith.addf %191, %201 : vector<8x8x32xf32>
    %203 = vector.extract_strided_slice %194 {offsets = [0, 0, 1], sizes = [8, 8, 1], strides = [1, 1, 1]} : vector<8x8x3xf32> to vector<8x8x1xf32>
    %204 = vector.extract_strided_slice %1 {offsets = [2, 1, 1, 0], sizes = [1, 1, 1, 32], strides = [1, 1, 1, 1]} : vector<3x3x3x32xf32> to vector<1x1x1x32xf32>
    %205 = vector.shape_cast %204 : vector<1x1x1x32xf32> to vector<32xf32>
    %206 = vector.shape_cast %205 : vector<32xf32> to vector<1x1x32xf32>
    %207 = vector.broadcast %203 : vector<8x8x1xf32> to vector<8x8x32xf32>
    %208 = vector.broadcast %206 : vector<1x1x32xf32> to vector<8x8x32xf32>
    %209 = arith.mulf %207, %208 : vector<8x8x32xf32>
    %210 = arith.addf %202, %209 : vector<8x8x32xf32>
    %211 = vector.extract_strided_slice %194 {offsets = [0, 0, 2], sizes = [8, 8, 1], strides = [1, 1, 1]} : vector<8x8x3xf32> to vector<8x8x1xf32>
    %212 = vector.extract_strided_slice %1 {offsets = [2, 1, 2, 0], sizes = [1, 1, 1, 32], strides = [1, 1, 1, 1]} : vector<3x3x3x32xf32> to vector<1x1x1x32xf32>
    %213 = vector.shape_cast %212 : vector<1x1x1x32xf32> to vector<32xf32>
    %214 = vector.shape_cast %213 : vector<32xf32> to vector<1x1x32xf32>
    %215 = vector.broadcast %211 : vector<8x8x1xf32> to vector<8x8x32xf32>
    %216 = vector.broadcast %214 : vector<1x1x32xf32> to vector<8x8x32xf32>
    %217 = arith.mulf %215, %216 : vector<8x8x32xf32>
    %218 = arith.addf %210, %217 : vector<8x8x32xf32>
    %c0_32 = arith.constant 0 : index
    %c1_33 = arith.constant 1 : index
    %c1_34 = arith.constant 1 : index
    %c0_35 = arith.constant 0 : index
    %219 = vector.load %arg1[%c0_32, %c1_33, %c1_34, %c0_35] : memref<4x9x9x3xbf16, #tpu.memory_space<vmem>>, vector<1x8x8x3xbf16>
    %220 = vector.shape_cast %219 : vector<1x8x8x3xbf16> to vector<8x8x3xbf16>
    %221 = arith.extf %220 : vector<8x8x3xbf16> to vector<8x8x3xf32>
    %222 = vector.extract_strided_slice %221 {offsets = [0, 0, 0], sizes = [8, 8, 1], strides = [1, 1, 1]} : vector<8x8x3xf32> to vector<8x8x1xf32>
    %223 = vector.extract_strided_slice %1 {offsets = [2, 2, 0, 0], sizes = [1, 1, 1, 32], strides = [1, 1, 1, 1]} : vector<3x3x3x32xf32> to vector<1x1x1x32xf32>
    %224 = vector.shape_cast %223 : vector<1x1x1x32xf32> to vector<32xf32>
    %225 = vector.shape_cast %224 : vector<32xf32> to vector<1x1x32xf32>
    %226 = vector.broadcast %222 : vector<8x8x1xf32> to vector<8x8x32xf32>
    %227 = vector.broadcast %225 : vector<1x1x32xf32> to vector<8x8x32xf32>
    %228 = arith.mulf %226, %227 : vector<8x8x32xf32>
    %229 = arith.addf %218, %228 : vector<8x8x32xf32>
    %230 = vector.extract_strided_slice %221 {offsets = [0, 0, 1], sizes = [8, 8, 1], strides = [1, 1, 1]} : vector<8x8x3xf32> to vector<8x8x1xf32>
    %231 = vector.extract_strided_slice %1 {offsets = [2, 2, 1, 0], sizes = [1, 1, 1, 32], strides = [1, 1, 1, 1]} : vector<3x3x3x32xf32> to vector<1x1x1x32xf32>
    %232 = vector.shape_cast %231 : vector<1x1x1x32xf32> to vector<32xf32>
    %233 = vector.shape_cast %232 : vector<32xf32> to vector<1x1x32xf32>
    %234 = vector.broadcast %230 : vector<8x8x1xf32> to vector<8x8x32xf32>
    %235 = vector.broadcast %233 : vector<1x1x32xf32> to vector<8x8x32xf32>
    %236 = arith.mulf %234, %235 : vector<8x8x32xf32>
    %237 = arith.addf %229, %236 : vector<8x8x32xf32>
    %238 = vector.extract_strided_slice %221 {offsets = [0, 0, 2], sizes = [8, 8, 1], strides = [1, 1, 1]} : vector<8x8x3xf32> to vector<8x8x1xf32>
    %239 = vector.extract_strided_slice %1 {offsets = [2, 2, 2, 0], sizes = [1, 1, 1, 32], strides = [1, 1, 1, 1]} : vector<3x3x3x32xf32> to vector<1x1x1x32xf32>
    %240 = vector.shape_cast %239 : vector<1x1x1x32xf32> to vector<32xf32>
    %241 = vector.shape_cast %240 : vector<32xf32> to vector<1x1x32xf32>
    %242 = vector.broadcast %238 : vector<8x8x1xf32> to vector<8x8x32xf32>
    %243 = vector.broadcast %241 : vector<1x1x32xf32> to vector<8x8x32xf32>
    %244 = arith.mulf %242, %243 : vector<8x8x32xf32>
    %245 = arith.addf %237, %244 : vector<8x8x32xf32>
    %c0_36 = arith.constant 0 : index
    %c0_37 = arith.constant 0 : index
    %c0_38 = arith.constant 0 : index
    %246 = vector.load %arg3[%c0_36, %c0_37, %c0_38] : memref<1x1x32xf32, #tpu.memory_space<vmem>>, vector<1x1x32xf32>
    %247 = vector.broadcast %246 : vector<1x1x32xf32> to vector<8x8x32xf32>
    %248 = arith.mulf %245, %247 : vector<8x8x32xf32>
    %c0_39 = arith.constant 0 : index
    %c0_40 = arith.constant 0 : index
    %c0_41 = arith.constant 0 : index
    %249 = vector.load %arg4[%c0_39, %c0_40, %c0_41] : memref<1x1x32xf32, #tpu.memory_space<vmem>>, vector<1x1x32xf32>
    %250 = vector.broadcast %249 : vector<1x1x32xf32> to vector<8x8x32xf32>
    %251 = arith.addf %248, %250 : vector<8x8x32xf32>
    %cst_42 = arith.constant 0.000000e+00 : f32
    %cst_43 = arith.constant 6.000000e+00 : f32
    %252 = vector.broadcast %cst_42 : f32 to vector<8x8x32xf32>
    %253 = arith.maximumf %252, %251 : vector<8x8x32xf32>
    %254 = vector.broadcast %cst_43 : f32 to vector<8x8x32xf32>
    %255 = arith.minimumf %254, %253 : vector<8x8x32xf32>
    %256 = arith.truncf %255 : vector<8x8x32xf32> to vector<8x8x32xbf16>
    %c0_44 = arith.constant 0 : index
    %c0_45 = arith.constant 0 : index
    %c0_46 = arith.constant 0 : index
    %c0_47 = arith.constant 0 : index
    %257 = vector.load %arg5[%c0_44, %c0_45, %c0_46, %c0_47] : memref<1x8x8x32xbf16, #tpu.memory_space<vmem>>, vector<1x8x8x32xbf16>
    %258 = vector.shape_cast %257 : vector<1x8x8x32xbf16> to vector<8x8x32xbf16>
    %259 = vector.shape_cast %256 : vector<8x8x32xbf16> to vector<1x8x8x32xbf16>
    tpu.vector_store %arg5[%c0_44, %c0_45, %c0_46, %c0_47], %259 {strides = array<i32>} : memref<1x8x8x32xbf16, #tpu.memory_space<vmem>>, vector<1x8x8x32xbf16>,
    return
  }
  func.func @transform_0(%arg0: i32) -> (i32, i32, i32, i32) {
    %c0_i32 = arith.constant 0 : i32
    %c0_i32_0 = arith.constant 0 : i32
    %c0_i32_1 = arith.constant 0 : i32
    %c0_i32_2 = arith.constant 0 : i32
    return %arg0, %c0_i32, %c0_i32_0, %c0_i32_1 : i32, i32, i32, i32
  }
  func.func @transform_1(%arg0: i32) -> (i32, i32, i32, i32) {
    %c0_i32 = arith.constant 0 : i32
    %c0_i32_0 = arith.constant 0 : i32
    %c0_i32_1 = arith.constant 0 : i32
    %c0_i32_2 = arith.constant 0 : i32
    %c0_i32_3 = arith.constant 0 : i32
    return %c0_i32, %c0_i32_0, %c0_i32_1, %c0_i32_2 : i32, i32, i32, i32
  }
  func.func @transform_2(%arg0: i32) -> (i32, i32, i32) {
    %c0_i32 = arith.constant 0 : i32
    %c0_i32_0 = arith.constant 0 : i32
    %c0_i32_1 = arith.constant 0 : i32
    %c0_i32_2 = arith.constant 0 : i32
    return %c0_i32, %c0_i32_0, %c0_i32_1 : i32, i32, i32
  }
  func.func @transform_3(%arg0: i32) -> (i32, i32, i32) {
    %c0_i32 = arith.constant 0 : i32
    %c0_i32_0 = arith.constant 0 : i32
    %c0_i32_1 = arith.constant 0 : i32
    %c0_i32_2 = arith.constant 0 : i32
    return %c0_i32, %c0_i32_0, %c0_i32_1 : i32, i32, i32
  }
  func.func @transform_4(%arg0: i32) -> (i32, i32, i32, i32) {
    %c0_i32 = arith.constant 0 : i32
    %c0_i32_0 = arith.constant 0 : i32
    %c0_i32_1 = arith.constant 0 : i32
    %c0_i32_2 = arith.constant 0 : i32
    return %arg0, %c0_i32, %c0_i32_0, %c0_i32_1 : i32, i32, i32, i32
  }
}

</mosaic_0001>

<bundles_post_ra>
// kernel: tpu_custom_call.1
= control target key start
LH: loop header
LB: loop body
LE: loop exit
PB: predicated region body
PF: predicated region fallthrough
CT: control target
= control target key end

     0   :  { %9 = vsyncpa [#allocation3], 0  ;;  %s5510_s0 = inlined_call_operand.vmem [shape: bf16[8,9,9,3], index: 0, kind: input, shape index: {}]   ;;  %s5511_s1 = inlined_call_operand.vmem [shape: bf16[3,3,3,32], index: 1, kind: input, shape index: {}]   ;;  %s5512_s2 = inlined_call_operand.vmem [shape: f32[1,1,32], index: 2, kind: input, shape index: {}]   ;;  %s5513_s3 = inlined_call_operand.vmem [shape: f32[1,1,32], index: 3, kind: input, shape index: {}]   ;;  %s5514_s4 = inlined_call_operand.hbm [shape: bf16[2,8,8,32], index: 4, kind: output, shape index: {}]  }
   0x1   :  { %11 = vsyncpa [#allocation3 + $0x1], 0  ;;  %s3825_s15 = smov 0   ;;  %s3827_s16 = smov 0  }
   0x2   :  { %s3829_s17 = smov 0   ;;  %s3831_s18 = smov 0  }
   0x3 LB: > { %s3846_s19 = sadd.s32 4294967295, %s3792_s18   ;;  %s2848_s20 = sadd.s32 4294967294, %s3792_s18   ;;  %s3792_s18 = sphi %s3831_s18, %s5802_s18   ;;  %s3788_s17 = sphi %s3829_s17, %s5801_s17   ;;  %s3784_s16 = sphi %s3827_s16, %s5800_s16   ;;  %s3780_s15 = sphi %s3825_s15, %s5799_s15  }
   0x4   : > { %s3850_s21 = sadd.s32 1, %s3792_s18   ;;  %s113_s22 = sadd.s32 1, %s3788_s17 }
   0x5   : > { %s110_s23 = ssub.s32 %s3792_s18, %s3850_s21  ;;  %p123_p0 = scmp.ne.s32.totalorder %s3788_s17, %s3784_s16 }
   0x6   : > { %p111_p1 = scmp.eq.s32.totalorder %s110_s23, 0  ;;  %p124_p2 = scmp.eq.s32.totalorder %s3846_s19, 1 }
   0x7   : > { %p129_p3 = scmp.ne.s32.totalorder %s3784_s16, %s3780_s15  ;;  %p130_p4 = scmp.eq.s32.totalorder %s2848_s20, 1 }
   0x8   : > { %s3861_s24 = scalar_select %p111_p1, %s3788_s17, %s113_s22  }
   0x9   : > { %p3863_p5 = por %p124_p2, %p123_p0  ;;  %p3867_p6 = por %p130_p4, %p129_p3 }
   0xa   : > { %p2851_p7 = scmp.ge.s32.totalorder %s3792_s18, 1  ;;  %p167_p8 = scmp.lt.s32.totalorder %s3792_s18, 3 }
   0xc   : > { %p168_p9 = pnand %p2851_p7, %p167_p8 }
   0xe   : > { %171 = sbr.rel (%p168_p9) target bundleno = 560 (0x230), region = 36 }
  0x15   : > { %s2853_s27 = sshll.u32 %s3846_s19, 2  ;;  %v5519_v0 = vmov 0   ;;  %v5517_v26 = vmov 1   ;;  %v5515_v40 = vmov 2   ;;  %vm728_vm0 = vcmask 1046528   ;;  %s191_s11 = sand.u32 1, %s3784_s16  }
  0x16   : > { %2991 = vset.pattern.permute.xlu1 %v5519_v0  ;;  %2980 = vset.pattern.permute.xlu0 %v5519_v0  ;;  %p195_p10 = scmp.lt.s32.totalorder %s2853_s27, 7  ;;  %s2852_s12 = sshll.u32 %s191_s11, 5  ;;  %vm2763_vm1 = vcmask 257024  }
  0x17   : > { %s5408_s13 = scalar_lea.vmem [#allocation2], %s2852_s12  ;;  %s2934_s14 = sshll.u32 %s3846_s19, 9 }
  0x18   : > { %s5804_s27 = smov (!%p195_p10, %s2853_s27), 7  ;;  %s2786_s20 = sshll.u32 %s5408_s13, 4  ;;  %s5463_s20 = int_to_ptr.vmem [resolvable:$true] %s2786_s20 }
  0x19   : > { %s2935_s28 = smul.u32 72, %s5804_s27  ;;  %s5461_s27 = scalar_lea.hbm %s5514_s4, %s2934_s14 }
  0x1a   : > { %s3730_s19 = scalar_lea.vmem %s5463_s20, 512  ;;  %s3797_s29 = smov [#allocation2]  }
  0x1b   : > { %s3879_s5 = scalar_lea.vmem %s5510_s0, %s2935_s28  ;;  %s5469_s28 = scalar_lea.sflag [#allocation3], %s191_s11 }
  0x1c   : > { %v223_v1 = vld [vmem:[%s3879_s5 + $0x20] ss:$8 sps:$4 sm:$0xff]   ;;  %v225_v3 = vld [vmem:[%s3879_s5 + $0x30] ss:$8 sps:$4 sm:$0xff]   ;;  %v583_v25 = vld [vmem:[%s3879_s5 + $0xc] sm:$0x1]  ;;  %p3731_p11 = scmp.ne.s32.totalorder %s5463_s20, %s3730_s19 }
  0x1d   : > { %v219_v2 = vld [vmem:[%s3879_s5] ss:$8 sps:$4 sm:$0xff]   ;;  %v231_v4 = vunpack.c.l.bf16 %v223_v1  ;;  %v232_v5 = vunpack.c.h.bf16 %v223_v1  ;;  %v221_v8 = vld [vmem:[%s3879_s5 + $0x10] ss:$8 sps:$4 sm:$0xff]   ;;  %v233_v9 = vunpack.c.l.bf16 %v225_v3  ;;  %v234_v10 = vunpack.c.h.bf16 %v225_v3  ;;  %v589_v30 = vld [vmem:[%s3879_s5 + $0x24] sm:$0x1] }
  0x1e   : > { %v227_v6 = vunpack.c.l.bf16 %v219_v2  ;;  %v228_v7 = vunpack.c.h.bf16 %v219_v2  ;;  %v229_v11 = vunpack.c.l.bf16 %v221_v8  ;;  %v230_v12 = vunpack.c.h.bf16 %v221_v8  ;;  %v2855_v13 = vld [vmem:[%s3879_s5 + $0x48] ss:$8 sps:$4 sm:$0xff]   ;;  %v2861_v20 = vld [vmem:[%s3879_s5 + $0x78] ss:$8 sps:$4 sm:$0xff]   ;;  %v593_v35 = vld [vmem:[%s3879_s5 + $0x34] sm:$0x1]  ;;  %p3732_p12 = pnand %p3731_p11, %p3863_p5 }
  0x1f   : > { %v2992_v14 = vpack.i.bf16 %v232_v5, %v231_v4  ;;  %v3889_v16 = vpack.i.bf16 %v234_v10, %v233_v9  ;;  %v408_v18 = vunpack.c.l.bf16 %v2855_v13  ;;  %v409_v19 = vunpack.c.h.bf16 %v2855_v13  ;;  %v582_v24 = vld [vmem:[%s3879_s5 + $0x8] ss:$24 sps:$4 sm:$0xff]   ;;  %v592_v34 = vld [vmem:[%s3879_s5 + $0x30] ss:$104 sps:$4 sm:$0xff]   ;;  %v2880_v60 = vld [vmem:[%s3879_s5 + $0x94] sm:$0x1] }
  0x20   : > { %v3886_v15 = vpack.i.bf16 %v228_v7, %v227_v6  ;;  %v3891_v17 = vpack.i.bf16 %v230_v12, %v229_v11  ;;  %v414_v22 = vunpack.c.l.bf16 %v2861_v20  ;;  %v415_v23 = vunpack.c.h.bf16 %v2861_v20  ;;  %v2863_v39 = vld [vmem:[%s3879_s5 + $0x58] ss:$56 sps:$4 sm:$0xff]   ;;  %v2858_v44 = vld [vmem:[%s3879_s5 + $0x60] ss:$104 sps:$4 sm:$0xff]   ;;  %v2886_v2 = vld [vmem:[%s3879_s5 + $0xac] sm:$0x1]  ;;  %p3733_p13 = pneg %p3732_p12 }
  0x21   : > { %2993 = vperm.xlu1 %2991, %v2992_v14   ;;  %v3896_v21 = vpack.i.bf16 %v409_v19, %v408_v18  ;;  %v598_v28 = vunpack.c.l.bf16 %v582_v24  ;;  %v599_v29 = vunpack.c.l.bf16 %v583_v25  ;;  %v604_v32 = vunpack.c.h.bf16 %v582_v24  ;;  %v2869_v45 = vld [vmem:[%s3879_s5 + $0x68] ss:$88 sps:$4 sm:$0xff]   ;;  %v2879_v59 = vld [vmem:[%s3879_s5 + $0x90] ss:$40 sps:$4 sm:$0xff]   ;;  %v2890_v6 = vld [vmem:[%s3879_s5 + $0xbc] sm:$0x1] }
  0x22   : > { %2982 = vperm.xlu0 %2980, %v3886_v15   ;;  %v3902_v27 = vpack.i.bf16 %v415_v23, %v414_v22  ;;  %v605_v33 = vunpack.c.l.bf16 %v589_v30  ;;  %v608_v37 = vunpack.c.l.bf16 %v592_v34  ;;  %v609_v38 = vunpack.c.l.bf16 %v593_v35  ;;  %v2860_v51 = vld [vmem:[%s3879_s5 + $0x70] ss:$120 sps:$4 sm:$0xff]   ;;  %v2894_v11 = vld [vmem:[%s3879_s5 + $0xcc] sm:$0x1]  ;;  %v2904_v24 = vld [vmem:[%s3879_s5] ss:$88 sps:$4 sm:$0xff]  }
  0x23   : > { %v3907_v31 = vpack.i.bf16 %v599_v29, %v598_v28  ;;  %v1058_v41 = vunpack.c.h.bf16 %v2863_v39  ;;  %v1059_v43 = vunpack.c.h.bf16 %v592_v34  ;;  %v410_v46 = vunpack.c.l.bf16 %v2863_v39  ;;  %v2874_v52 = vld [vmem:[%s3879_s5 + $0xa8] ss:$72 sps:$4 sm:$0xff]   ;;  %v581_v28 = vld [vmem:[%s3879_s5 + $0x4] sm:$0x1]  ;;  %s3734_s30 = sshll.u32 %s3797_s29, 4  ;;  %s3735_s30 = int_to_ptr.vmem [resolvable:$false] %s3734_s30 }
  0x24   : > { %v3912_v36 = vpack.i.bf16 %v605_v33, %v604_v32  ;;  %v3918_v42 = vpack.i.bf16 %v609_v38, %v608_v37  ;;  %v411_v47 = vunpack.c.l.bf16 %v2858_v44  ;;  %v1064_v49 = vunpack.c.h.bf16 %v2869_v45  ;;  %v2893_v10 = vld [vmem:[%s3879_s5 + $0x18] ss:$176 sps:$4 sm:$0xff]   ;;  %v2898_v18 = vld [vmem:[%s3879_s5 + $0x20] ss:$48 sps:$4 sm:$0xff]   ;;  %p3737_p0 = scmp.lt.s32.totalorder %s5463_s20, %s3735_s30 }
  0x25   : > { %2998 = vperm.xlu1 %2991, %v3889_v16   ;;  %v3923_v48 = vpack.i.bf16 %v1059_v43, %v1058_v41  ;;  %v1065_v50 = vunpack.c.h.bf16 %v2858_v44  ;;  %v412_v54 = vunpack.c.l.bf16 %v2869_v45  ;;  %v413_v55 = vunpack.c.l.bf16 %v2860_v51  ;;  %v3961_v23 = vld [vmem:[%s3879_s5 + $0x98] ss:$120 sps:$4 sm:$0xff]   ;;  %v3965_v25 = vld [vmem:[%s3879_s5 + $0xe0] ss:$40 sps:$4 sm:$0xff]   ;;  %v585_v43 = vld [vmem:[%s3879_s5 + $0x14] sm:$0x1] }
  0x26   : > { %2987 = vperm.xlu0 %2980, %v3891_v17   ;;  %v3928_v53 = vpack.i.bf16 %v411_v47, %v410_v46  ;;  %v1241_v57 = vunpack.c.h.bf16 %v2860_v51  ;;  %v1242_v58 = vunpack.c.h.bf16 %v2874_v52  ;;  %v1427_v63 = vunpack.c.l.bf16 %v2879_v59  ;;  %v2909_v35 = vld [vmem:[%s3879_s5 + $0x80] ss:$8 sps:$4 sm:$0xff]   ;;  %v584_v41 = vld [vmem:[%s3879_s5 + $0x10] ss:$8 sps:$4 sm:$0xff]  }
  0x27   : > { %v3931_v56 = vpack.i.bf16 %v1065_v50, %v1064_v49  ;;  %v3040_v61 = vpack.i.bf16 %v413_v55, %v412_v54  ;;  %v1428_v1 = vunpack.c.l.bf16 %v2880_v60  ;;  %v1433_v4 = vunpack.c.l.bf16 %v2874_v52  ;;  %v2913_v47 = vld [vmem:[%s3879_s5 + $0x10] ss:$24 sps:$4 sm:$0xff]   ;;  %v2914_v49 = vld [vmem:[%s3879_s5 + $0x14] sm:$0x1]  ;;  %v587_v54 = vld [vmem:[%s3879_s5 + $0x1c] sm:$0x1] }
  0x28   : > { %v3938_v62 = vpack.i.bf16 %v1242_v58, %v1241_v57  ;;  %v1434_v5 = vunpack.c.l.bf16 %v2886_v2  ;;  %v1437_v8 = vunpack.c.h.bf16 %v2879_v59  ;;  %v1438_v9 = vunpack.c.l.bf16 %v2890_v6  ;;  %v2920_v59 = vld [vmem:[%s3879_s5 + $0x2c] sm:$0x1] }
  0x29   : > { %3002 = vset.pattern.permute.xlu1 %v5517_v26  ;;  %v3942_v3 = vpack.i.bf16 %v1428_v1, %v1427_v63  ;;  %v1441_v13 = vunpack.c.h.bf16 %v2893_v10  ;;  %v1890_v20 = vunpack.c.l.bf16 %v2893_v10  ;;  %v1891_v22 = vunpack.c.l.bf16 %v2898_v18  ;;  %v590_v1 = vld [vmem:[%s3879_s5 + $0x28] ss:$16 sps:$4 sm:$0xff]   ;;  %v591_v2 = vld [vmem:[%s3879_s5 + $0x2c] sm:$0x1] }
  0x2a   : > { %3030 = vperm.xlu0 %2980, %v3896_v21   ;;  %3004 = vperm.xlu1 %3002, %v3891_v17   ;;  %v3948_v7 = vpack.i.bf16 %v1434_v5, %v1433_v4  ;;  %v3953_v12 = vpack.i.bf16 %v1438_v9, %v1437_v8  ;;  %v1245_v29 = vunpack.c.h.bf16 %v3965_v25  ;;  %v1246_v30 = vunpack.c.h.bf16 %v3961_v23  ;;  %v2924_v8 = vld [vmem:[%s3879_s5 + $0x3c] sm:$0x1] }
  0x2b   : > { %v3972_v32 = vpack.i.bf16 %v1891_v22, %v1890_v20  ;;  %v2069_v33 = vunpack.c.h.bf16 %v2898_v18  ;;  %v2070_v34 = vunpack.c.h.bf16 %v2904_v24  ;;  %v596_v38 = vunpack.c.l.bf16 %v2904_v24 }
  0x2c   : > { %v3976_v37 = vpack.i.bf16 %v1246_v30, %v1245_v29  ;;  %v597_v39 = vunpack.c.l.bf16 %v581_v28  ;;  %v2075_v45 = vunpack.c.l.bf16 %v2909_v35  ;;  %v2076_v46 = vunpack.c.h.bf16 %v2909_v35 }
  0x2d   : > { %v3981_v44 = vpack.i.bf16 %v2070_v34, %v2069_v33  ;;  %v600_v51 = vunpack.c.l.bf16 %v584_v41  ;;  %v601_v52 = vunpack.c.l.bf16 %v585_v43  ;;  %v2259_v57 = vunpack.c.l.bf16 %v2913_v47  ;;  %v2866_v34 = vld [vmem:[%s3879_s5 + $0xa8] ss:$48 sps:$4 sm:$0xff]  }
  0x2e   : > { %3046 = vperm.xlu0 %2980, %v3902_v27   ;;  %3009 = vperm.xlu1 %3002, %v2992_v14   ;;  %v3078_v50 = vpack.i.bf16 %v597_v39, %v596_v38  ;;  %v3987_v55 = vpack.i.bf16 %v2076_v46, %v2075_v45  ;;  %v2260_v58 = vunpack.c.l.bf16 %v2914_v49  ;;  %v603_v63 = vunpack.c.l.bf16 %v587_v54  ;;  %v2867_v46 = vld [vmem:[%s3879_s5 + $0xb0] ss:$8 sps:$4 sm:$0xff]   ;;  %v2888_v49 = vld [vmem:[%s3879_s5 + $0xb4] sm:$0x1] }
  0x2f   : > { %5600 = vst [vmem:[#allocation5_spill] sm:$0xff] %v3981_v44  ;;  %v3088_v60 = vpack.i.bf16 %v601_v52, %v600_v51  ;;  %v2265_v5 = vunpack.c.h.bf16 %v2913_v47  ;;  %v2266_v6 = vunpack.c.l.bf16 %v2920_v59  ;;  %v606_v10 = vunpack.c.l.bf16 %v590_v1  ;;  %v2887_v47 = vld [vmem:[%s3879_s5 + $0xb0] ss:$16 sps:$4 sm:$0xff]  }
  0x30   : > { %5601 = vst [vmem:[#allocation6_spill] sm:$0xff] %v3987_v55  ;;  %v3994_v4 = vpack.i.bf16 %v2260_v58, %v2259_v57  ;;  %v2269_v20 = vunpack.c.h.bf16 %v590_v1  ;;  %v2270_v22 = vunpack.c.l.bf16 %v2924_v8  ;;  %v1061_v35 = vunpack.c.l.bf16 %v2866_v34  ;;  %v2892_v57 = vld [vmem:[%s3879_s5 + $0xc4] sm:$0x1] }
  0x31   : > { %v4000_v18 = vpack.i.bf16 %v2266_v6, %v2265_v5  ;;  %v1240_v38 = vunpack.c.l.bf16 %v3965_v25  ;;  %v1429_v43 = vunpack.c.l.bf16 %v3961_v23  ;;  %v1063_v51 = vunpack.c.h.bf16 %v2867_v46  ;;  %v2901_v5 = vld [vmem:[%s3879_s5 + $0x38] ss:$8 sps:$4 sm:$0xff]  }
  0x32   : > { %3084 = vperm.xlu0 %2980, %v3907_v31   ;;  %3013 = vset.pattern.permute.xlu1 %v5515_v40  ;;  %5602 = vst [vmem:[#allocation7_spill] sm:$0xff] %v3994_v4  ;;  %v4003_v30 = vpack.i.bf16 %v2270_v22, %v2269_v20  ;;  %v1435_v52 = vunpack.c.l.bf16 %v2887_v47  ;;  %v1436_v54 = vunpack.c.l.bf16 %v2888_v49  ;;  %v1439_v59 = vunpack.c.h.bf16 %v2887_v47 }
  0x33   : > { %3015 = vperm.xlu1 %3013, %v3886_v15   ;;  %5603 = vst [vmem:[#allocation8_spill] sm:$0xff] %v4000_v18 }
  0x34   : > { %5604 = vst [vmem:[#allocation9_spill] sm:$0xff] %v4003_v30  ;;  %v4035_v58 = vpack.i.bf16 %v1436_v54, %v1435_v52 }
  0x36   : > { %3099 = vperm.xlu0 %2980, %v3912_v36  }
  0x37   : > { %3020 = vperm.xlu1 %3013, %v2992_v14   ;;  %v1442_v14 = vunpack.c.l.bf16 %v2894_v11  ;;  %v607_v11 = vunpack.c.l.bf16 %v591_v2 }
  0x39   : > { %v3958_v19 = vpack.i.bf16 %v1442_v14, %v1441_v13  ;;  %v594_v13 = vld [vmem:[%s3879_s5 + $0x38] ss:$104 sps:$4 sm:$0xff]   ;;  %v595_v14 = vld [vmem:[%s3879_s5 + $0x3c] sm:$0x1]  ;;  %v3103_v24 = vpack.i.bf16 %v607_v11, %v606_v10  ;;  %v1894_v10 = vunpack.c.l.bf16 %v2901_v5  ;;  %v1895_v11 = vunpack.c.h.bf16 %v2901_v5 }
  0x3a   : > { %3109 = vperm.xlu0 %2980, %v3918_v42   ;;  %v610_v28 = vunpack.c.l.bf16 %v594_v13  ;;  %v611_v29 = vunpack.c.l.bf16 %v595_v14 }
  0x3b   : > { %3025 = vperm.xlu1 %3013, %v3889_v16   ;;  %v4057_v22 = vpack.i.bf16 %v1895_v11, %v1894_v10 }
  0x3c   : > { %v3113_v33 = vpack.i.bf16 %v611_v29, %v610_v28  ;;  %v2911_v29 = vld [vmem:[%s3879_s5 + $0x8] ss:$24 sps:$4 sm:$0xff]  }
  0x3d   : > { %5607 = vst [vmem:[#allocation12_spill] sm:$0xff] %v4057_v22  ;;  %v2263_v47 = vunpack.c.h.bf16 %v2911_v29 }
  0x3e   : > { %3166 = vperm.xlu0 %2980, %v3923_v48  }
  0x3f   : > { %3034 = vset.pattern.permute.xlu1 %v5519_v0 }
  0x40   : > { %3036 = vperm.xlu1 %3034, %v3928_v53  }
  0x42   : > { %3182 = vperm.xlu0 %2980, %v3931_v56  }
  0x44   : > { %3041 = vperm.xlu1 %3034, %v3040_v61  }
  0x46   : > { %3220 = vperm.xlu0 %2980, %v3938_v62  }
  0x48   : > { %3050 = vset.pattern.permute.xlu1 %v5517_v26 }
  0x49   : > { %3052 = vperm.xlu1 %3050, %v3896_v21  }
  0x4a   : > { %3262 = vperm.xlu0 %2980, %v3942_v3  }
  0x4d   : > { %3057 = vperm.xlu1 %3050, %v3040_v61  }
  0x4e   : > { %3278 = vperm.xlu0 %2980, %v3948_v7  }
  0x51   : > { %3062 = vperm.xlu1 %3050, %v3902_v27  }
  0x52   : > { %3288 = vperm.xlu0 %2980, %v3953_v12  }
  0x55   : > { %3066 = vset.pattern.permute.xlu1 %v5515_v40 }
  0x56   : > { %3298 = vperm.xlu0 %2980, %v3958_v19   ;;  %3068 = vperm.xlu1 %3066, %v3928_v53  }
  0x5a   : > { %3356 = vperm.xlu0 %2980, %v3972_v32   ;;  %3073 = vperm.xlu1 %3066, %v3040_v61   ;;  %v602_v61 = vunpack.c.h.bf16 %v584_v41  ;;  %v2882_v41 = vld [vmem:[%s3879_s5 + $0x9c] sm:$0x1] }
  0x5b   : > { %v1430_v45 = vunpack.c.l.bf16 %v2882_v41  ;;  %v2918_v41 = vld [vmem:[%s3879_s5 + $0x24] sm:$0x1] }
  0x5c   : > { %v3093_v9 = vpack.i.bf16 %v603_v63, %v602_v61  ;;  %v2895_v61 = vld [vmem:[%s3879_s5 + $0x8] ss:$8 sps:$4 sm:$0xff]   ;;  %v2264_v49 = vunpack.c.l.bf16 %v2918_v41 }
  0x5d   : > { %v4029_v25 = vpack.i.bf16 %v1430_v45, %v1429_v43  ;;  %v1888_v1 = vunpack.c.l.bf16 %v2895_v61  ;;  %v1889_v2 = vunpack.c.h.bf16 %v2895_v61  ;;  %v2876_v61 = vld [vmem:[%s3879_s5 + $0x100] sm:$0xf] }
  0x5e   : > { %3398 = vperm.xlu0 %2980, %v3981_v44   ;;  %3077 = vset.pattern.permute.xlu1 %v5519_v0  ;;  %v1244_v11 = vunpack.c.l.bf16 %v2876_v61 }
  0x5f   : > { %3079 = vperm.xlu1 %3077, %v3078_v50  }
  0x62   : > { %3414 = vperm.xlu0 %2980, %v3987_v55  }
  0x63   : > { %3089 = vperm.xlu1 %3077, %v3088_v60  }
  0x66   : > { %3452 = vperm.xlu0 %2980, %v3994_v4  }
  0x67   : > { %3094 = vperm.xlu1 %3077, %v3093_v9  }
  0x6a   : > { %3467 = vperm.xlu0 %2980, %v4000_v18  }
  0x6b   : > { %3104 = vperm.xlu1 %3077, %v3103_v24  }
  0x6e   : > { %3477 = vperm.xlu0 %2980, %v4003_v30  }
  0x6f   : > { %3114 = vperm.xlu1 %3077, %v3113_v33  }
  0x72   : > { %3481 = vset.pattern.permute.xlu0 %v5517_v26 }
  0x73   : > { %3483 = vperm.xlu0 %3481, %v3886_v15   ;;  %3118 = vset.pattern.permute.xlu1 %v5517_v26  ;;  %v1060_v15 = vunpack.c.h.bf16 %v594_v13  ;;  %v2905_v13 = vld [vmem:[%s3879_s5 + $0x60] ss:$8 sps:$4 sm:$0xff]  }
  0x74   : > { %3120 = vperm.xlu1 %3118, %v3907_v31   ;;  %v2072_v28 = vunpack.c.h.bf16 %v2905_v13 }
  0x77   : > { %3488 = vperm.xlu0 %3481, %v3889_v16   ;;  %v4016_v16 = vpack.i.bf16 %v1061_v35, %v1060_v15 }
  0x78   : > { %3125 = vperm.xlu1 %3118, %v3088_v60  }
  0x7b   : > { %3493 = vperm.xlu0 %3481, %v3928_v53   ;;  %v1239_v53 = vunpack.c.h.bf16 %v2866_v34 }
  0x7c   : > { %3130 = vperm.xlu1 %3118, %v3912_v36  }
  0x7d   : > { %v4020_v39 = vpack.i.bf16 %v1240_v38, %v1239_v53  ;;  %v2257_v53 = vunpack.c.l.bf16 %v2911_v29 }
  0x7f   : > { %3498 = vperm.xlu0 %3481, %v3078_v50  }
  0x80   : > { %3135 = vperm.xlu1 %3118, %v3918_v42  }
  0x83   : > { %3503 = vperm.xlu0 %3481, %v3093_v9  }
  0x84   : > { %3139 = vset.pattern.permute.xlu1 %v5515_v40 }
  0x85   : > { %3141 = vperm.xlu1 %3139, %v3078_v50   ;;  %v1062_v50 = vunpack.c.l.bf16 %v2867_v46 }
  0x87   : > { %3508 = vperm.xlu0 %3481, %v3103_v24   ;;  %v3176_v23 = vpack.i.bf16 %v1063_v51, %v1062_v50  ;;  %v2921_v50 = vld [vmem:[%s3879_s5 + $0x30] ss:$200 sps:$4 sm:$0xff]   ;;  %v2922_v51 = vld [vmem:[%s3879_s5 + $0x34] sm:$0x1] }
  0x88   : > { %v1243_v10 = vunpack.c.h.bf16 %v2921_v50 }
  0x89   : > { %3146 = vperm.xlu1 %3139, %v3088_v60   ;;  %v1440_v60 = vunpack.c.l.bf16 %v2892_v57  ;;  %v4086_v57 = vpack.i.bf16 %v2264_v49, %v2263_v47 }
  0x8b   : > { %3513 = vperm.xlu0 %3481, %v3113_v33   ;;  %v4039_v63 = vpack.i.bf16 %v1440_v60, %v1439_v59  ;;  %5610 = vst [vmem:[#allocation15_spill] sm:$0xff] %v4086_v57  ;;  %v2267_v59 = vunpack.c.l.bf16 %v2921_v50  ;;  %v2268_v60 = vunpack.c.l.bf16 %v2922_v51 }
  0x8d   : > { %3151 = vperm.xlu1 %3139, %v3093_v9   ;;  %5605 = vst [vmem:[#allocation10_spill] sm:$0xff] %v4039_v63  ;;  %v4048_v9 = vpack.i.bf16 %v1889_v2, %v1888_v1  ;;  %v2925_v1 = vld [vmem:[%s3879_s5 + $0x40] sm:$0xf]  ;;  %v2926_v2 = vld [vmem:[%s3879_s5 + $0x44] sm:$0x1] }
  0x8f   : > { %3518 = vperm.xlu0 %3481, %v4016_v16   ;;  %5606 = vst [vmem:[#allocation11_spill] sm:$0xff] %v4048_v9 }
  0x91   : > { %3156 = vperm.xlu1 %3139, %v3103_v24   ;;  %v2071_v24 = vunpack.c.l.bf16 %v2905_v13 }
  0x93   : > { %3523 = vperm.xlu0 %3481, %v4020_v39   ;;  %v4066_v35 = vpack.i.bf16 %v2072_v28, %v2071_v24  ;;  %v2271_v24 = vunpack.c.l.bf16 %v2925_v1  ;;  %v2272_v28 = vunpack.c.l.bf16 %v2926_v2 }
  0x95   : > { %3161 = vperm.xlu1 %3139, %v3113_v33   ;;  %v2912_v33 = vld [vmem:[%s3879_s5 + $0xc] sm:$0x1]  ;;  %5608 = vst [vmem:[#allocation13_spill] sm:$0xff] %v4066_v35 }
  0x96   : > { %v2258_v38 = vunpack.c.l.bf16 %v2912_v33  ;;  %v3224_v33 = vpack.i.bf16 %v1244_v11, %v1243_v10  ;;  %v202_v10 = vld [vmem:[%s5511_s1 + $0x2] sm:$0x3] }
  0x97   : > { %3528 = vperm.xlu0 %3481, %v3976_v37  }
  0x98   : > { %v4075_v46 = vpack.i.bf16 %v2258_v38, %v2257_v53  ;;  %v4105_v53 = vpack.i.bf16 %v2272_v28, %v2271_v24  ;;  %v205_v24 = vld [vmem:[%s5511_s1 + $0x8] sm:$0x3]  ;;  %v206_v28 = vld [vmem:[%s5511_s1 + $0xa] sm:$0x3] }
  0x99   : > { %3170 = vset.pattern.permute.xlu1 %v5519_v0 }
  0x9a   : > { %3172 = vperm.xlu1 %3170, %v4016_v16   ;;  %5609 = vst [vmem:[#allocation14_spill] sm:$0xff] %v4075_v46  ;;  %5612 = vst [vmem:[#allocation17_spill] sm:$0xff] %v4105_v53 }
  0x9b   : > { %3533 = vperm.xlu0 %3481, %v4029_v25  }
  0x9e   : > { %3177 = vperm.xlu1 %3170, %v3176_v23  }
  0x9f   : > { %3538 = vperm.xlu0 %3481, %v4035_v58  }
  0xa0   : > { %v4042_v6 = vpop.permute.xlu1 %2993 }
  0xa1   : > { %v4044_v8 = vpop.permute.xlu0 %2982 }
  0xa2   : > { %3186 = vset.pattern.permute.xlu1 %v5517_v26 }
  0xa3   : > { %3543 = vperm.xlu0 %3481, %v4039_v63   ;;  %3188 = vperm.xlu1 %3186, %v3923_v48  }
  0xa4   : > { %v4052_v14 = vpop.permute.xlu1 %2998 }
  0xa5   : > { %v4054_v20 = vpop.permute.xlu0 %2987 }
  0xa7   : > { %3548 = vperm.xlu0 %3481, %v4048_v9   ;;  %3193 = vperm.xlu1 %3186, %v3176_v23  }
  0xa9   : > { %v4061_v34 = vpop.permute.xlu0 %3030  ;;  %v4063_v15 = vpop.permute.xlu1 %3004 }
  0xab   : > { %3553 = vperm.xlu0 %3481, %v4057_v22   ;;  %3198 = vperm.xlu1 %3186, %v3931_v56  }
  0xad   : > { %v4070_v43 = vpop.permute.xlu0 %3046  ;;  %v4072_v45 = vpop.permute.xlu1 %3009 }
  0xaf   : > { %3558 = vperm.xlu0 %3481, %v4066_v35   ;;  %3202 = vset.pattern.permute.xlu1 %v5515_v40 }
  0xb0   : > { %3204 = vperm.xlu1 %3202, %v4016_v16   ;;  %v4096_v16 = vpack.i.bf16 %v2268_v60, %v2267_v59  ;;  %v275_v60 = vlaneseq }
  0xb1   : > { %v4081_v52 = vpop.permute.xlu0 %3084 }
  0xb2   : > { %v4083_v54 = vpop.permute.xlu1 %3015  ;;  %5611 = vst [vmem:[#allocation16_spill] sm:$0xff] %v4096_v16 }
  0xb3   : > { %3568 = vperm.xlu0 %3481, %v4075_v46  }
  0xb4   : > { %3209 = vperm.xlu1 %3202, %v3176_v23  }
  0xb5   : > { %v4091_v5 = vpop.permute.xlu0 %3099 }
  0xb6   : > { %v4093_v13 = vpop.permute.xlu1 %3020 }
  0xb7   : > { %3584 = vperm.xlu0 %3481, %v4086_v57   ;;  %v211_v57 = vunpack.c.l.bf16 %v202_v10 }
  0xb8   : > { %3213 = vset.pattern.permute.xlu1 %v5519_v0  ;;  %v2883_v0 = vld [vmem:[%s3879_s5 + $0x28] ss:$120 sps:$4 sm:$0xff]  }
  0xb9   : > { %v4099_v29 = vpop.permute.xlu0 %3109  ;;  %3215 = vperm.xlu1 %3213, %v4020_v39   ;;  %v1431_v30 = vunpack.c.h.bf16 %v2883_v0 }
  0xba   : > { %v4102_v23 = vpop.permute.xlu1 %3025 }
  0xbb   : > { %3594 = vperm.xlu0 %3481, %v4096_v16  }
  0xbd   : > { %v4107_v38 = vpop.permute.xlu0 %3166  ;;  %3225 = vperm.xlu1 %3213, %v3224_v33  }
  0xbf   : > { %3604 = vperm.xlu0 %3481, %v4105_v53   ;;  %v4110_v41 = vpop.permute.xlu1 %3036  ;;  %v2884_v53 = vld [vmem:[%s3879_s5 + $0xa4] sm:$0x1] }
  0xc0   : > { %v1432_v18 = vunpack.c.l.bf16 %v2884_v53 }
  0xc1   : > { %v4112_v47 = vpop.permute.xlu0 %3182  ;;  %3230 = vperm.xlu1 %3213, %v3976_v37  }
  0xc2   : > { %v4227_v4 = vpack.i.bf16 %v1432_v18, %v1431_v30 }
  0xc3   : > { %3608 = vset.pattern.permute.xlu0 %v5515_v40  ;;  %v4116_v49 = vpop.permute.xlu1 %3041 }
  0xc4   : > { %3610 = vperm.xlu0 %3608, %v3891_v17   ;;  %v276_v17 = vshrl.u32 %v275_v60, 7 }
  0xc5   : > { %v4119_v50 = vpop.permute.xlu0 %3220  ;;  %3234 = vset.pattern.permute.xlu1 %v5517_v26  ;;  %v207_v26 = vld [vmem:[%s5511_s1 + $0xc] sm:$0x3] }
  0xc6   : > { %3236 = vperm.xlu1 %3234, %v3938_v62   ;;  %v4152_v11 = vsub.s32 0, %v276_v17  ;;  %v4168_v16 = vsub.s32 1, %v276_v17  ;;  %v4170_v35 = vsub.s32 2, %v276_v17  ;;  %v4182_v9 = vunpack.c.l.bf16 %v207_v26 }
  0xc8   : > { %3615 = vperm.xlu0 %3608, %v3896_v21   ;;  %v4124_v51 = vpop.permute.xlu1 %3052  ;;  %5614 = vst [vmem:[#allocation19_spill] sm:$0xff] %v4152_v11  ;;  %5616 = vst [vmem:[#allocation21_spill] sm:$0xff] %v4168_v16 }
  0xc9   : > { %v4126_v59 = vpop.permute.xlu0 %3262  ;;  %5617 = vst [vmem:[#allocation22_spill] sm:$0xff] %v4170_v35  ;;  %5620 = vst [vmem:[#allocation25_spill] sm:$0xff] %v4182_v9 }
  0xca   : > { %3241 = vperm.xlu1 %3234, %v3224_v33  }
  0xcc   : > { %3620 = vperm.xlu0 %3608, %v3902_v27   ;;  %v4129_v61 = vpop.permute.xlu1 %3057  ;;  %v201_v27 = vld [vmem:[%s5511_s1] sm:$0x3] }
  0xcd   : > { %v4131_v1 = vpop.permute.xlu0 %3278  ;;  %v210_v60 = vunpack.c.l.bf16 %v201_v27  ;;  %v4178_v27 = vunpack.c.l.bf16 %v206_v28  ;;  %v4212_v28 = vrot.slane %v211_v57, %v4168_v16 }
  0xce   : > { %3245 = vset.pattern.permute.xlu1 %v5515_v40 }
  0xcf   : > { %3247 = vperm.xlu1 %3245, %v4020_v39   ;;  %v203_v39 = vld [vmem:[%s5511_s1 + $0x4] sm:$0x3]  ;;  %5619 = vst [vmem:[#allocation24_spill] sm:$0xff] %v4178_v27  ;;  %v4185_v10 = vrot.slane %v210_v60, %v4152_v11  ;;  %v4199_v26 = vrot.slane %v210_v60, %v4170_v35  ;;  %5625 = vst [vmem:[#allocation30_spill] sm:$0xff] %v4212_v28 }
  0xd0   : > { %3625 = vperm.xlu0 %3608, %v3907_v31   ;;  %v4136_v21 = vpop.permute.xlu1 %3062  ;;  %v204_v31 = vld [vmem:[%s5511_s1 + $0x6] sm:$0x3]  ;;  %v212_v46 = vunpack.c.l.bf16 %v203_v39  ;;  %v4190_v39 = vrot.slane %v210_v60, %v4168_v16  ;;  %v4219_v60 = vrot.slane %v211_v57, %v4170_v35 }
  0xd1   : > { %5613 = vst [vmem:[#allocation18_spill] sm:$0xff] %v4136_v21  ;;  %v4138_v2 = vpop.permute.xlu0 %3288  ;;  %5622 = vst [vmem:[#allocation27_spill] sm:$0xff] %v4199_v26 }
  0xd2   : > { %5627 = vst [vmem:[#allocation32_spill] sm:$0xff] %v4219_v60  ;;  %v4236_v28 = vrot.slane %v212_v46, %v4168_v16  ;;  %v1892_v60 = vunpack.c.l.bf16 %v2883_v0  ;;  %v4247_v30 = vrot.slane %v212_v46, %v4170_v35 }
  0xd3   : > { %3252 = vperm.xlu1 %3245, %v3224_v33   ;;  %v4174_v33 = vunpack.c.l.bf16 %v204_v31  ;;  %v4193_v31 = vrot.slane %v211_v57, %v4152_v11 }
  0xd4   : > { %3630 = vperm.xlu0 %3608, %v3912_v36   ;;  %v4176_v36 = vunpack.c.l.bf16 %v205_v24  ;;  %5631 = vst [vmem:[#allocation35_spill] sm:$0xff] %v4236_v28  ;;  %5633 = vst [vmem:[#allocation37_spill] sm:$0xff] %v4247_v30  ;;  %v3007_v30 = vunpack.i.h.bf16 %v4063_v15 }
  0xd5   : > { %v4161_v40 = vpop.permute.xlu0 %3298  ;;  %v4172_v22 = vpop.permute.xlu1 %3068  ;;  %v4205_v53 = vrot.slane %v4174_v33, %v4152_v11  ;;  %v4253_v0 = vrot.slane %v4174_v33, %v4168_v16 }
  0xd6   : > { %5615 = vst [vmem:[#allocation20_spill] sm:$0xff] %v4161_v40  ;;  %5618 = vst [vmem:[#allocation23_spill] sm:$0xff] %v4172_v22  ;;  %v4209_v24 = vrot.slane %v4176_v36, %v4152_v11  ;;  %v5629_v22 = vmov 0   ;;  %v4230_v40 = vld [vmem:[%s3879_s5 + $0x30] ss:$72 sps:$4 sm:$0xff]   ;;  %v4260_v28 = vrot.slane %v4176_v36, %v4168_v16 }
  0xd7   : > { %3257 = vperm.xlu1 %3245, %v3976_v37   ;;  %v4196_v37 = vrot.slane %v212_v46, %v4152_v11  ;;  %5634 = vst [vmem:[#allocation38_spill] sm:$0xff] %v4253_v0  ;;  %v2990_v46 = vunpack.i.h.bf16 %v4054_v20 }
  0xd8   : > { %3635 = vperm.xlu0 %3608, %v3918_v42   ;;  %5624 = vst [vmem:[#allocation29_spill] sm:$0xff] %v4209_v24  ;;  %5635 = vst [vmem:[#allocation39_spill] sm:$0xff] %v4260_v28  ;;  %v3001_v28 = vunpack.i.h.bf16 %v4052_v14 }
  0xd9   : > { %v4187_v17 = vpop.permute.xlu0 %3356  ;;  %v4201_v42 = vpop.permute.xlu1 %3073 }
  0xda   : > { %5621 = vst [vmem:[#allocation26_spill] sm:$0xff] %v4187_v17  ;;  %5623 = vst [vmem:[#allocation28_spill] sm:$0xff] %v4201_v42  ;;  %v4216_v17 = vrot.slane %v4178_v27, %v4152_v11  ;;  %v4223_v42 = vrot.slane %v4182_v9, %v4152_v11  ;;  %v1893_v11 = vunpack.c.l.bf16 %v4230_v40  ;;  %v2985_v9 = vunpack.i.h.bf16 %v4044_v8 }
  0xdb   : > { %3266 = vset.pattern.permute.xlu1 %v5629_v22  ;;  %v3006_v22 = vunpack.i.l.bf16 %v4063_v15  ;;  %v3000_v15 = vunpack.i.l.bf16 %v4052_v14  ;;  %v3012_v14 = vunpack.i.h.bf16 %v4072_v45 }
  0xdc   : > { %5626 = vst [vmem:[#allocation31_spill] sm:$0xff] %v4216_v17  ;;  %5628 = vst [vmem:[#allocation33_spill] sm:$0xff] %v4223_v42  ;;  %3640 = vperm.xlu0 %3608, %v3923_v48   ;;  %3268 = vperm.xlu1 %3266, %v4029_v25   ;;  %v2996_v48 = vunpack.i.h.bf16 %v4042_v6  ;;  %v2984_v42 = vunpack.i.l.bf16 %v4044_v8 }
  0xdd   : > { %v4233_v21 = vpop.permute.xlu0 %3398 }
  0xde   : > { %5630 = vst [vmem:[#allocation34_spill] sm:$0xff] %v4233_v21  ;;  %v4238_v57 = vpop.permute.xlu1 %3079  ;;  %v2995_v21 = vunpack.i.l.bf16 %v4042_v6  ;;  %v2989_v6 = vunpack.i.l.bf16 %v4054_v20  ;;  %v284_v8 = vmul.f32 %v2996_v48, %v4185_v10  ;;  %v4279_v20 = vmul.f32 %v2985_v9, %v4185_v10 }
  0xdf   : > { %v3033_v48 = vunpack.i.h.bf16 %v4061_v34  ;;  %v334_v9 = vmul.f32 %v3007_v30, %v4190_v39  ;;  %v4306_v30 = vmul.f32 %v3000_v15, %v4185_v10 }
  0xe0   : > { %3645 = vperm.xlu0 %3608, %v3931_v56   ;;  %3273 = vperm.xlu1 %3266, %v4227_v4   ;;  %5639 = vst [vmem:[#allocation43_spill] sm:$0xff] %v4279_v20 }
  0xe1   : > { %v4244_v18 = vpop.permute.xlu0 %3414 }
  0xe2   : > { %5632 = vst [vmem:[#allocation36_spill] sm:$0xff] %v4244_v18  ;;  %v4256_v56 = vpop.permute.xlu1 %3089  ;;  %v4262_v18 = vpack.i.bf16 %v1893_v11, %v1892_v60  ;;  %v4275_v11 = vrot.slane %v4178_v27, %v4168_v16  ;;  %v283_v60 = vmul.f32 %v2995_v21, %v4185_v10  ;;  %v282_v16 = vmul.f32 %v2990_v46, %v4185_v10 }
  0xe3   : > { %v281_v21 = vmul.f32 %v2989_v6, %v4185_v10  ;;  %v3087_v27 = vunpack.i.h.bf16 %v4081_v52  ;;  %v4303_v46 = vmul.f32 %v3001_v28, %v4185_v10  ;;  %v3048_v6 = vunpack.i.l.bf16 %v4070_v43 }
  0xe4   : > { %5636 = vst [vmem:[#allocation40_spill] sm:$0xff] %v4262_v18  ;;  %3650 = vperm.xlu0 %3608, %v3938_v62   ;;  %3283 = vperm.xlu1 %3266, %v4035_v58   ;;  %5638 = vst [vmem:[#allocation42_spill] sm:$0xff] %v4275_v11  ;;  %v4284_v62 = vmul.f32 %v2984_v42, %v4185_v10  ;;  %v333_v11 = vmul.f32 %v3006_v22, %v4190_v39  ;;  %v3011_v42 = vunpack.i.l.bf16 %v4072_v45 }
  0xe5   : > { %v4271_v0 = vpop.permute.xlu0 %3452  ;;  %v3049_v22 = vunpack.i.h.bf16 %v4070_v43  ;;  %v4311_v45 = vmul.f32 %v3033_v48, %v4193_v31  ;;  %v3102_v28 = vunpack.i.h.bf16 %v4091_v5  ;;  %v3101_v10 = vunpack.i.l.bf16 %v4091_v5 }
  0xe6   : > { %5637 = vst [vmem:[#allocation41_spill] sm:$0xff] %v4271_v0  ;;  %5640 = vst [vmem:[#allocation44_spill] sm:$0xff] %v4284_v62  ;;  %v3032_v0 = vunpack.i.l.bf16 %v4061_v34  ;;  %v4288_v18 = vpop.permute.xlu1 %3094  ;;  %v3086_v34 = vunpack.i.l.bf16 %v4081_v52  ;;  %v336_v43 = vmul.f32 %v3012_v14, %v4190_v39  ;;  %v335_v15 = vmul.f32 %v3011_v42, %v4190_v39 }
  0xe7   : > { %5642 = vst [vmem:[#allocation46_spill] sm:$0xff] %v4311_v45  ;;  %v4336_v5 = vmul.f32 %v3048_v6, %v4193_v31  ;;  %v4342_v14 = vrot.slane %v4174_v33, %v4170_v35  ;;  %v3022_v42 = vunpack.i.l.bf16 %v4093_v13  ;;  %v4351_v6 = vld [vmem:[%s3879_s5 + $0x18] ss:$88 sps:$4 sm:$0xff]  }
  0xe8   : > { %3655 = vperm.xlu0 %3608, %v3942_v3   ;;  %3293 = vperm.xlu1 %3266, %v4039_v63   ;;  %v4314_v62 = vmul.f32 %v3032_v0, %v4193_v31  ;;  %v4318_v63 = vadd.f32 %v333_v11, %v281_v21  ;;  %v699_v0 = vmul.f32 %v3087_v27, %v4196_v37  ;;  %v5646_v11 = vmov 1  }
  0xe9   : > { %v4300_v20 = vpop.permute.xlu0 %3467  ;;  %v698_v48 = vmul.f32 %v3086_v34, %v4196_v37  ;;  %v4333_v21 = vmul.f32 %v3049_v22, %v4193_v31  ;;  %5649 = vst [vmem:[#allocation52_spill] sm:$0xff] %v4336_v5  ;;  %5650 = vst [vmem:[#allocation53_spill] sm:$0xff] %v4342_v14  ;;  %v3018_v27 = vunpack.i.h.bf16 %v4083_v54  ;;  %v3112_v34 = vunpack.i.h.bf16 %v4099_v29 }
  0xea   : > { %5641 = vst [vmem:[#allocation45_spill] sm:$0xff] %v4300_v20  ;;  %5643 = vst [vmem:[#allocation47_spill] sm:$0xff] %v4314_v62  ;;  %v4316_v52 = vpop.permute.xlu1 %3104  ;;  %v4320_v20 = vadd.f32 %v334_v9, %v282_v16  ;;  %v3023_v9 = vunpack.i.h.bf16 %v4093_v13  ;;  %v3111_v22 = vunpack.i.l.bf16 %v4099_v29  ;;  %v344_v33 = vadd.f32 %v336_v43, %v284_v8 }
  0xeb   : > { %5644 = vst [vmem:[#allocation48_spill] sm:$0xff] %v4318_v63  ;;  %5648 = vst [vmem:[#allocation51_spill] sm:$0xff] %v4333_v21  ;;  %v704_v63 = vmul.f32 %v3101_v10, %v4196_v37  ;;  %v343_v14 = vadd.f32 %v335_v15, %v283_v60  ;;  %v733_v21 = vrot.slane %v699_v0, 1  ;;  %v732_v13 = vrot.slane %v698_v48, 1 }
  0xec   : > { %5645 = vst [vmem:[#allocation49_spill] sm:$0xff] %v4320_v20  ;;  %3660 = vperm.xlu0 %3608, %v3948_v7   ;;  %3302 = vset.pattern.permute.xlu1 %v5646_v11  ;;  %v3017_v20 = vunpack.i.l.bf16 %v4083_v54  ;;  %v388_v5 = vmul.f32 %v3023_v9, %v4199_v26  ;;  %v2073_v45 = vunpack.c.h.bf16 %v4351_v6  ;;  %v2074_v54 = vunpack.c.h.bf16 %v4230_v40 }
  0xed   : > { %v4330_v16 = vpop.permute.xlu0 %3477  ;;  %3304 = vperm.xlu1 %3302, %v3942_v3   ;;  %v705_v3 = vmul.f32 %v3102_v28, %v4196_v37  ;;  %v4364_v28 = vmul.f32 %v3018_v27, %v4199_v26  ;;  %v387_v10 = vmul.f32 %v3022_v42, %v4199_v26  ;;  %v709_v8 = vmul.f32 %v3112_v34, %v4196_v37 }
  0xee   : > { %5647 = vst [vmem:[#allocation50_spill] sm:$0xff] %v4330_v16  ;;  %v4348_v16 = vpop.permute.xlu1 %3114  ;;  %v708_v60 = vmul.f32 %v3111_v22, %v4196_v37  ;;  %v4370_v43 = vmul.f32 %v3017_v20, %v4199_v26  ;;  %v741_v0 = vrot.slane %v704_v63, 1  ;;  %v3028_v48 = vunpack.i.h.bf16 %v4102_v23 }
  0xef   : > { %5651 = vst [vmem:[#allocation54_spill] sm:$0xff] %v4364_v28  ;;  %v742_v15 = vrot.slane %v705_v3, 1  ;;  %v3027_v40 = vunpack.i.l.bf16 %v4102_v23  ;;  %v4378_v27 = vsel %vm728_vm0, %v732_v13, %v733_v21  ;;  %v396_v42 = vadd.f32 %v388_v5, %v344_v33 }
  0xf0   : > { %3665 = vperm.xlu0 %3608, %v3953_v12   ;;  %5652 = vst [vmem:[#allocation55_spill] sm:$0xff] %v4378_v27  ;;  %v3169_v34 = vunpack.i.h.bf16 %v4107_v38  ;;  %v4384_v22 = vpack.i.bf16 %v2074_v54, %v2073_v45  ;;  %v395_v63 = vadd.f32 %v387_v10, %v343_v14  ;;  %v748_v3 = vrot.slane %v709_v8, 1  ;;  %v5665_v27 = vld [vmem:[#allocation18_spill] sm:$0xff] }
  0xf1   : > { %3309 = vperm.xlu1 %3302, %v4227_v4   ;;  %v747_v62 = vrot.slane %v708_v60, 1  ;;  %v3168_v11 = vunpack.i.l.bf16 %v4107_v38  ;;  %v4388_v28 = vmul.f32 %v3028_v48, %v4199_v26  ;;  %v3039_v23 = vunpack.i.h.bf16 %v4110_v41 }
  0xf2   : > { %v4359_v29 = vpop.permute.xlu0 %3483  ;;  %5653 = vst [vmem:[#allocation56_spill] sm:$0xff] %v4384_v22  ;;  %v3038_v21 = vunpack.i.l.bf16 %v4110_v41  ;;  %v4393_v5 = vsel %vm728_vm0, %v741_v0, %v742_v15  ;;  %v4399_v45 = vmul.f32 %v3027_v40, %v4199_v26  ;;  %v3265_v14 = vunpack.i.h.bf16 %v4126_v59 }
  0xf3   : > { %v4373_v9 = vpop.permute.xlu1 %3120  ;;  %v3264_v38 = vunpack.i.l.bf16 %v4126_v59  ;;  %v4404_v33 = vmul.f32 %v3169_v34, %v4205_v53  ;;  %v3044_v13 = vunpack.i.h.bf16 %v4116_v49  ;;  %v3043_v41 = vunpack.i.l.bf16 %v4116_v49 }
  0xf4   : > { %3670 = vperm.xlu0 %3608, %v3958_v19   ;;  %v4412_v10 = vmul.f32 %v3168_v11, %v4205_v53  ;;  %v3185_v8 = vunpack.i.h.bf16 %v4112_v47  ;;  %v3184_v60 = vunpack.i.l.bf16 %v4112_v47  ;;  %v4417_v59 = vsel %vm728_vm0, %v747_v62, %v748_v3 }
  0xf5   : > { %3314 = vperm.xlu1 %3302, %v3948_v7   ;;  %5654 = vst [vmem:[#allocation57_spill] sm:$0xff] %v4404_v33  ;;  %5656 = vst [vmem:[#allocation59_spill] sm:$0xff] %v4417_v59  ;;  %v4420_v15 = vmul.f32 %v3039_v23, %v4193_v31  ;;  %v4423_v0 = vmul.f32 %v3038_v21, %v4193_v31  ;;  %v3222_v49 = vunpack.i.l.bf16 %v4119_v50  ;;  %v3281_v34 = vunpack.i.h.bf16 %v4131_v1 }
  0xf6   : > { %v4382_v20 = vpop.permute.xlu0 %3488  ;;  %5655 = vst [vmem:[#allocation58_spill] sm:$0xff] %v4412_v10  ;;  %v1528_v11 = vmul.f32 %v3265_v14, %v4216_v17  ;;  %v1527_v47 = vmul.f32 %v3264_v38, %v4216_v17  ;;  %v465_v62 = vmul.f32 %v3044_v13, %v4193_v31  ;;  %v464_v40 = vmul.f32 %v3043_v41, %v4193_v31 }
  0xf7   : > { %v4395_v7 = vpop.permute.xlu1 %3125  ;;  %5657 = vst [vmem:[#allocation60_spill] sm:$0xff] %v4420_v15  ;;  %5658 = vst [vmem:[#allocation61_spill] sm:$0xff] %v4423_v0  ;;  %v3280_v3 = vunpack.i.l.bf16 %v4131_v1  ;;  %v4443_v21 = vmul.f32 %v3184_v60, %v4205_v53  ;;  %v3060_v14 = vunpack.i.h.bf16 %v4129_v61  ;;  %v3059_v38 = vunpack.i.l.bf16 %v4129_v61 }
  0xf8   : > { %3675 = vperm.xlu0 %3608, %v3972_v32   ;;  %v4451_v13 = vmul.f32 %v3222_v49, %v4209_v24  ;;  %v3290_v1 = vunpack.i.l.bf16 %v4138_v2  ;;  %v3054_v60 = vunpack.i.l.bf16 %v4124_v51  ;;  %v1559_v61 = vrot.slane %v1527_v47, 1 }
  0xf9   : > { %3319 = vperm.xlu1 %3302, %v3953_v12   ;;  %v3223_v12 = vunpack.i.h.bf16 %v4119_v50  ;;  %v4440_v50 = vmul.f32 %v3185_v8, %v4205_v53  ;;  %5660 = vst [vmem:[#allocation63_spill] sm:$0xff] %v4443_v21  ;;  %v3055_v8 = vunpack.i.h.bf16 %v4124_v51  ;;  %v472_v21 = vadd.f32 %v464_v40, %v395_v63 }
  0xfa   : > { %v4409_v54 = vpop.permute.xlu0 %3493  ;;  %5662 = vst [vmem:[#allocation65_spill] sm:$0xff] %v4451_v13  ;;  %v1534_v10 = vmul.f32 %v3281_v34, %v4216_v17  ;;  %v1533_v49 = vmul.f32 %v3280_v3, %v4216_v17  ;;  %v5663_v33 = vmov 2   ;;  %v3065_v15 = vunpack.i.h.bf16 %v5665_v27 }
  0xfb   : > { %v4427_v48 = vpop.permute.xlu1 %3130  ;;  %5659 = vst [vmem:[#allocation62_spill] sm:$0xff] %v4440_v50  ;;  %v4448_v31 = vmul.f32 %v3223_v12, %v4209_v24  ;;  %v1560_v50 = vrot.slane %v1528_v11, 1  ;;  %v473_v12 = vadd.f32 %v465_v62, %v396_v42  ;;  %v3064_v51 = vunpack.i.l.bf16 %v5665_v27  ;;  %v5666_v11 = vld [vmem:[#allocation20_spill] sm:$0xff]  ;;  %v5667_v62 = vld [vmem:[#allocation7_spill] sm:$0xff] }
  0xfc   : > { %3680 = vperm.xlu0 %3608, %v3981_v44   ;;  %v1537_v63 = vmul.f32 %v3290_v1, %v4216_v17  ;;  %v3301_v47 = vunpack.i.h.bf16 %v5666_v11  ;;  %v3300_v27 = vunpack.i.l.bf16 %v5666_v11 }
  0xfd   : > { %3324 = vperm.xlu1 %3302, %v3958_v19   ;;  %5661 = vst [vmem:[#allocation64_spill] sm:$0xff] %v4448_v31  ;;  %v3291_v19 = vunpack.i.h.bf16 %v4138_v2  ;;  %v5664_v2 = vld [vmem:[#allocation30_spill] sm:$0xff]  ;;  %v4481_v3 = vsel %vm728_vm0, %v1559_v61, %v1560_v50 }
  0xfe   : > { %v4437_v23 = vpop.permute.xlu0 %3498  ;;  %v517_v13 = vmul.f32 %v3060_v14, %v5664_v2  ;;  %v516_v59 = vmul.f32 %v3059_v38, %v5664_v2  ;;  %v4475_v40 = vmul.f32 %v3055_v8, %v5664_v2  ;;  %v4478_v34 = vmul.f32 %v3054_v60, %v5664_v2  ;;  %5668 = vst [vmem:[#allocation30_spill] sm:$0xff] %v4481_v3 }
  0xff   : > { %v4455_v41 = vpop.permute.xlu1 %3135  ;;  %v1538_v42 = vmul.f32 %v3291_v19, %v4216_v17  ;;  %v1569_v14 = vrot.slane %v1534_v10, 1  ;;  %v1568_v38 = vrot.slane %v1533_v49, 1  ;;  %v5669_v19 = vld [vmem:[#allocation23_spill] sm:$0xff]  ;;  %v4490_v8 = vmul.f32 %v3065_v15, %v5664_v2  ;;  %v5671_v49 = vld [vmem:[#allocation8_spill] sm:$0xff] }
 0x100   : > { %3685 = vperm.xlu0 %3608, %v3987_v55   ;;  %v3071_v1 = vunpack.i.h.bf16 %v5669_v19  ;;  %v525_v55 = vadd.f32 %v517_v13, %v473_v12  ;;  %v4493_v60 = vmul.f32 %v3064_v51, %v5664_v2  ;;  %v1574_v61 = vrot.slane %v1537_v63, 1  ;;  %v5674_v51 = vld [vmem:[#allocation32_spill] sm:$0xff] }
 0x101   : > { %3328 = vset.pattern.permute.xlu1 %v5663_v33  ;;  %v1575_v50 = vrot.slane %v1538_v42, 1  ;;  %v3070_v11 = vunpack.i.l.bf16 %v5669_v19  ;;  %v4498_v10 = vmul.f32 %v3301_v47, %v4216_v17  ;;  %v3082_v42 = vunpack.i.h.bf16 %v4238_v57 }
 0x102   : > { %v4463_v31 = vpop.permute.xlu0 %3503  ;;  %3330 = vperm.xlu1 %3328, %v4029_v25   ;;  %v4516_v47 = vrot.slane %v4176_v36, %v4170_v35  ;;  %v3081_v19 = vunpack.i.l.bf16 %v4238_v57  ;;  %v3091_v3 = vunpack.i.l.bf16 %v4256_v56 }
 0x103   : > { %5670 = vst [vmem:[#allocation18_spill] sm:$0xff] %v4498_v10  ;;  %v697_v36 = vmul.f32 %v3082_v42, %v4196_v37  ;;  %v3096_v10 = vunpack.i.l.bf16 %v4288_v18  ;;  %v3485_v42 = vunpack.i.l.bf16 %v4359_v29 }
 0x104   : > { %3696 = vperm.xlu0 %3608, %v5667_v62   ;;  %v4484_v25 = vpop.permute.xlu1 %3141  ;;  %v524_v62 = vadd.f32 %v516_v59, %v472_v21  ;;  %v4502_v59 = vmul.f32 %v3300_v27, %v4216_v17  ;;  %v5673_v21 = vld [vmem:[#allocation28_spill] sm:$0xff]  ;;  %v4519_v27 = vsel %vm728_vm0, %v1568_v38, %v1569_v14  ;;  %v3106_v17 = vunpack.i.l.bf16 %v4316_v52  ;;  %v5679_v14 = vld [vmem:[#allocation9_spill] sm:$0xff] }
 0x105   : > { %v3076_v15 = vunpack.i.h.bf16 %v5673_v21  ;;  %v3075_v13 = vunpack.i.l.bf16 %v5673_v21  ;;  %5676 = vst [vmem:[#allocation28_spill] sm:$0xff] %v4516_v47  ;;  %5677 = vst [vmem:[#allocation66_spill] sm:$0xff] %v4519_v27  ;;  %v3092_v21 = vunpack.i.h.bf16 %v4256_v56  ;;  %v4533_v38 = vsel %vm728_vm0, %v1574_v61, %v1575_v50 }
 0x106   : > { %v4487_v0 = vpop.permute.xlu0 %3508  ;;  %3335 = vperm.xlu1 %3328, %v4227_v4   ;;  %5672 = vst [vmem:[#allocation20_spill] sm:$0xff] %v4502_v59  ;;  %v4509_v4 = vmul.f32 %v3071_v1, %v5674_v51  ;;  %v3107_v1 = vunpack.i.h.bf16 %v4316_v52  ;;  %5680 = vst [vmem:[#allocation68_spill] sm:$0xff] %v4533_v38  ;;  %v3097_v52 = vunpack.i.h.bf16 %v4288_v18  ;;  %v696_v50 = vmul.f32 %v3081_v19, %v4196_v37 }
 0x107   : > { %v569_v56 = vmul.f32 %v3076_v15, %v5674_v51  ;;  %v568_v27 = vmul.f32 %v3075_v13, %v5674_v51  ;;  %v701_v61 = vmul.f32 %v3092_v21, %v4196_v37  ;;  %v700_v15 = vmul.f32 %v3091_v3, %v4196_v37 }
 0x108   : > { %3711 = vperm.xlu0 %3608, %v5671_v49   ;;  %v4506_v12 = vpop.permute.xlu1 %3146  ;;  %5675 = vst [vmem:[#allocation23_spill] sm:$0xff] %v4509_v4  ;;  %v4527_v49 = vmul.f32 %v3070_v11, %v5674_v51  ;;  %v2916_v11 = vld [vmem:[%s3879_s5 + $0x1c] sm:$0x1]  ;;  %v707_v13 = vmul.f32 %v3107_v1, %v4196_v37  ;;  %v706_v57 = vmul.f32 %v3106_v17, %v4196_v37  ;;  %v2261_v47 = vunpack.c.l.bf16 %v4351_v6  ;;  %s3736_s5 = scalar_lea.vmem %s3735_s30, 1024 }
 0x109   : > { %v2262_v59 = vunpack.c.l.bf16 %v2916_v11  ;;  %v576_v18 = vadd.f32 %v568_v27, %v524_v62  ;;  %v577_v38 = vadd.f32 %v569_v56, %v525_v55  ;;  %v3116_v19 = vunpack.i.l.bf16 %v4348_v16  ;;  %p3738_p1 = scmp.lt.s32.totalorder %s3736_s5, %s3730_s19 }
 0x10a   : > { %v4512_v63 = vpop.permute.xlu0 %3513  ;;  %3340 = vperm.xlu1 %3328, %v4035_v58   ;;  %5678 = vst [vmem:[#allocation67_spill] sm:$0xff] %v4527_v49  ;;  %v5682_v58 = vld [vmem:[#allocation10_spill] sm:$0xff]  ;;  %v3117_v49 = vunpack.i.h.bf16 %v4348_v16  ;;  %v730_v3 = vrot.slane %v697_v36, 1  ;;  %v703_v1 = vmul.f32 %v3097_v52, %v4196_v37  ;;  %v3486_v17 = vunpack.i.h.bf16 %v4359_v29  ;;  %v5684_v52 = vld [vmem:[#allocation11_spill] sm:$0xff] }
 0x10b   : > { %v729_v26 = vrot.slane %v696_v50, 1  ;;  %v736_v6 = vrot.slane %v701_v61, 1  ;;  %v735_v11 = vrot.slane %v700_v15, 1  ;;  %v745_v62 = vrot.slane %v707_v13, 1  ;;  %p3739_p2 = por %p3738_p1, %p3737_p0 }
 0x10c   : > { %3721 = vperm.xlu0 %3608, %v5679_v14   ;;  %v4539_v4 = vpop.permute.xlu1 %3151  ;;  %v5683_v55 = vmov 0   ;;  %v744_v27 = vrot.slane %v706_v57, 1  ;;  %v331_v16 = vmul.f32 %v3485_v42, %v4190_v39  ;;  %v3123_v56 = vunpack.i.h.bf16 %v4373_v9 }
 0x10d   : > { %v3122_v36 = vunpack.i.l.bf16 %v4373_v9  ;;  %v710_v29 = vmul.f32 %v3116_v19, %v4196_v37  ;;  %v3491_v50 = vunpack.i.h.bf16 %v4382_v20  ;;  %v3490_v61 = vunpack.i.l.bf16 %v4382_v20  ;;  %v5686_v19 = vld [vmem:[#allocation44_spill] sm:$0xff]  ;;  %p3740_p3 = pnand %p3739_p2, %p3733_p13 }
 0x10e   : > { %v4545_v14 = vpop.permute.xlu0 %3518  ;;  %3345 = vperm.xlu1 %3328, %v5682_v58   ;;  %v702_v58 = vmul.f32 %v3096_v10, %v4196_v37  ;;  %v711_v10 = vmul.f32 %v3117_v49, %v4196_v37  ;;  %v739_v13 = vrot.slane %v703_v1, 1  ;;  %v332_v42 = vmul.f32 %v3486_v17, %v4190_v39 }
 0x10f   : > { %v4578_v24 = vpack.i.bf16 %v2262_v59, %v2261_v47  ;;  %v4581_v9 = vadd.f32 %v4393_v5, %v576_v18  ;;  %v4584_v49 = vsel %vm728_vm0, %v735_v11, %v736_v6  ;;  %v4587_v37 = vsel %vm728_vm0, %v729_v26, %v730_v3  ;;  %v5689_v26 = vld [vmem:[#allocation43_spill] sm:$0xff] }
 0x110   : > { %v4557_v21 = vpop.permute.xlu1 %3156  ;;  %v738_v57 = vrot.slane %v702_v58, 1  ;;  %v746_v20 = vsel %vm728_vm0, %v744_v27, %v745_v62  ;;  %v339_v1 = vadd.f32 %v331_v16, %v5686_v19  ;;  %v5687_v58 = vld [vmem:[#allocation35_spill] sm:$0xff]  ;;  %v751_v59 = vrot.slane %v711_v10, 1 }
 0x111   : > { %v840_v22 = vmul.f32 %v3123_v56, %v5687_v58  ;;  %v839_v17 = vmul.f32 %v3122_v36, %v5687_v58  ;;  %v750_v47 = vrot.slane %v710_v29, 1  ;;  %v338_v5 = vmul.f32 %v3491_v50, %v4190_v39 }
 0x112   : > { %v4562_v51 = vpop.permute.xlu0 %3523  ;;  %3349 = vset.pattern.permute.xlu1 %v5683_v55  ;;  %v337_v18 = vmul.f32 %v3490_v61, %v4190_v39  ;;  %v4597_v6 = vsel %vm728_vm0, %v738_v57, %v739_v13  ;;  %v340_v3 = vadd.f32 %v332_v42, %v5689_v26  ;;  %v3128_v11 = vunpack.i.h.bf16 %v4395_v7  ;;  %v5690_v61 = vld [vmem:[#allocation12_spill] sm:$0xff]  ;;  %v5691_v42 = vld [vmem:[#allocation54_spill] sm:$0xff] }
 0x113   : > { %3351 = vperm.xlu1 %3349, %v5684_v52   ;;  %v3127_v62 = vunpack.i.l.bf16 %v4395_v7  ;;  %v3133_v56 = vunpack.i.h.bf16 %v4427_v48  ;;  %v3132_v36 = vunpack.i.l.bf16 %v4427_v48  ;;  %v4608_v10 = vadd.f32 %v746_v20, %v577_v38 }
 0x114   : > { %v4573_v15 = vpop.permute.xlu1 %3161  ;;  %v391_v39 = vadd.f32 %v4370_v43, %v339_v1  ;;  %v873_v29 = vrot.slane %v840_v22, 1  ;;  %v872_v50 = vrot.slane %v839_v17, 1  ;;  %v346_v13 = vadd.f32 %v338_v5, %v4303_v46  ;;  %v5694_v5 = vld [vmem:[#allocation47_spill] sm:$0xff] }
 0x115   : > { %v345_v7 = vadd.f32 %v337_v18, %v4306_v30  ;;  %v4615_v57 = vsel %vm728_vm0, %v750_v47, %v751_v59  ;;  %v392_v19 = vadd.f32 %v5691_v42, %v340_v3  ;;  %v842_v26 = vmul.f32 %v3128_v11, %v5687_v58 }
 0x116   : > { %v4576_v44 = vpop.permute.xlu0 %3528  ;;  %v841_v48 = vmul.f32 %v3127_v62, %v5687_v58  ;;  %v3496_v38 = vunpack.i.h.bf16 %v4409_v54  ;;  %v846_v20 = vmul.f32 %v3133_v56, %v5687_v58  ;;  %v845_v46 = vmul.f32 %v3132_v36, %v5687_v58 }
 0x117   : > { %5685 = vst [vmem:[#allocation10_spill] sm:$0xff] %v4576_v44  ;;  %v5688_v44 = vld [vmem:[#allocation40_spill] sm:$0xff]  ;;  %v3501_v30 = vunpack.i.h.bf16 %v4437_v23  ;;  %v3500_v1 = vunpack.i.l.bf16 %v4437_v23  ;;  %v4630_v17 = vsel %vm728_vm0, %v872_v50, %v873_v29  ;;  %v3495_v59 = vunpack.i.l.bf16 %v4409_v54  ;;  %v5696_v50 = vld [vmem:[#allocation46_spill] sm:$0xff] }
 0x118   : > { %3361 = vperm.xlu1 %3349, %v5688_v44   ;;  %v5693_v47 = vmov 1   ;;  %v468_v18 = vadd.f32 %v5694_v5, %v391_v39  ;;  %v398_v3 = vadd.f32 %v4388_v28, %v346_v13  ;;  %v397_v11 = vadd.f32 %v4399_v45, %v345_v7 }
 0x119   : > { %v4602_v27 = vpop.permute.xlu1 %3172  ;;  %v3138_v62 = vunpack.i.h.bf16 %v4455_v41  ;;  %v3137_v56 = vunpack.i.l.bf16 %v4455_v41  ;;  %v876_v23 = vrot.slane %v842_v26, 1  ;;  %v875_v36 = vrot.slane %v841_v48, 1 }
 0x11a   : > { %v4604_v16 = vpop.permute.xlu0 %3533  ;;  %v4641_v29 = vmul.f32 %v3496_v38, %v5664_v2  ;;  %v469_v42 = vadd.f32 %v5696_v50, %v392_v19  ;;  %v882_v39 = vrot.slane %v846_v20, 1  ;;  %v881_v5 = vrot.slane %v845_v46, 1  ;;  %v5697_v20 = vld [vmem:[#allocation52_spill] sm:$0xff] }
 0x11b   : > { %v838_v28 = vmul.f32 %v3501_v30, %v5687_v58  ;;  %v837_v45 = vmul.f32 %v3500_v1, %v5687_v58  ;;  %v3506_v41 = vunpack.i.h.bf16 %v4463_v31  ;;  %v3511_v7 = vunpack.i.h.bf16 %v4487_v0 }
 0x11c   : > { %3366 = vperm.xlu1 %3349, %v5690_v61   ;;  %v3510_v26 = vunpack.i.l.bf16 %v4487_v0  ;;  %v4655_v48 = vmul.f32 %v3495_v59, %v5664_v2  ;;  %v850_v19 = vmul.f32 %v3138_v62, %v5687_v58  ;;  %v849_v38 = vmul.f32 %v3137_v56, %v5687_v58 }
 0x11d   : > { %v4621_v43 = vpop.permute.xlu1 %3177  ;;  %v474_v46 = vadd.f32 %v5697_v20, %v397_v11  ;;  %v4662_v30 = vsel %vm728_vm0, %v875_v36, %v876_v23  ;;  %v3143_v1 = vunpack.i.l.bf16 %v4484_v25  ;;  %v4669_v0 = vadd.f32 %v4478_v34, %v468_v18  ;;  %v5699_v18 = vld [vmem:[#allocation51_spill] sm:$0xff] }
 0x11e   : > { %v4623_v22 = vpop.permute.xlu0 %3538  ;;  %v883_v2 = vsel %vm728_vm0, %v881_v5, %v882_v39  ;;  %v870_v59 = vrot.slane %v838_v28, 1  ;;  %v869_v62 = vrot.slane %v837_v45, 1  ;;  %v4675_v11 = vadd.f32 %v4475_v40, %v469_v42  ;;  %v5700_v28 = vld [vmem:[#allocation37_spill] sm:$0xff] }
 0x11f   : > { %5692 = vst [vmem:[#allocation11_spill] sm:$0xff] %v4623_v22  ;;  %v844_v23 = vmul.f32 %v3506_v41, %v5687_v58  ;;  %v847_v20 = vmul.f32 %v3510_v26, %v5687_v58  ;;  %v887_v34 = vrot.slane %v849_v38, 1  ;;  %v475_v39 = vadd.f32 %v5699_v18, %v398_v3 }
 0x120   : > { %3370 = vset.pattern.permute.xlu1 %v5693_v47  ;;  %v4684_v5 = vadd.f32 %v4493_v60, %v474_v46  ;;  %v977_v42 = vmul.f32 %v3143_v1, %v5700_v28  ;;  %v3149_v45 = vunpack.i.h.bf16 %v4506_v12  ;;  %v3148_v41 = vunpack.i.l.bf16 %v4506_v12 }
 0x121   : > { %3372 = vperm.xlu1 %3370, %v3972_v32   ;;  %v3505_v32 = vunpack.i.l.bf16 %v4463_v31  ;;  %v3144_v31 = vunpack.i.h.bf16 %v4484_v25  ;;  %v848_v25 = vmul.f32 %v3511_v7, %v5687_v58  ;;  %v4694_v7 = vadd.f32 %v883_v2, %v4581_v9 }
 0x122   : > { %v4643_v54 = vpop.permute.xlu0 %3543  ;;  %v4648_v13 = vpop.permute.xlu1 %3188  ;;  %v4697_v3 = vsel %vm728_vm0, %v869_v62, %v870_v59  ;;  %v3159_v60 = vunpack.i.h.bf16 %v4557_v21  ;;  %v3158_v26 = vunpack.i.l.bf16 %v4557_v21  ;;  %v879_v38 = vrot.slane %v844_v23, 1 }
 0x123   : > { %5695 = vst [vmem:[#allocation44_spill] sm:$0xff] %v4643_v54  ;;  %v843_v36 = vmul.f32 %v3505_v32, %v5687_v58  ;;  %v978_v40 = vmul.f32 %v3144_v31, %v5700_v28  ;;  %v885_v31 = vrot.slane %v848_v25, 1  ;;  %v884_v12 = vrot.slane %v847_v20, 1 }
 0x124   : > { %v3516_v1 = vunpack.i.h.bf16 %v4512_v63  ;;  %v3515_v9 = vunpack.i.l.bf16 %v4512_v63  ;;  %v4709_v2 = vadd.f32 %v4490_v8, %v475_v39  ;;  %v1009_v62 = vrot.slane %v977_v42, 1  ;;  %v5703_v39 = vld [vmem:[#allocation24_spill] sm:$0xff] }
 0x125   : > { %3377 = vperm.xlu1 %3370, %v5688_v44   ;;  %v878_v46 = vrot.slane %v843_v36, 1  ;;  %v1010_v59 = vrot.slane %v978_v40, 1  ;;  %v982_v21 = vmul.f32 %v3149_v45, %v5700_v28  ;;  %v981_v18 = vmul.f32 %v3148_v41, %v5700_v28 }
 0x126   : > { %v4666_v50 = vpop.permute.xlu0 %3548  ;;  %v4672_v56 = vpop.permute.xlu1 %3193  ;;  %v3153_v36 = vunpack.i.l.bf16 %v4539_v4  ;;  %v988_v25 = vmul.f32 %v3159_v60, %v5700_v28  ;;  %v987_v63 = vmul.f32 %v3158_v26, %v5700_v28  ;;  %v886_v20 = vsel %vm728_vm0, %v884_v12, %v885_v31 }
 0x127   : > { %5698 = vst [vmem:[#allocation35_spill] sm:$0xff] %v4666_v50  ;;  %v888_v50 = vrot.slane %v850_v19, 1  ;;  %v4721_v8 = vsel %vm728_vm0, %v878_v46, %v879_v38  ;;  %v852_v40 = vmul.f32 %v3516_v1, %v5687_v58  ;;  %v851_v42 = vmul.f32 %v3515_v9, %v5687_v58 }
 0x128   : > { %v3163_v45 = vunpack.i.l.bf16 %v4573_v15  ;;  %v4735_v41 = vsel %vm728_vm0, %v1009_v62, %v1010_v59  ;;  %v1016_v60 = vrot.slane %v982_v21, 1  ;;  %v1015_v26 = vrot.slane %v981_v18, 1 }
 0x129   : > { %3381 = vset.pattern.permute.xlu1 %v5663_v33  ;;  %v3521_v38 = vunpack.i.h.bf16 %v4545_v14  ;;  %v983_v12 = vmul.f32 %v3153_v36, %v5700_v28  ;;  %v1025_v58 = vrot.slane %v988_v25, 1  ;;  %v1024_v1 = vrot.slane %v987_v63, 1 }
 0x12a   : > { %3383 = vperm.xlu1 %3381, %v5684_v52   ;;  %v4691_v32 = vpop.permute.xlu0 %3553  ;;  %v4701_v19 = vpop.permute.xlu1 %3198  ;;  %v4704_v52 = vsel %vm728_vm0, %v887_v34, %v888_v50  ;;  %v3154_v50 = vunpack.i.h.bf16 %v4539_v4  ;;  %v3164_v4 = vunpack.i.h.bf16 %v4573_v15  ;;  %v906_v9 = vadd.f32 %v886_v20, %v4608_v10  ;;  %v5707_v20 = vld [vmem:[#allocation38_spill] sm:$0xff] }
 0x12b   : > { %5701 = vst [vmem:[#allocation40_spill] sm:$0xff] %v4691_v32  ;;  %v3180_v15 = vunpack.i.h.bf16 %v4621_v43  ;;  %v891_v62 = vrot.slane %v852_v40, 1  ;;  %v890_v21 = vrot.slane %v851_v42, 1  ;;  %v3196_v36 = vunpack.i.h.bf16 %v4672_v56 }
 0x12c   : > { %v984_v31 = vmul.f32 %v3154_v50, %v5700_v28  ;;  %v992_v18 = vmul.f32 %v3164_v4, %v5700_v28  ;;  %v3520_v50 = vunpack.i.l.bf16 %v4545_v14  ;;  %v1018_v63 = vrot.slane %v983_v12, 1  ;;  %v5708_v4 = vld [vmem:[#allocation13_spill] sm:$0xff] }
 0x12d   : > { %v4758_v40 = vmul.f32 %v3521_v38, %v5707_v20  ;;  %v1026_v42 = vsel %vm728_vm0, %v1024_v1, %v1025_v58  ;;  %v1115_v14 = vmul.f32 %v3180_v15, %v4205_v53  ;;  %v4771_v58 = vsel %vm728_vm0, %v890_v21, %v891_v62  ;;  %v5712_v62 = vld [vmem:[#allocation39_spill] sm:$0xff] }
 0x12e   : > { %3388 = vperm.xlu1 %3381, %v5688_v44   ;;  %v4714_v23 = vpop.permute.xlu0 %3558  ;;  %v4728_v44 = vrot.slane %v5703_v39, %v4170_v35  ;;  %v4750_v39 = vsel %vm728_vm0, %v1015_v26, %v1016_v60  ;;  %v1019_v25 = vrot.slane %v984_v31, 1  ;;  %v3525_v60 = vunpack.i.l.bf16 %v4562_v51 }
 0x12f   : > { %5702 = vst [vmem:[#allocation43_spill] sm:$0xff] %v4714_v23  ;;  %v4724_v34 = vpop.permute.xlu1 %3204  ;;  %v3175_v1 = vunpack.i.h.bf16 %v4602_v27  ;;  %v1046_v35 = vadd.f32 %v1026_v42, %v906_v9  ;;  %v5715_v42 = vld [vmem:[#allocation53_spill] sm:$0xff] }
 0x130   : > { %5704 = vst [vmem:[#allocation12_spill] sm:$0xff] %v4728_v44  ;;  %v4778_v15 = vsel %vm728_vm0, %v1018_v63, %v1019_v25  ;;  %v5711_v44 = vld [vmem:[#allocation56_spill] sm:$0xff]  ;;  %v4790_v9 = vmul.f32 %v3525_v60, %v5712_v62  ;;  %v3535_v63 = vunpack.i.l.bf16 %v4604_v16  ;;  %v3179_v60 = vunpack.i.l.bf16 %v4621_v43 }
 0x131   : > { %v3201_v43 = vunpack.i.h.bf16 %v4701_v19 }
 0x132   : > { %3393 = vperm.xlu1 %3381, %v5690_v61   ;;  %v4739_v46 = vpop.permute.xlu0 %3568  ;;  %v991_v61 = vmul.f32 %v3163_v45, %v5700_v28  ;;  %v3526_v45 = vunpack.i.h.bf16 %v4562_v51  ;;  %v1167_v51 = vmul.f32 %v3196_v36, %v5707_v20  ;;  %5714 = vst [vmem:[#allocation51_spill] sm:$0xff] %v4790_v9  ;;  %v1123_v36 = vadd.f32 %v1115_v14, %v1046_v35  ;;  %v5729_v9 = vld [vmem:[#allocation48_spill] sm:$0xff] }
 0x133   : > { %5705 = vst [vmem:[#allocation54_spill] sm:$0xff] %v4739_v46  ;;  %v4745_v59 = vpop.permute.xlu1 %3209  ;;  %v1031_v46 = vrot.slane %v992_v18, 1  ;;  %v4781_v18 = vmul.f32 %v3520_v50, %v5707_v20 }
 0x134   : > { %v3212_v26 = vunpack.i.h.bf16 %v4745_v59  ;;  %v1030_v23 = vrot.slane %v991_v61, 1  ;;  %v3174_v61 = vunpack.i.l.bf16 %v4602_v27  ;;  %v4787_v21 = vmul.f32 %v3526_v45, %v5712_v62 }
 0x135   : > { %v4804_v45 = vmul.f32 %v3175_v1, %v4205_v53  ;;  %v1175_v35 = vadd.f32 %v1167_v51, %v1123_v36  ;;  %v3195_v1 = vunpack.i.l.bf16 %v4672_v56  ;;  %v5722_v36 = vld [vmem:[#allocation29_spill] sm:$0xff]  ;;  %v3207_v56 = vunpack.i.h.bf16 %v4724_v34 }
 0x136   : > { %3402 = vset.pattern.permute.xlu1 %v5683_v55  ;;  %v4755_v10 = vpop.permute.xlu0 %3584  ;;  %5713 = vst [vmem:[#allocation52_spill] sm:$0xff] %v4787_v21  ;;  %v4794_v25 = vsel %vm728_vm0, %v1030_v23, %v1031_v46  ;;  %v4810_v23 = vmul.f32 %v3174_v61, %v4205_v53  ;;  %v5720_v46 = vld [vmem:[#allocation42_spill] sm:$0xff] }
 0x137   : > { %5706 = vst [vmem:[#allocation47_spill] sm:$0xff] %v4755_v10  ;;  %3404 = vperm.xlu1 %3402, %v5708_v4   ;;  %v5709_v10 = vld [vmem:[#allocation10_spill] sm:$0xff]  ;;  %5716 = vst [vmem:[#allocation37_spill] sm:$0xff] %v4794_v25  ;;  %v4823_v61 = vmul.f32 %v3535_v63, %v5720_v46 }
 0x138   : > { %v3531_v31 = vunpack.i.h.bf16 %v5709_v10  ;;  %v3530_v12 = vunpack.i.l.bf16 %v5709_v10  ;;  %v4768_v38 = vpop.permute.xlu1 %3215  ;;  %v3536_v10 = vunpack.i.h.bf16 %v4604_v16  ;;  %v3190_v16 = vunpack.i.l.bf16 %v4648_v13  ;;  %v5731_v25 = vld [vmem:[#allocation6_spill] sm:$0xff] }
 0x139   : > { %5724 = vst [vmem:[#allocation56_spill] sm:$0xff] %v4823_v61  ;;  %v5727_v61 = vld [vmem:[#allocation27_spill] sm:$0xff] }
 0x13a   : > { %v4775_v32 = vpop.permute.xlu0 %3594  ;;  %v4797_v50 = vmul.f32 %v3531_v31, %v5712_v62  ;;  %v4800_v27 = vmul.f32 %v3530_v12, %v5712_v62  ;;  %v4813_v31 = vmul.f32 %v3536_v10, %v5720_v46  ;;  %v3191_v12 = vunpack.i.h.bf16 %v4648_v13 }
 0x13b   : > { %5710 = vst [vmem:[#allocation46_spill] sm:$0xff] %v4775_v32  ;;  %3409 = vperm.xlu1 %3402, %v5711_v44   ;;  %v1219_v32 = vmul.f32 %v3212_v26, %v5715_v42  ;;  %v3200_v13 = vunpack.i.l.bf16 %v4701_v19  ;;  %v4837_v63 = vmul.f32 %v3190_v16, %v5707_v20  ;;  %v4842_v10 = vmul.f32 %v3195_v1, %v5707_v20 }
 0x13c   : > { %5717 = vst [vmem:[#allocation24_spill] sm:$0xff] %v4797_v50  ;;  %5718 = vst [vmem:[#allocation38_spill] sm:$0xff] %v4800_v27  ;;  %v3226_v54 = vpop.permute.xlu1 %3225 }
 0x13d   : > { %v3228_v14 = vunpack.i.h.bf16 %v3226_v54  ;;  %5721 = vst [vmem:[#allocation10_spill] sm:$0xff] %v4813_v31  ;;  %v1227_v51 = vadd.f32 %v1219_v32, %v1175_v35  ;;  %v3206_v32 = vunpack.i.l.bf16 %v4724_v34  ;;  %v3218_v31 = vunpack.i.h.bf16 %v4768_v38 }
 0x13e   : > { %v4807_v26 = vpop.permute.xlu0 %3604  ;;  %v3227_v16 = vunpack.i.l.bf16 %v3226_v54 }
 0x13f   : > { %5719 = vst [vmem:[#allocation13_spill] sm:$0xff] %v4807_v26  ;;  %3418 = vset.pattern.permute.xlu1 %v5693_v47  ;;  %v1296_v50 = vmul.f32 %v3228_v14, %v5722_v36  ;;  %v5723_v26 = vld [vmem:[#allocation5_spill] sm:$0xff]  ;;  %v4829_v47 = vmul.f32 %v3179_v60, %v4205_v53  ;;  %v4834_v14 = vmul.f32 %v3191_v12, %v5707_v20  ;;  %v3217_v12 = vunpack.i.l.bf16 %v4768_v38 }
 0x140   : > { %3420 = vperm.xlu1 %3418, %v5723_v26   ;;  %v3231_v27 = vpop.permute.xlu1 %3230  ;;  %v3211_v26 = vunpack.i.l.bf16 %v4745_v59  ;;  %v4845_v53 = vmul.f32 %v3201_v43, %v5707_v20  ;;  %v4856_v1 = vmul.f32 %v3206_v32, %v5715_v42 }
 0x141   : > { %v1304_v35 = vadd.f32 %v1296_v50, %v1227_v51  ;;  %v4849_v50 = vmul.f32 %v3200_v13, %v5707_v20  ;;  %v3233_v59 = vunpack.i.h.bf16 %v3231_v27  ;;  %v4853_v51 = vmul.f32 %v3207_v56, %v5715_v42 }
 0x142   : > { %5725 = vst [vmem:[#allocation39_spill] sm:$0xff] %v4845_v53  ;;  %v4861_v46 = vmul.f32 %v3211_v26, %v5715_v42  ;;  %v4864_v20 = vmul.f32 %v3218_v31, %v5722_v36  ;;  %v3232_v38 = vunpack.i.l.bf16 %v3231_v27  ;;  %v5730_v53 = vld [vmem:[#allocation49_spill] sm:$0xff]  ;;  %v4873_v26 = vmul.f32 %v3227_v16, %v5722_v36 }
 0x143   : > { %v3611_v19 = vpop.permute.xlu0 %3610  ;;  %5726 = vst [vmem:[#allocation53_spill] sm:$0xff] %v4849_v50  ;;  %v4876_v31 = vmul.f32 %v3233_v59, %v5722_v36 }
 0x144   : > { %v3613_v60 = vunpack.i.h.bf16 %v3611_v19  ;;  %v3612_v34 = vunpack.i.l.bf16 %v3611_v19  ;;  %3425 = vperm.xlu1 %3418, %v5711_v44   ;;  %5728 = vst [vmem:[#allocation29_spill] sm:$0xff] %v4864_v20  ;;  %5732 = vst [vmem:[#allocation5_spill] sm:$0xff] %v4873_v26  ;;  %v5734_v20 = vld [vmem:[#allocation60_spill] sm:$0xff] }
 0x145   : > { %v3237_v19 = vpop.permute.xlu1 %3236 }
 0x146   : > { %v386_v43 = vmul.f32 %v3613_v60, %v5727_v61  ;;  %v385_v22 = vmul.f32 %v3612_v34, %v5727_v61  ;;  %v3239_v54 = vunpack.i.h.bf16 %v3237_v19  ;;  %v4870_v61 = vmul.f32 %v3217_v12, %v5722_v36  ;;  %v5733_v60 = vld [vmem:[#allocation61_spill] sm:$0xff] }
 0x147   : > { %v3616_v13 = vpop.permute.xlu0 %3615  ;;  %v3238_v27 = vunpack.i.l.bf16 %v3237_v19 }
 0x148   : > { %v393_v56 = vadd.f32 %v385_v22, %v5729_v9  ;;  %v394_v50 = vadd.f32 %v386_v43, %v5730_v53  ;;  %v3618_v32 = vunpack.i.h.bf16 %v3616_v13  ;;  %v3617_v21 = vunpack.i.l.bf16 %v3616_v13  ;;  %3430 = vperm.xlu1 %3418, %v5731_v25   ;;  %v5735_v9 = vld [vmem:[#allocation32_spill] sm:$0xff] }
 0x149   : > { %v3242_v13 = vpop.permute.xlu1 %3241  ;;  %v4883_v25 = vmul.f32 %v3232_v38, %v5722_v36  ;;  %v4886_v12 = vmul.f32 %v3239_v54, %v5712_v62 }
 0x14a   : > { %v470_v34 = vadd.f32 %v5733_v60, %v393_v56  ;;  %v471_v22 = vadd.f32 %v5734_v20, %v394_v50  ;;  %v565_v53 = vmul.f32 %v3618_v32, %v5735_v9  ;;  %v564_v43 = vmul.f32 %v3617_v21, %v5735_v9  ;;  %v5736_v32 = vld [vmem:[#allocation67_spill] sm:$0xff] }
 0x14b   : > { %v3244_v16 = vunpack.i.h.bf16 %v3242_v13  ;;  %v3243_v26 = vunpack.i.l.bf16 %v3242_v13  ;;  %v3621_v59 = vpop.permute.xlu0 %3620  ;;  %v4894_v21 = vmul.f32 %v3238_v27, %v5712_v62 }
 0x14c   : > { %v522_v19 = vadd.f32 %v4655_v48, %v470_v34  ;;  %v523_v56 = vadd.f32 %v4641_v29, %v471_v22  ;;  %v572_v50 = vadd.f32 %v564_v43, %v4669_v0  ;;  %v573_v20 = vadd.f32 %v565_v53, %v4675_v11  ;;  %3434 = vset.pattern.permute.xlu1 %v5663_v33  ;;  %v5737_v48 = vld [vmem:[#allocation23_spill] sm:$0xff] }
 0x14d   : > { %v1348_v36 = vmul.f32 %v3244_v16, %v5712_v62  ;;  %v3623_v38 = vunpack.i.h.bf16 %v3621_v59  ;;  %v3622_v54 = vunpack.i.l.bf16 %v3621_v59  ;;  %3436 = vperm.xlu1 %3434, %v5708_v4   ;;  %v5738_v0 = vld [vmem:[#allocation55_spill] sm:$0xff]  ;;  %v4903_v11 = vmul.f32 %v3243_v26, %v5712_v62 }
 0x14e   : > { %v574_v60 = vadd.f32 %v5736_v32, %v522_v19  ;;  %v575_v34 = vadd.f32 %v5737_v48, %v523_v56  ;;  %v761_v29 = vadd.f32 %v4587_v37, %v572_v50  ;;  %v762_v22 = vadd.f32 %v5738_v0, %v573_v20  ;;  %v3248_v13 = vpop.permute.xlu1 %3247 }
 0x14f   : > { %v1356_v53 = vadd.f32 %v1348_v36, %v1304_v35  ;;  %v571_v27 = vmul.f32 %v3623_v38, %v5735_v9  ;;  %v570_v43 = vmul.f32 %v3622_v54, %v5735_v9  ;;  %v3626_v16 = vpop.permute.xlu0 %3625  ;;  %v3250_v35 = vunpack.i.h.bf16 %v3248_v13  ;;  %v5740_v38 = vld [vmem:[#allocation28_spill] sm:$0xff] }
 0x150   : > { %v763_v4 = vadd.f32 %v4584_v49, %v574_v60  ;;  %v764_v59 = vadd.f32 %v4597_v6, %v575_v34  ;;  %v4910_v19 = vadd.f32 %v4697_v3, %v761_v29  ;;  %v902_v37 = vadd.f32 %v4630_v17, %v762_v22  ;;  %v5739_v6 = vld [vmem:[#allocation59_spill] sm:$0xff]  ;;  %v5741_v22 = vld [vmem:[#allocation14_spill] sm:$0xff] }
 0x151   : > { %v578_v56 = vadd.f32 %v570_v43, %v4684_v5  ;;  %v579_v62 = vadd.f32 %v571_v27, %v4709_v2  ;;  %v3249_v26 = vunpack.i.l.bf16 %v3248_v13  ;;  %3441 = vperm.xlu1 %3434, %v5711_v44   ;;  %v3628_v49 = vunpack.i.h.bf16 %v3626_v16 }
 0x152   : > { %v903_v9 = vadd.f32 %v4662_v30, %v763_v4  ;;  %v904_v50 = vadd.f32 %v4721_v8, %v764_v59  ;;  %v3627_v20 = vunpack.i.l.bf16 %v3626_v16  ;;  %v4921_v17 = vmul.f32 %v3250_v35, %v5740_v38  ;;  %v3253_v2 = vpop.permute.xlu1 %3252 }
 0x153   : > { %v767_v36 = vadd.f32 %v5739_v6, %v578_v56  ;;  %v768_v3 = vadd.f32 %v4615_v57, %v579_v62  ;;  %v4924_v5 = vmul.f32 %v3249_v26, %v5740_v38  ;;  %v3631_v54 = vpop.permute.xlu0 %3630  ;;  %v980_v8 = vmul.f32 %v3628_v49, %v5700_v28 }
 0x154   : > { %v1043_v44 = vadd.f32 %v4750_v39, %v903_v9  ;;  %v1044_v30 = vadd.f32 %v4778_v15, %v904_v50  ;;  %v979_v32 = vmul.f32 %v3627_v20, %v5700_v28  ;;  %v3255_v48 = vunpack.i.h.bf16 %v3253_v2 }
 0x155   : > { %v4931_v60 = vadd.f32 %v4704_v52, %v767_v36  ;;  %v4934_v57 = vadd.f32 %v4771_v58, %v768_v3  ;;  %v3254_v34 = vunpack.i.l.bf16 %v3253_v2  ;;  %3445 = vset.pattern.permute.xlu1 %v5683_v55  ;;  %v1013_v0 = vrot.slane %v980_v8, 1  ;;  %v5743_v36 = vld [vmem:[#allocation65_spill] sm:$0xff]  ;;  %v5744_v2 = vld [vmem:[#allocation64_spill] sm:$0xff] }
 0x156   : > { %v1120_v29 = vadd.f32 %v4810_v23, %v1043_v44  ;;  %v1121_v39 = vadd.f32 %v4804_v45, %v1044_v30  ;;  %v1012_v15 = vrot.slane %v979_v32, 1  ;;  %3447 = vperm.xlu1 %3445, %v5741_v22   ;;  %v1400_v27 = vmul.f32 %v3255_v48, %v5740_v38  ;;  %v3258_v13 = vpop.permute.xlu1 %3257 }
 0x157   : > { %v4942_v52 = vmul.f32 %v3254_v34, %v5740_v38  ;;  %v3633_v43 = vunpack.i.h.bf16 %v3631_v54  ;;  %v3632_v58 = vunpack.i.l.bf16 %v3631_v54  ;;  %v3636_v16 = vpop.permute.xlu0 %3635  ;;  %v3260_v45 = vunpack.i.h.bf16 %v3258_v13 }
 0x158   : > { %v1172_v4 = vadd.f32 %v4781_v18, %v1120_v29  ;;  %v1173_v55 = vadd.f32 %v4758_v40, %v1121_v39  ;;  %v1014_v23 = vsel %vm728_vm0, %v1012_v15, %v1013_v0  ;;  %v1408_v56 = vadd.f32 %v1400_v27, %v1356_v53  ;;  %v5742_v40 = vld [vmem:[#allocation68_spill] sm:$0xff]  ;;  %v5745_v15 = vld [vmem:[#allocation15_spill] sm:$0xff] }
 0x159   : > { %v1042_v59 = vadd.f32 %v1014_v23, %v902_v37  ;;  %v986_v62 = vmul.f32 %v3633_v43, %v5700_v28  ;;  %v985_v35 = vmul.f32 %v3632_v58, %v5700_v28  ;;  %v4952_v50 = vmul.f32 %v3260_v45, %v5740_v38  ;;  %v5747_v45 = vld [vmem:[#allocation58_spill] sm:$0xff] }
 0x15a   : > { %v1224_v26 = vadd.f32 %v4856_v1, %v1172_v4  ;;  %v1225_v9 = vadd.f32 %v4853_v51, %v1173_v55  ;;  %v3259_v49 = vunpack.i.l.bf16 %v3258_v13  ;;  %3457 = vperm.xlu1 %3445, %v4578_v24   ;;  %v4956_v18 = vadd.f32 %v5742_v40, %v1408_v56  ;;  %v5746_v13 = vld [vmem:[#allocation57_spill] sm:$0xff] }
 0x15b   : > { %v1022_v20 = vrot.slane %v986_v62, 1  ;;  %v1021_v37 = vrot.slane %v985_v35, 1  ;;  %v3638_v53 = vunpack.i.h.bf16 %v3636_v16  ;;  %v3641_v6 = vpop.permute.xlu0 %3640  ;;  %v3637_v51 = vunpack.i.l.bf16 %v3636_v16  ;;  %v3269_v44 = vpop.permute.xlu1 %3268 }
 0x15c   : > { %v1301_v3 = vadd.f32 %v5743_v36, %v1224_v26  ;;  %v1302_v54 = vadd.f32 %v5744_v2, %v1225_v9  ;;  %v4961_v1 = vmul.f32 %v3259_v49, %v5740_v38  ;;  %v3643_v32 = vunpack.i.h.bf16 %v3641_v6  ;;  %v5749_v49 = vld [vmem:[#allocation16_spill] sm:$0xff] }
 0x15d   : > { %v1023_v30 = vsel %vm728_vm0, %v1021_v37, %v1022_v20  ;;  %v990_v8 = vmul.f32 %v3638_v53, %v5700_v28  ;;  %v3642_v48 = vunpack.i.l.bf16 %v3641_v6  ;;  %v989_v0 = vmul.f32 %v3637_v51, %v5700_v28 }
 0x15e   : > { %v4966_v34 = vadd.f32 %v4894_v21, %v1301_v3  ;;  %v4969_v29 = vadd.f32 %v4886_v12, %v1302_v54  ;;  %v1045_v39 = vadd.f32 %v1023_v30, %v4694_v7  ;;  %3462 = vperm.xlu1 %3445, %v5745_v15   ;;  %v1215_v43 = vmul.f32 %v3643_v32, %v5715_v42  ;;  %v5751_v54 = vld [vmem:[#allocation29_spill] sm:$0xff]  ;;  %v5752_v30 = vld [vmem:[#allocation63_spill] sm:$0xff] }
 0x15f   : > { %v1028_v27 = vrot.slane %v990_v8, 1  ;;  %v1041_v58 = vadd.f32 %v4735_v41, %v4910_v19  ;;  %v1119_v16 = vadd.f32 %v5746_v13, %v1042_v59  ;;  %v3646_v4 = vpop.permute.xlu0 %3645  ;;  %v1027_v55 = vrot.slane %v989_v0, 1  ;;  %v3274_v7 = vpop.permute.xlu1 %3273  ;;  %v5748_v19 = vld [vmem:[#allocation31_spill] sm:$0xff]  ;;  %v5754_v0 = vld [vmem:[#allocation17_spill] sm:$0xff] }
 0x160   : > { %v1122_v21 = vadd.f32 %v4829_v47, %v1045_v39  ;;  %v1214_v12 = vmul.f32 %v3642_v48, %v5715_v42  ;;  %v3271_v23 = vunpack.i.h.bf16 %v3269_v44  ;;  %v3270_v62 = vunpack.i.l.bf16 %v3269_v44  ;;  %v5756_v13 = vld [vmem:[#allocation53_spill] sm:$0xff] }
 0x161   : > { %v1118_v28 = vadd.f32 %v5747_v45, %v1041_v58  ;;  %v1171_v56 = vadd.f32 %v4834_v14, %v1119_v16  ;;  %v3648_v35 = vunpack.i.h.bf16 %v3646_v4  ;;  %v1029_v41 = vsel %vm728_vm0, %v1027_v55, %v1028_v27  ;;  %v5758_v45 = vld [vmem:[#allocation51_spill] sm:$0xff] }
 0x162   : > { %v1174_v26 = vadd.f32 %v4842_v10, %v1122_v21  ;;  %v1530_v59 = vmul.f32 %v3271_v23, %v5748_v19  ;;  %v3647_v9 = vunpack.i.l.bf16 %v3646_v4  ;;  %3472 = vperm.xlu1 %3445, %v5749_v49   ;;  %v1047_v47 = vadd.f32 %v1029_v41, %v4931_v60  ;;  %v5750_v10 = vld [vmem:[#allocation37_spill] sm:$0xff]  ;;  %v5757_v4 = vld [vmem:[#allocation39_spill] sm:$0xff] }
 0x163   : > { %v1170_v40 = vadd.f32 %v4837_v63, %v1118_v28  ;;  %v1223_v20 = vadd.f32 %v1215_v43, %v1171_v56  ;;  %v1529_v37 = vmul.f32 %v3270_v62, %v5748_v19  ;;  %v1221_v6 = vmul.f32 %v3648_v35, %v5715_v42  ;;  %v3284_v3 = vpop.permute.xlu1 %3283  ;;  %v3651_v8 = vpop.permute.xlu0 %3650  ;;  %v5753_v63 = vld [vmem:[#allocation62_spill] sm:$0xff]  ;;  %v5755_v43 = vld [vmem:[#allocation52_spill] sm:$0xff] }
 0x164   : > { %v1226_v14 = vadd.f32 %v4861_v46, %v1174_v26  ;;  %v1563_v53 = vrot.slane %v1530_v59, 1  ;;  %v1048_v36 = vadd.f32 %v5750_v10, %v4934_v57  ;;  %v1124_v60 = vadd.f32 %v5752_v30, %v1047_v47 }
 0x165   : > { %v1222_v2 = vadd.f32 %v1214_v12, %v1170_v40  ;;  %v1300_v51 = vadd.f32 %v5751_v54, %v1223_v20  ;;  %v1562_v44 = vrot.slane %v1529_v37, 1  ;;  %v1220_v48 = vmul.f32 %v3647_v9, %v5715_v42  ;;  %v5760_v37 = vld [vmem:[#allocation7_spill] sm:$0xff] }
 0x166   : > { %v1125_v32 = vadd.f32 %v5753_v63, %v1048_v36  ;;  %v3276_v39 = vunpack.i.h.bf16 %v3274_v7  ;;  %v3275_v46 = vunpack.i.l.bf16 %v3274_v7  ;;  %3563 = vperm.xlu1 %3445, %v5754_v0   ;;  %v1176_v16 = vadd.f32 %v5756_v13, %v1124_v60  ;;  %v5761_v36 = vld [vmem:[#allocation38_spill] sm:$0xff] }
 0x167   : > { %v1299_v27 = vadd.f32 %v4870_v61, %v1222_v2  ;;  %v1352_v57 = vadd.f32 %v5755_v43, %v1300_v51  ;;  %v1564_v58 = vsel %vm728_vm0, %v1562_v44, %v1563_v53  ;;  %v3653_v23 = vunpack.i.h.bf16 %v3651_v8  ;;  %v3294_v42 = vpop.permute.xlu1 %3293  ;;  %v5762_v51 = vld [vmem:[#allocation5_spill] sm:$0xff] }
 0x168   : > { %v1177_v21 = vadd.f32 %v5757_v4, %v1125_v32  ;;  %v1532_v55 = vmul.f32 %v3276_v39, %v5748_v19  ;;  %v1531_v12 = vmul.f32 %v3275_v46, %v5748_v19  ;;  %v1228_v56 = vadd.f32 %v1220_v48, %v1176_v16  ;;  %v5765_v16 = vld [vmem:[#allocation42_spill] sm:$0xff]  ;;  %v5766_v4 = vld [vmem:[#allocation11_spill] sm:$0xff] }
 0x169   : > { %v1351_v7 = vadd.f32 %v5758_v45, %v1299_v27  ;;  %v1404_v28 = vadd.f32 %v4921_v17, %v1352_v57  ;;  %v3652_v61 = vunpack.i.l.bf16 %v3651_v8  ;;  %v1398_v41 = vmul.f32 %v3653_v23, %v5740_v38 }
 0x16a   : > { %v1229_v62 = vadd.f32 %v1221_v6, %v1177_v21  ;;  %v1566_v35 = vrot.slane %v1532_v55, 1  ;;  %v1565_v26 = vrot.slane %v1531_v12, 1  ;;  %v5759_v59 = vmov 1  }
 0x16b   : > { %3572 = vset.pattern.permute.xlu1 %v5759_v59  ;;  %v5010_v9 = vadd.f32 %v4924_v5, %v1351_v7  ;;  %v5012_v47 = vadd.f32 %v1564_v58, %v1404_v28  ;;  %v1305_v40 = vadd.f32 %v4883_v25, %v1228_v56  ;;  %v1397_v20 = vmul.f32 %v3652_v61, %v5740_v38  ;;  %v5763_v25 = vld [vmem:[#allocation24_spill] sm:$0xff]  ;;  %v5764_v38 = vld [vmem:[#allocation66_spill] sm:$0xff] }
 0x16c   : > { %3574 = vperm.xlu1 %3572, %v5760_v37   ;;  %v1306_v17 = vadd.f32 %v4876_v31, %v1229_v62  ;;  %v1567_v53 = vsel %vm728_vm0, %v1565_v26, %v1566_v35  ;;  %v1406_v6 = vadd.f32 %v1398_v41, %v4969_v29  ;;  %v3286_v10 = vunpack.i.h.bf16 %v3284_v3  ;;  %v3305_v30 = vpop.permute.xlu1 %3304  ;;  %v5770_v28 = vld [vmem:[#allocation8_spill] sm:$0xff] }
 0x16d   : > { %v1357_v2 = vadd.f32 %v5761_v36, %v1305_v40  ;;  %v1405_v5 = vadd.f32 %v1397_v20, %v4966_v34  ;;  %v3285_v54 = vunpack.i.l.bf16 %v3284_v3  ;;  %v1303_v44 = vadd.f32 %v5762_v51, %v1226_v14  ;;  %v5771_v56 = vld [vmem:[#allocation56_spill] sm:$0xff] }
 0x16e   : > { %v1358_v60 = vadd.f32 %v5763_v25, %v1306_v17  ;;  %v5025_v8 = vadd.f32 %v5764_v38, %v1406_v6  ;;  %v1536_v31 = vmul.f32 %v3286_v10, %v5748_v19  ;;  %v3296_v63 = vunpack.i.h.bf16 %v3294_v42  ;;  %v5772_v62 = vld [vmem:[#allocation44_spill] sm:$0xff] }
 0x16f   : > { %v5028_v32 = vadd.f32 %v1567_v53, %v1405_v5  ;;  %v1355_v29 = vadd.f32 %v4903_v11, %v1303_v44  ;;  %v1535_v48 = vmul.f32 %v3285_v54, %v5748_v19  ;;  %v3295_v39 = vunpack.i.l.bf16 %v3294_v42  ;;  %v5040_v11 = vpop.permute.xlu0 %3655 }
 0x170   : > { %3579 = vperm.xlu1 %3572, %v4578_v24   ;;  %v5034_v34 = vadd.f32 %v4952_v50, %v1358_v60  ;;  %v1572_v14 = vrot.slane %v1536_v31, 1  ;;  %v1540_v3 = vmul.f32 %v3296_v63, %v5748_v19  ;;  %v1409_v46 = vadd.f32 %v4961_v1, %v1357_v2  ;;  %v3310_v13 = vpop.permute.xlu1 %3309  ;;  %v5769_v1 = vld [vmem:[#allocation10_spill] sm:$0xff] }
 0x171   : > { %v1407_v27 = vadd.f32 %v4942_v52, %v1355_v29  ;;  %v1571_v43 = vrot.slane %v1535_v48, 1  ;;  %v1539_v57 = vmul.f32 %v3295_v39, %v5748_v19  ;;  %v3307_v58 = vunpack.i.h.bf16 %v3305_v30 }
 0x172   : > { %v5767_v21 = vunpack.i.h.bf16 %v5766_v4  ;;  %v5768_v50 = vunpack.i.l.bf16 %v5766_v4  ;;  %v1578_v23 = vrot.slane %v1540_v3, 1  ;;  %v3306_v42 = vunpack.i.l.bf16 %v3305_v30  ;;  %v5773_v30 = vld [vmem:[#allocation9_spill] sm:$0xff] }
 0x173   : > { %v1703_v45 = vrot.slane %v5769_v1, 1  ;;  %v1573_v52 = vsel %vm728_vm0, %v1571_v43, %v1572_v14  ;;  %v1577_v7 = vrot.slane %v1539_v57, 1  ;;  %v3312_v19 = vunpack.i.h.bf16 %v3310_v13  ;;  %v3661_v53 = vpop.permute.xlu0 %3660 }
 0x174   : > { %v1676_v55 = vmul.f32 %v5767_v21, %v5765_v16  ;;  %v1675_v12 = vmul.f32 %v5768_v50, %v5765_v16  ;;  %3589 = vperm.xlu1 %3572, %v5770_v28   ;;  %v1702_v61 = vrot.slane %v5771_v56, 1  ;;  %v3546_v35 = vunpack.i.h.bf16 %v5772_v62  ;;  %v3315_v17 = vpop.permute.xlu1 %3314 }
 0x175   : > { %v3545_v26 = vunpack.i.l.bf16 %v5772_v62  ;;  %v5054_v41 = vadd.f32 %v1573_v52, %v1407_v27  ;;  %v1579_v59 = vsel %vm728_vm0, %v1577_v7, %v1578_v23  ;;  %v1668_v40 = vmul.f32 %v3307_v58, %v5765_v16 }
 0x176   : > { %v1672_v20 = vmul.f32 %v3312_v19, %v5765_v16  ;;  %v3311_v37 = vunpack.i.l.bf16 %v3310_v13  ;;  %v1712_v6 = vrot.slane %v1676_v55, 1  ;;  %v1711_v10 = vrot.slane %v1675_v12, 1 }
 0x177   : > { %v5059_v36 = vadd.f32 %v1579_v59, %v1409_v46  ;;  %v1667_v2 = vmul.f32 %v3306_v42, %v5765_v16  ;;  %v3317_v51 = vunpack.i.h.bf16 %v3315_v17  ;;  %v3316_v44 = vunpack.i.l.bf16 %v3315_v17  ;;  %v5774_v46 = vld [vmem:[#allocation12_spill] sm:$0xff] }
 0x178   : > { %v1706_v5 = vrot.slane %v1672_v20, 1  ;;  %v1671_v54 = vmul.f32 %v3311_v37, %v5765_v16  ;;  %3599 = vperm.xlu1 %3572, %v5773_v30   ;;  %v1680_v25 = vmul.f32 %v3546_v35, %v5765_v16  ;;  %v1679_v60 = vmul.f32 %v3545_v26, %v5765_v16  ;;  %v3320_v14 = vpop.permute.xlu1 %3319  ;;  %v5776_v20 = vld [vmem:[#allocation18_spill] sm:$0xff]  ;;  %v5778_v17 = vld [vmem:[#allocation20_spill] sm:$0xff] }
 0x179   : > { %v3663_v38 = vunpack.i.h.bf16 %v3661_v53  ;;  %v3662_v31 = vunpack.i.l.bf16 %v3661_v53  ;;  %v1700_v63 = vrot.slane %v1668_v40, 1  ;;  %v1674_v48 = vmul.f32 %v3317_v51, %v5765_v16 }
 0x17a   : > { %v1705_v29 = vrot.slane %v1671_v54, 1  ;;  %v1673_v39 = vmul.f32 %v3316_v44, %v5765_v16  ;;  %v1699_v3 = vrot.slane %v1667_v2, 1  ;;  %v3322_v43 = vunpack.i.h.bf16 %v3320_v14 }
 0x17b   : > { %v1814_v27 = vmul.f32 %v3663_v38, %v5774_v46  ;;  %v3321_v57 = vunpack.i.l.bf16 %v3320_v14  ;;  %v1709_v13 = vrot.slane %v1674_v48, 1  ;;  %v1813_v21 = vmul.f32 %v3662_v31, %v5774_v46  ;;  %v5781_v14 = vld [vmem:[#allocation33_spill] sm:$0xff] }
 0x17c   : > { %v1707_v58 = vsel %vm728_vm0, %v1705_v29, %v1706_v5  ;;  %v1708_v4 = vrot.slane %v1673_v39, 1  ;;  %3689 = vset.pattern.permute.xlu1 %v5663_v33  ;;  %v1704_v55 = vsel %vm728_vm0, %v1702_v61, %v1703_v45  ;;  %v1713_v50 = vsel %vm728_vm0, %v1711_v10, %v1712_v6  ;;  %v3325_v19 = vpop.permute.xlu1 %3324  ;;  %v5780_v6 = vld [vmem:[#allocation26_spill] sm:$0xff] }
 0x17d   : > { %v5075_v12 = vadd.f32 %v1707_v58, %v5028_v32  ;;  %v1678_v23 = vmul.f32 %v3322_v43, %v5765_v16  ;;  %3691 = vperm.xlu1 %3689, %v5741_v22   ;;  %v1718_v42 = vrot.slane %v1680_v25, 1  ;;  %v1717_v1 = vrot.slane %v1679_v60, 1  ;;  %v5775_v22 = vld [vmem:[#allocation30_spill] sm:$0xff] }
 0x17e   : > { %v1710_v52 = vsel %vm728_vm0, %v1708_v4, %v1709_v13  ;;  %v1677_v7 = vmul.f32 %v3321_v57, %v5765_v16  ;;  %v1701_v33 = vsel %vm728_vm0, %v1699_v3, %v1700_v63  ;;  %v3327_v56 = vunpack.i.h.bf16 %v3325_v19  ;;  %v3666_v63 = vpop.permute.xlu0 %3665 }
 0x17f   : > { %v1734_v45 = vadd.f32 %v1710_v52, %v5025_v8  ;;  %v1715_v28 = vrot.slane %v1678_v23, 1  ;;  %v1849_v61 = vrot.slane %v1814_v27, 1  ;;  %v1848_v32 = vrot.slane %v1813_v21, 1 }
 0x180   : > { %v1714_v62 = vrot.slane %v1677_v7, 1  ;;  %v3326_v35 = vunpack.i.l.bf16 %v3325_v19  ;;  %v1682_v26 = vmul.f32 %v3327_v56, %v5765_v16  ;;  %v1591_v59 = vadd.f32 %v5775_v22, %v5010_v9 }
 0x181   : > { %3701 = vperm.xlu1 %3689, %v4578_v24   ;;  %v1732_v40 = vadd.f32 %v1704_v55, %v5012_v47  ;;  %v5777_v37 = vrot.slane %v5776_v20, 1  ;;  %v5779_v53 = vrot.slane %v5778_v17, 1  ;;  %v3358_v10 = vunpack.i.l.bf16 %v5780_v6  ;;  %v3331_v51 = vpop.permute.xlu1 %3330 }
 0x182   : > { %v1716_v2 = vsel %vm728_vm0, %v1714_v62, %v1715_v28  ;;  %v1681_v5 = vmul.f32 %v3326_v35, %v5765_v16  ;;  %v1719_v54 = vsel %vm728_vm0, %v1717_v1, %v1718_v42  ;;  %v1721_v24 = vrot.slane %v1682_v26, 1  ;;  %v3671_v19 = vpop.permute.xlu0 %3670 }
 0x183   : > { %v1582_v8 = vsel %vm728_vm0, %v5779_v53, %v5777_v37  ;;  %v5097_v44 = vadd.f32 %v1701_v33, %v1591_v59  ;;  %v5100_v9 = vadd.f32 %v1713_v50, %v5054_v41  ;;  %v1850_v47 = vsel %vm728_vm0, %v1848_v32, %v1849_v61 }
 0x184   : > { %v1720_v30 = vrot.slane %v1681_v5, 1  ;;  %v3333_v25 = vunpack.i.h.bf16 %v3331_v51  ;;  %v3332_v60 = vunpack.i.l.bf16 %v3331_v51  ;;  %v3658_v38 = vunpack.i.h.bf16 %v5040_v11 }
 0x185   : > { %v3657_v31 = vunpack.i.l.bf16 %v5040_v11  ;;  %3706 = vperm.xlu1 %3689, %v5745_v15   ;;  %v5107_v16 = vadd.f32 %v1716_v2, %v4956_v18  ;;  %v1598_v39 = vadd.f32 %v1582_v8, %v5034_v34  ;;  %v5782_v3 = vunpack.i.h.bf16 %v5780_v6  ;;  %v3336_v43 = vpop.permute.xlu1 %3335  ;;  %v5784_v2 = vld [vmem:[#allocation25_spill] sm:$0xff] }
 0x186   : > { %v1722_v29 = vsel %vm728_vm0, %v1720_v30, %v1721_v24  ;;  %v1810_v41 = vmul.f32 %v3333_v25, %v5774_v46  ;;  %v1809_v48 = vmul.f32 %v3332_v60, %v5774_v46  ;;  %v5117_v11 = vadd.f32 %v1719_v54, %v5059_v36  ;;  %v5785_v54 = vld [vmem:[#allocation35_spill] sm:$0xff] }
 0x187   : > { %v1943_v27 = vmul.f32 %v5782_v3, %v5781_v14  ;;  %v1874_v15 = vadd.f32 %v1850_v47, %v1734_v45  ;;  %v3338_v58 = vunpack.i.h.bf16 %v3336_v43  ;;  %v3337_v13 = vunpack.i.l.bf16 %v3336_v43 }
 0x188   : > { %v1843_v18 = vrot.slane %v1810_v41, 1  ;;  %v1842_v57 = vrot.slane %v1809_v48, 1  ;;  %v1808_v4 = vmul.f32 %v3658_v38, %v5774_v46  ;;  %v1807_v21 = vmul.f32 %v3657_v31, %v5774_v46 }
 0x189   : > { %3716 = vperm.xlu1 %3689, %v5749_v49   ;;  %v5122_v34 = vadd.f32 %v1722_v29, %v1598_v39  ;;  %v5124_v55 = vadd.f32 %v1943_v27, %v1874_v15  ;;  %v3668_v50 = vunpack.i.h.bf16 %v3666_v63  ;;  %v1812_v23 = vmul.f32 %v3338_v58, %v5774_v46  ;;  %v3341_v52 = vpop.permute.xlu1 %3340 }
 0x18a   : > { %v1811_v36 = vmul.f32 %v3337_v13, %v5774_v46  ;;  %v1844_v42 = vsel %vm728_vm0, %v1842_v57, %v1843_v18  ;;  %v3667_v1 = vunpack.i.l.bf16 %v3666_v63  ;;  %v3343_v28 = vunpack.i.h.bf16 %v3341_v52 }
 0x18b   : > { %v1872_v7 = vadd.f32 %v1844_v42, %v1732_v40  ;;  %v1846_v33 = vrot.slane %v1812_v23, 1  ;;  %v3342_v56 = vunpack.i.l.bf16 %v3341_v52  ;;  %v1942_v49 = vmul.f32 %v3358_v10, %v5781_v14 }
 0x18c   : > { %v1845_v45 = vrot.slane %v1811_v36, 1  ;;  %v1840_v61 = vrot.slane %v1808_v4, 1  ;;  %v1839_v32 = vrot.slane %v1807_v21, 1  ;;  %v1818_v62 = vmul.f32 %v3668_v50, %v5774_v46 }
 0x18d   : > { %3726 = vperm.xlu1 %3689, %v5754_v0   ;;  %v1816_v26 = vmul.f32 %v3343_v28, %v5774_v46  ;;  %v1815_v22 = vmul.f32 %v3342_v56, %v5774_v46  ;;  %v1817_v59 = vmul.f32 %v3667_v1, %v5774_v46  ;;  %v3673_v40 = vunpack.i.h.bf16 %v3671_v19  ;;  %v3346_v37 = vpop.permute.xlu1 %3345  ;;  %v5783_v0 = vld [vmem:[#allocation21_spill] sm:$0xff] }
 0x18e   : > { %v1847_v35 = vsel %vm728_vm0, %v1845_v45, %v1846_v33  ;;  %v3672_v20 = vunpack.i.l.bf16 %v3671_v19  ;;  %v3348_v6 = vunpack.i.h.bf16 %v3346_v37  ;;  %v3347_v10 = vunpack.i.l.bf16 %v3346_v37 }
 0x18f   : > { %v1873_v17 = vadd.f32 %v1847_v35, %v5075_v12  ;;  %v1852_v53 = vrot.slane %v1816_v26, 1  ;;  %v1851_v8 = vrot.slane %v1815_v22, 1  ;;  %v5139_v5 = vrot.slane %v5784_v2, %v5783_v0 }
 0x190   : > { %v3551_v24 = vunpack.i.h.bf16 %v5785_v54  ;;  %v3550_v47 = vunpack.i.l.bf16 %v5785_v54  ;;  %v1820_v30 = vmul.f32 %v3348_v6, %v5774_v46  ;;  %v1819_v25 = vmul.f32 %v3347_v10, %v5774_v46  ;;  %v208_v10 = vld [vmem:[%s5511_s1 + $0xe] sm:$0x3] }
 0x191   : > { %v1950_v51 = vadd.f32 %v1942_v49, %v1873_v17  ;;  %v1853_v60 = vsel %vm728_vm0, %v1851_v8, %v1852_v53  ;;  %v1855_v12 = vrot.slane %v1818_v62, 1  ;;  %v1854_v38 = vrot.slane %v1817_v59, 1 }
 0x192   : > { %v1841_v31 = vsel %vm728_vm0, %v1839_v32, %v1840_v61  ;;  %v1875_v63 = vadd.f32 %v1853_v60, %v5100_v9  ;;  %v1822_v29 = vmul.f32 %v3673_v40, %v5774_v46  ;;  %v1821_v41 = vmul.f32 %v3672_v20, %v5774_v46  ;;  %v3352_v3 = vpop.permute.xlu1 %3351 }
 0x193   : > { %v1858_v48 = vrot.slane %v1820_v30, 1  ;;  %v1857_v39 = vrot.slane %v1819_v25, 1  ;;  %v3354_v27 = vunpack.i.h.bf16 %v3352_v3  ;;  %v3353_v43 = vunpack.i.l.bf16 %v3352_v3 }
 0x194   : > { %v1871_v15 = vadd.f32 %v1841_v31, %v5097_v44  ;;  %v1856_v13 = vsel %vm728_vm0, %v1854_v38, %v1855_v12  ;;  %v1993_v4 = vmul.f32 %v3551_v24, %v5139_v5  ;;  %v1992_v46 = vmul.f32 %v3550_v47, %v5139_v5  ;;  %v5787_v31 = vld [vmem:[#allocation19_spill] sm:$0xff] }
 0x195   : > { %v1859_v18 = vsel %vm728_vm0, %v1857_v39, %v1858_v48  ;;  %v1941_v57 = vmul.f32 %v3354_v27, %v5781_v14  ;;  %v1940_v58 = vmul.f32 %v3353_v43, %v5781_v14  ;;  %v1861_v21 = vrot.slane %v1822_v29, 1  ;;  %v5788_v29 = vld [vmem:[#allocation34_spill] sm:$0xff] }
 0x196   : > { %v1877_v9 = vadd.f32 %v1859_v18, %v5117_v11  ;;  %v1860_v50 = vrot.slane %v1821_v41, 1  ;;  %v1876_v52 = vadd.f32 %v1856_v13, %v5107_v16  ;;  %v5786_v11 = vld [vmem:[#allocation40_spill] sm:$0xff]  ;;  %v5178_v30 = vunpack.c.l.bf16 %v208_v10  ;;  %v5789_v27 = vld [vmem:[#allocation22_spill] sm:$0xff] }
 0x197   : > { %v3362_v23 = vpop.permute.xlu1 %3361  ;;  %v1948_v36 = vadd.f32 %v1940_v58, %v1871_v15  ;;  %v1949_v42 = vadd.f32 %v1941_v57, %v1872_v7  ;;  %v3556_v56 = vunpack.i.h.bf16 %v5786_v11  ;;  %v3555_v49 = vunpack.i.l.bf16 %v5786_v11 }
 0x198   : > { %v3364_v44 = vunpack.i.h.bf16 %v3362_v23  ;;  %v3363_v1 = vunpack.i.l.bf16 %v3362_v23  ;;  %v1862_v32 = vsel %vm728_vm0, %v1860_v50, %v1861_v21  ;;  %v3401_v41 = vunpack.i.h.bf16 %v5788_v29 }
 0x199   : > { %v2000_v45 = vadd.f32 %v1992_v46, %v1948_v36  ;;  %v2001_v28 = vadd.f32 %v1993_v4, %v1949_v42  ;;  %v1878_v22 = vadd.f32 %v1862_v32, %v5122_v34  ;;  %v1999_v40 = vmul.f32 %v3556_v56, %v5139_v5  ;;  %v5790_v36 = vld [vmem:[#allocation36_spill] sm:$0xff] }
 0x19a   : > { %v1945_v19 = vmul.f32 %v3364_v44, %v5781_v14  ;;  %v1944_v33 = vmul.f32 %v3363_v1, %v5781_v14  ;;  %v1998_v20 = vmul.f32 %v3555_v49, %v5139_v5  ;;  %v3400_v3 = vunpack.i.l.bf16 %v5788_v29  ;;  %v209_v44 = vld [vmem:[%s5511_s1 + $0x10] sm:$0x3] }
 0x19b   : > { %v3367_v61 = vpop.permute.xlu1 %3366  ;;  %v5191_v43 = vrot.slane %v5784_v2, %v5789_v27  ;;  %v3417_v42 = vunpack.i.h.bf16 %v5790_v36  ;;  %v5208_v56 = vunpack.c.l.bf16 %v209_v44 }
 0x19c   : > { %v5164_v62 = vadd.f32 %v1944_v33, %v1875_v63  ;;  %v1953_v7 = vadd.f32 %v1945_v19, %v1876_v52  ;;  %v3369_v35 = vunpack.i.h.bf16 %v3367_v61  ;;  %v3368_v26 = vunpack.i.l.bf16 %v3367_v61 }
 0x19d   : > { %v5185_v63 = vrot.slane %v5178_v30, %v5787_v31  ;;  %v3416_v33 = vunpack.i.l.bf16 %v5790_v36  ;;  %v5228_v29 = vrot.slane %v5208_v56, %v5787_v31 }
 0x19e   : > { %v1947_v16 = vmul.f32 %v3369_v35, %v5781_v14  ;;  %v1946_v59 = vmul.f32 %v3368_v26, %v5781_v14 }
 0x19f   : > { %v2122_v57 = vmul.f32 %v3401_v41, %v5185_v63  ;;  %v2121_v13 = vmul.f32 %v3400_v3, %v5185_v63  ;;  %v2128_v32 = vmul.f32 %v3417_v42, %v5185_v63 }
 0x1a0   : > { %v1954_v37 = vadd.f32 %v1946_v59, %v1877_v9  ;;  %v1955_v17 = vadd.f32 %v1947_v16, %v1878_v22  ;;  %v3373_v53 = vpop.permute.xlu1 %3372  ;;  %v3676_v9 = vpop.permute.xlu0 %3675  ;;  %v2127_v16 = vmul.f32 %v3416_v33, %v5185_v63  ;;  %v5791_v22 = vld [vmem:[#allocation43_spill] sm:$0xff] }
 0x1a1   : > { %v3375_v8 = vunpack.i.h.bf16 %v3373_v53  ;;  %v3374_v6 = vunpack.i.l.bf16 %v3373_v53  ;;  %v3678_v1 = vunpack.i.h.bf16 %v3676_v9  ;;  %v3677_v52 = vunpack.i.l.bf16 %v3676_v9 }
 0x1a2   : > { %v2006_v54 = vadd.f32 %v1998_v20, %v1954_v37  ;;  %v2007_v24 = vadd.f32 %v1999_v40, %v1955_v17  ;;  %v3561_v59 = vunpack.i.h.bf16 %v5791_v22  ;;  %v3560_v17 = vunpack.i.l.bf16 %v5791_v22 }
 0x1a3   : > { %v1995_v47 = vmul.f32 %v3375_v8, %v5139_v5  ;;  %v1994_v34 = vmul.f32 %v3374_v6, %v5139_v5  ;;  %v2047_v35 = vmul.f32 %v3678_v1, %v5191_v43  ;;  %v2046_v26 = vmul.f32 %v3677_v52, %v5191_v43 }
 0x1a4   : > { %v5176_v14 = vpop.permute.xlu1 %3377 }
 0x1a5   : > { %v2002_v25 = vadd.f32 %v1994_v34, %v1950_v51  ;;  %v2003_v60 = vadd.f32 %v1995_v47, %v5124_v55  ;;  %v3380_v12 = vunpack.i.h.bf16 %v5176_v14 }
 0x1a7   : > { %v1997_v38 = vmul.f32 %v3380_v12, %v5139_v5  ;;  %v2054_v47 = vadd.f32 %v2046_v26, %v2002_v25  ;;  %v2055_v34 = vadd.f32 %v2047_v35, %v2003_v60 }
 0x1a9   : > { %v2005_v48 = vadd.f32 %v1997_v38, %v1953_v7  ;;  %v3384_v39 = vpop.permute.xlu1 %3383  ;;  %v5215_v7 = vrot.slane %v5178_v30, %v5783_v0 }
 0x1aa   : > { %v3386_v51 = vunpack.i.h.bf16 %v3384_v39  ;;  %v3385_v55 = vunpack.i.l.bf16 %v3384_v39 }
 0x1ab   : > { %v2175_v3 = vmul.f32 %v3560_v17, %v5215_v7 }
 0x1ac   : > { %v2045_v15 = vmul.f32 %v3386_v51, %v5191_v43  ;;  %v2044_v18 = vmul.f32 %v3385_v55, %v5191_v43  ;;  %v5234_v55 = vpop.permute.xlu0 %3680 }
 0x1ad   : > { %v5196_v58 = vpop.permute.xlu1 %3388 }
 0x1ae   : > { %v2052_v4 = vadd.f32 %v2044_v18, %v2000_v45  ;;  %v2053_v46 = vadd.f32 %v2045_v15, %v2001_v28  ;;  %v3391_v21 = vunpack.i.h.bf16 %v5196_v58  ;;  %v3390_v26 = vunpack.i.l.bf16 %v5196_v58 }
 0x1b0   : > { %v2049_v2 = vmul.f32 %v3391_v21, %v5191_v43  ;;  %v5201_v50 = vadd.f32 %v2121_v13, %v2052_v4  ;;  %v2130_v23 = vadd.f32 %v2122_v57, %v2053_v46  ;;  %v5243_v57 = vrot.slane %v5178_v30, %v5789_v27  ;;  %v5793_v30 = vld [vmem:[#allocation50_spill] sm:$0xff] }
 0x1b1   : > { %v3394_v19 = vpop.permute.xlu1 %3393  ;;  %v3683_v13 = vunpack.i.h.bf16 %v5234_v55  ;;  %v3479_v33 = vunpack.i.l.bf16 %v5793_v30  ;;  %v2048_v58 = vmul.f32 %v3390_v26, %v5191_v43 }
 0x1b2   : > { %v2057_v45 = vadd.f32 %v2049_v2, %v2005_v48  ;;  %v3396_v28 = vunpack.i.h.bf16 %v3394_v19  ;;  %v3395_v11 = vunpack.i.l.bf16 %v3394_v19  ;;  %v2176_v48 = vmul.f32 %v3561_v59, %v5215_v7  ;;  %v5794_v59 = vld [vmem:[#allocation45_spill] sm:$0xff] }
 0x1b3   : > { %v2226_v36 = vmul.f32 %v3683_v13, %v5243_v57  ;;  %v3480_v19 = vunpack.i.h.bf16 %v5793_v30  ;;  %v2369_v35 = vmul.f32 %v3479_v33, %v5228_v29 }
 0x1b4   : > { %v2051_v49 = vmul.f32 %v3396_v28, %v5191_v43  ;;  %v2050_v61 = vmul.f32 %v3395_v11, %v5191_v43  ;;  %v3379_v11 = vunpack.i.l.bf16 %v5176_v14  ;;  %v5285_v43 = vrot.slane %v5208_v56, %v5783_v0 }
 0x1b6   : > { %v2058_v40 = vadd.f32 %v2050_v61, %v2006_v54  ;;  %v2059_v20 = vadd.f32 %v2051_v49, %v2007_v24  ;;  %v3405_v37 = vpop.permute.xlu1 %3404  ;;  %v5792_v54 = vld [vmem:[#allocation41_spill] sm:$0xff] }
 0x1b7   : > { %v3407_v53 = vunpack.i.h.bf16 %v3405_v37  ;;  %v3406_v8 = vunpack.i.l.bf16 %v3405_v37  ;;  %v3455_v24 = vunpack.i.h.bf16 %v5792_v54  ;;  %v3454_v41 = vunpack.i.l.bf16 %v5792_v54 }
 0x1b8   : > { %v2135_v6 = vadd.f32 %v2127_v16, %v2058_v40  ;;  %v5222_v10 = vadd.f32 %v2128_v32, %v2059_v20  ;;  %v2370_v32 = vmul.f32 %v3480_v19, %v5228_v29  ;;  %v5263_v16 = vpop.permute.xlu0 %3685  ;;  %v3470_v40 = vunpack.i.h.bf16 %v5794_v59 }
 0x1b9   : > { %v2124_v12 = vmul.f32 %v3407_v53, %v5185_v63  ;;  %v2123_v38 = vmul.f32 %v3406_v8, %v5185_v63  ;;  %v2360_v9 = vmul.f32 %v3455_v24, %v5228_v29  ;;  %v2359_v4 = vmul.f32 %v3454_v41, %v5228_v29 }
 0x1ba   : > { %v3410_v39 = vpop.permute.xlu1 %3409  ;;  %v3687_v14 = vunpack.i.l.bf16 %v5263_v16  ;;  %v1996_v37 = vmul.f32 %v3379_v11, %v5139_v5  ;;  %v2408_v8 = vrot.slane %v2370_v32, 1 }
 0x1bb   : > { %v2131_v51 = vadd.f32 %v2123_v38, %v2054_v47  ;;  %v2132_v25 = vadd.f32 %v2124_v12, %v2055_v34  ;;  %v3412_v60 = vunpack.i.h.bf16 %v3410_v39  ;;  %v2393_v44 = vrot.slane %v2360_v9, 1 }
 0x1bc   : > { %v2392_v1 = vrot.slane %v2359_v4, 1  ;;  %v3411_v17 = vunpack.i.l.bf16 %v3410_v39  ;;  %v2407_v47 = vrot.slane %v2369_v35, 1  ;;  %v2366_v38 = vmul.f32 %v3470_v40, %v5228_v29 }
 0x1bd   : > { %v2126_v15 = vmul.f32 %v3412_v60, %v5185_v63  ;;  %v5237_v18 = vadd.f32 %v2175_v3, %v2131_v51  ;;  %v5239_v31 = vadd.f32 %v2176_v48, %v2132_v25  ;;  %v2231_v24 = vmul.f32 %v3687_v14, %v5243_v57 }
 0x1be   : > { %v2004_v5 = vadd.f32 %v1996_v37, %v5164_v62  ;;  %v2125_v48 = vmul.f32 %v3411_v17, %v5185_v63  ;;  %v2409_v51 = vsel %vm728_vm0, %v2407_v47, %v2408_v8  ;;  %v2402_v13 = vrot.slane %v2366_v38, 1 }
 0x1bf   : > { %v5248_v46 = vadd.f32 %v2126_v15, %v2057_v45  ;;  %v3421_v21 = vpop.permute.xlu1 %3420  ;;  %v2394_v45 = vsel %vm728_vm0, %v2392_v1, %v2393_v44  ;;  %v3682_v44 = vunpack.i.l.bf16 %v5234_v55 }
 0x1c0   : > { %v3423_v2 = vunpack.i.h.bf16 %v3421_v21  ;;  %v3422_v39 = vunpack.i.l.bf16 %v3421_v21  ;;  %v2056_v25 = vadd.f32 %v2048_v58, %v2004_v5 }
 0x1c1   : > { %v2225_v55 = vmul.f32 %v3682_v44, %v5243_v57 }
 0x1c2   : > { %v2174_v42 = vmul.f32 %v3423_v2, %v5215_v7  ;;  %v2133_v21 = vadd.f32 %v2125_v48, %v2056_v25  ;;  %v2173_v1 = vmul.f32 %v3422_v39, %v5215_v7 }
 0x1c3   : > { %v5252_v52 = vpop.permute.xlu1 %3425 }
 0x1c4   : > { %v2182_v28 = vadd.f32 %v2174_v42, %v2130_v23  ;;  %v3469_v23 = vunpack.i.l.bf16 %v5794_v59  ;;  %v3427_v34 = vunpack.i.l.bf16 %v5252_v52  ;;  %v2181_v40 = vadd.f32 %v2173_v1, %v5201_v50 }
 0x1c5   : > { %v3428_v25 = vunpack.i.h.bf16 %v5252_v52 }
 0x1c6   : > { %v2234_v49 = vadd.f32 %v2226_v36, %v2182_v28  ;;  %v2365_v54 = vmul.f32 %v3469_v23, %v5228_v29  ;;  %v2177_v60 = vmul.f32 %v3427_v34, %v5215_v7  ;;  %v5796_v36 = vld [vmem:[#allocation47_spill] sm:$0xff]  ;;  %v5797_v23 = vld [vmem:[#allocation46_spill] sm:$0xff] }
 0x1c7   : > { %v5258_v61 = vpop.permute.xlu1 %3430  ;;  %v3587_v42 = vunpack.i.h.bf16 %v5796_v36  ;;  %v3586_v0 = vunpack.i.l.bf16 %v5796_v36  ;;  %v3597_v14 = vunpack.i.h.bf16 %v5797_v23 }
 0x1c8   : > { %v5265_v22 = vadd.f32 %v2394_v45, %v2234_v49  ;;  %v3432_v20 = vunpack.i.l.bf16 %v5258_v61  ;;  %v2401_v9 = vrot.slane %v2365_v54, 1  ;;  %v2185_v30 = vadd.f32 %v2177_v60, %v2133_v21 }
 0x1c9   : > { %v2504_v26 = vmul.f32 %v3587_v42, %v5285_v43  ;;  %v2503_v59 = vmul.f32 %v3586_v0, %v5285_v43  ;;  %v2233_v54 = vadd.f32 %v2225_v55, %v2181_v40  ;;  %v2508_v5 = vmul.f32 %v3597_v14, %v5285_v43 }
 0x1ca   : > { %v2179_v53 = vmul.f32 %v3432_v20, %v5215_v7  ;;  %v2403_v28 = vsel %vm728_vm0, %v2401_v9, %v2402_v13  ;;  %v3433_v21 = vunpack.i.h.bf16 %v5258_v61  ;;  %v3697_v61 = vpop.permute.xlu0 %3696  ;;  %v3688_v40 = vunpack.i.h.bf16 %v5263_v16 }
 0x1cb   : > { %v2539_v50 = vrot.slane %v2504_v26, 1  ;;  %v2545_v44 = vrot.slane %v2508_v5, 1  ;;  %v3699_v14 = vunpack.i.h.bf16 %v3697_v61 }
 0x1cc   : > { %v5275_v12 = vpop.permute.xlu1 %3436  ;;  %v2187_v41 = vadd.f32 %v2179_v53, %v2135_v6  ;;  %v5795_v6 = vld [vmem:[#allocation54_spill] sm:$0xff]  ;;  %v3596_v53 = vunpack.i.l.bf16 %v5797_v23  ;;  %v2180_v26 = vmul.f32 %v3433_v21, %v5215_v7 }
 0x1cd   : > { %v3571_v4 = vunpack.i.h.bf16 %v5795_v6  ;;  %v3570_v63 = vunpack.i.l.bf16 %v5795_v6 }
 0x1ce   : > { %v2239_v3 = vadd.f32 %v2231_v24, %v2187_v41  ;;  %v3439_v24 = vunpack.i.h.bf16 %v5275_v12  ;;  %v2538_v41 = vrot.slane %v2503_v59, 1  ;;  %v2507_v39 = vmul.f32 %v3596_v53, %v5285_v43 }
 0x1cf   : > { %v2498_v33 = vmul.f32 %v3571_v4, %v5285_v43  ;;  %v2497_v49 = vmul.f32 %v3570_v63, %v5285_v43  ;;  %v2188_v16 = vadd.f32 %v2180_v26, %v5222_v10 }
 0x1d0   : > { %v5288_v15 = vpop.permute.xlu1 %3441  ;;  %v5291_v62 = vadd.f32 %v2409_v51, %v2239_v3  ;;  %v5798_v3 = vld [vmem:[#allocation13_spill] sm:$0xff]  ;;  %v2540_v0 = vsel %vm728_vm0, %v2538_v41, %v2539_v50 }
 0x1d1   : > { %v3443_v2 = vunpack.i.l.bf16 %v5288_v15  ;;  %v2530_v47 = vrot.slane %v2498_v33, 1  ;;  %v2529_v58 = vrot.slane %v2497_v49, 1  ;;  %v3607_v51 = vunpack.i.h.bf16 %v5798_v3 }
 0x1d2   : > { %v3606_v6 = vunpack.i.l.bf16 %v5798_v3  ;;  %v3444_v36 = vunpack.i.h.bf16 %v5288_v15  ;;  %v5334_v33 = vrot.slane %v5208_v56, %v5789_v27  ;;  %v2232_v3 = vmul.f32 %v3688_v40, %v5243_v57 }
 0x1d3   : > { %v2229_v19 = vmul.f32 %v3443_v2, %v5243_v57  ;;  %v2531_v9 = vsel %vm728_vm0, %v2529_v58, %v2530_v47  ;;  %v2228_v2 = vmul.f32 %v3439_v24, %v5243_v57 }
 0x1d4   : > { %v2230_v55 = vmul.f32 %v3444_v36, %v5243_v57 }
 0x1d5   : > { %v3448_v11 = vpop.permute.xlu1 %3447  ;;  %v2237_v45 = vadd.f32 %v2229_v19, %v2185_v30  ;;  %v2544_v30 = vrot.slane %v2507_v39, 1  ;;  %v2512_v19 = vmul.f32 %v3607_v51, %v5285_v43  ;;  %v2236_v59 = vadd.f32 %v2228_v2, %v5239_v31 }
 0x1d6   : > { %v3450_v32 = vunpack.i.h.bf16 %v3448_v11  ;;  %v3449_v35 = vunpack.i.l.bf16 %v3448_v11  ;;  %v2640_v51 = vmul.f32 %v3699_v14, %v5334_v33 }
 0x1d7   : > { %v5308_v20 = vadd.f32 %v2403_v28, %v2237_v45  ;;  %v2178_v28 = vmul.f32 %v3428_v25, %v5215_v7  ;;  %v2551_v41 = vrot.slane %v2512_v19, 1 }
 0x1d8   : > { %v2358_v37 = vmul.f32 %v3450_v32, %v5228_v29  ;;  %v2357_v17 = vmul.f32 %v3449_v35, %v5228_v29  ;;  %v2511_v35 = vmul.f32 %v3606_v6, %v5285_v43 }
 0x1d9   : > { %v5313_v8 = vpop.permute.xlu1 %3457 }
 0x1da   : > { %v2390_v34 = vrot.slane %v2358_v37, 1  ;;  %v2389_v38 = vrot.slane %v2357_v17, 1  ;;  %v3698_v37 = vunpack.i.l.bf16 %v3697_v61  ;;  %v2186_v17 = vadd.f32 %v2178_v28, %v5248_v46 }
 0x1db   : > { %v2550_v39 = vrot.slane %v2511_v35, 1  ;;  %v2673_v61 = vrot.slane %v2640_v51, 1 }
 0x1dc   : > { %v2391_v48 = vsel %vm728_vm0, %v2389_v38, %v2390_v34  ;;  %v2546_v38 = vsel %vm728_vm0, %v2544_v30, %v2545_v44  ;;  %v2238_v24 = vadd.f32 %v2230_v55, %v2186_v17  ;;  %v3460_v55 = vunpack.i.h.bf16 %v5313_v8  ;;  %v5374_v17 = vld [vmem:[%s5512_s2] ss:$0 sm:$0xff] }
 0x1dd   : > { %v2421_v60 = vadd.f32 %v2391_v48, %v2233_v54  ;;  %v3463_v13 = vpop.permute.xlu1 %3462  ;;  %v3712_v54 = vpop.permute.xlu0 %3711  ;;  %v2552_v19 = vsel %vm728_vm0, %v2550_v39, %v2551_v41 }
 0x1de   : > { %v3465_v4 = vunpack.i.h.bf16 %v3463_v13  ;;  %v3464_v63 = vunpack.i.l.bf16 %v3463_v13  ;;  %v3714_v13 = vunpack.i.h.bf16 %v3712_v54  ;;  %v3713_v36 = vunpack.i.l.bf16 %v3712_v54 }
 0x1df   : > { %v5326_v42 = vadd.f32 %v2531_v9, %v2421_v60  ;;  %v2639_v60 = vmul.f32 %v3698_v37, %v5334_v33 }
 0x1e0   : > { %v2364_v52 = vmul.f32 %v3465_v4, %v5228_v29  ;;  %v2363_v1 = vmul.f32 %v3464_v63, %v5228_v29  ;;  %v2240_v4 = vadd.f32 %v2232_v3, %v2188_v16 }
 0x1e1   : > { %v3473_v15 = vpop.permute.xlu1 %3472  ;;  %v3722_v44 = vpop.permute.xlu0 %3721 }
 0x1e2   : > { %v2399_v11 = vrot.slane %v2364_v52, 1  ;;  %v2398_v49 = vrot.slane %v2363_v1, 1  ;;  %v3475_v45 = vunpack.i.h.bf16 %v3473_v15  ;;  %v3474_v32 = vunpack.i.l.bf16 %v3473_v15 }
 0x1e3   : > { %v2672_v15 = vrot.slane %v2639_v60, 1  ;;  %v3724_v35 = vunpack.i.h.bf16 %v3722_v44  ;;  %v3723_v26 = vunpack.i.l.bf16 %v3722_v44 }
 0x1e4   : > { %v2400_v27 = vsel %vm728_vm0, %v2398_v49, %v2399_v11  ;;  %v2368_v56 = vmul.f32 %v3475_v45, %v5228_v29  ;;  %v2367_v23 = vmul.f32 %v3474_v32, %v5228_v29  ;;  %v2646_v11 = vmul.f32 %v3714_v13, %v5334_v33 }
 0x1e5   : > { %v2424_v53 = vadd.f32 %v2400_v27, %v2236_v59  ;;  %v3564_v47 = vpop.permute.xlu1 %3563  ;;  %v2645_v32 = vmul.f32 %v3713_v36, %v5334_v33  ;;  %v3459_v27 = vunpack.i.l.bf16 %v5313_v8  ;;  %v2674_v14 = vsel %vm728_vm0, %v2672_v15, %v2673_v61 }
 0x1e6   : > { %v2405_v58 = vrot.slane %v2368_v56, 1  ;;  %v2404_v7 = vrot.slane %v2367_v23, 1  ;;  %v3566_v34 = vunpack.i.h.bf16 %v3564_v47  ;;  %v3565_v31 = vunpack.i.l.bf16 %v3564_v47 }
 0x1e7   : > { %v5348_v50 = vadd.f32 %v2540_v0, %v2424_v53  ;;  %v2682_v37 = vrot.slane %v2646_v11, 1  ;;  %v2361_v16 = vmul.f32 %v3459_v27, %v5228_v29 }
 0x1e8   : > { %v2406_v5 = vsel %vm728_vm0, %v2404_v7, %v2405_v58  ;;  %v2372_v48 = vmul.f32 %v3566_v34, %v5228_v29  ;;  %v2371_v46 = vmul.f32 %v3565_v31, %v5228_v29  ;;  %v2681_v58 = vrot.slane %v2645_v32, 1  ;;  %v5382_v31 = vld [vmem:[%s5513_s3] ss:$0 sm:$0xff] }
 0x1e9   : > { %v2426_v25 = vadd.f32 %v2406_v5, %v2238_v24  ;;  %v2650_v7 = vmul.f32 %v3724_v35, %v5334_v33  ;;  %v2649_v34 = vmul.f32 %v3723_v26, %v5334_v33 }
 0x1ea   : > { %v2411_v10 = vrot.slane %v2372_v48, 1  ;;  %v2410_v9 = vrot.slane %v2371_v46, 1 }
 0x1eb   : > { %v3575_v6 = vpop.permute.xlu1 %3574  ;;  %v5356_v2 = vadd.f32 %v2546_v38, %v2426_v25  ;;  %v2683_v25 = vsel %vm728_vm0, %v2681_v58, %v2682_v37  ;;  %v2688_v60 = vrot.slane %v2650_v7, 1  ;;  %v2687_v13 = vrot.slane %v2649_v34, 1 }
 0x1ec   : > { %v3577_v63 = vunpack.i.h.bf16 %v3575_v6  ;;  %v3576_v21 = vunpack.i.l.bf16 %v3575_v6  ;;  %v2412_v0 = vsel %vm728_vm0, %v2410_v9, %v2411_v10  ;;  %v3438_v9 = vunpack.i.l.bf16 %v5275_v12 }
 0x1ed   : > { %v2428_v52 = vadd.f32 %v2412_v0, %v2240_v4  ;;  %v2689_v11 = vsel %vm728_vm0, %v2687_v13, %v2688_v60 }
 0x1ee   : > { %v2500_v1 = vmul.f32 %v3577_v63, %v5285_v43  ;;  %v2499_v30 = vmul.f32 %v3576_v21, %v5285_v43  ;;  %v2395_v21 = vrot.slane %v2361_v16, 1 }
 0x1ef   : > { %v3580_v28 = vpop.permute.xlu1 %3579  ;;  %v5364_v59 = vadd.f32 %v2552_v19, %v2428_v52 }
 0x1f0   : > { %v2533_v49 = vrot.slane %v2500_v1, 1  ;;  %v2532_v45 = vrot.slane %v2499_v30, 1  ;;  %v3582_v41 = vunpack.i.h.bf16 %v3580_v28  ;;  %v3581_v5 = vunpack.i.l.bf16 %v3580_v28 }
 0x1f2   : > { %v2534_v40 = vsel %vm728_vm0, %v2532_v45, %v2533_v49  ;;  %v2502_v44 = vmul.f32 %v3582_v41, %v5285_v43  ;;  %v2501_v52 = vmul.f32 %v3581_v5, %v5285_v43  ;;  %v2227_v49 = vmul.f32 %v3438_v9, %v5243_v57 }
 0x1f3   : > { %v2562_v56 = vadd.f32 %v2534_v40, %v5265_v22  ;;  %v3590_v23 = vpop.permute.xlu1 %3589  ;;  %v2362_v22 = vmul.f32 %v3460_v55, %v5228_v29 }
 0x1f4   : > { %v3592_v53 = vunpack.i.h.bf16 %v3590_v23  ;;  %v3591_v47 = vunpack.i.l.bf16 %v3590_v23  ;;  %v2536_v55 = vrot.slane %v2502_v44, 1  ;;  %v2535_v40 = vrot.slane %v2501_v52, 1 }
 0x1f5   : > { %v2702_v8 = vadd.f32 %v2674_v14, %v2562_v56  ;;  %v2396_v63 = vrot.slane %v2362_v22, 1 }
 0x1f6   : > { %v2506_v38 = vmul.f32 %v3592_v53, %v5285_v43  ;;  %v2505_v54 = vmul.f32 %v3591_v47, %v5285_v43  ;;  %v2537_v22 = vsel %vm728_vm0, %v2535_v40, %v2536_v55 }
 0x1f7   : > { %v2717_v24 = vmul.f32 %v5374_v17, %v2702_v8  ;;  %v3600_v48 = vpop.permute.xlu1 %3599  ;;  %v2397_v26 = vsel %vm728_vm0, %v2395_v21, %v2396_v63 }
 0x1f8   : > { %v2542_v46 = vrot.slane %v2506_v38, 1  ;;  %v2541_v39 = vrot.slane %v2505_v54, 1  ;;  %v3602_v3 = vunpack.i.h.bf16 %v3600_v48  ;;  %v3601_v51 = vunpack.i.l.bf16 %v3600_v48 }
 0x1f9   : > { %v2732_v10 = vadd.f32 %v5382_v31, %v2717_v24 }
 0x1fa   : > { %v2543_v29 = vsel %vm728_vm0, %v2541_v39, %v2542_v46  ;;  %v2510_v6 = vmul.f32 %v3602_v3, %v5285_v43  ;;  %v2509_v4 = vmul.f32 %v3601_v51, %v5285_v43 }
 0x1fb   : > { %v2740_v36 = vmax.f32 %v2732_v10, 0.0  ;;  %v2565_v0 = vadd.f32 %v2543_v29, %v5308_v20 }
 0x1fc   : > { %v2548_v1 = vrot.slane %v2510_v6, 1  ;;  %v2547_v30 = vrot.slane %v2509_v4, 1  ;;  %v3692_v12 = vpop.permute.xlu1 %3691 }
 0x1fd   : > { %v2748_v19 = vmin.f32 %v2740_v36, 6.0  ;;  %v2705_v61 = vadd.f32 %v2683_v25, %v2565_v0  ;;  %v3694_v28 = vunpack.i.h.bf16 %v3692_v12  ;;  %v3693_v15 = vunpack.i.l.bf16 %v3692_v12 }
 0x1fe   : > { %v2549_v45 = vsel %vm728_vm0, %v2547_v30, %v2548_v1 }
 0x1ff   : > { %v2756_v32 = vpack.c.bf16 %v2748_v19, %v2748_v19  ;;  %v2720_v20 = vmul.f32 %v5374_v17, %v2705_v61  ;;  %v2567_v35 = vadd.f32 %v2549_v45, %v5291_v62  ;;  %v2638_v43 = vmul.f32 %v3694_v28, %v5334_v33 }
 0x200   : > { %v2637_v27 = vmul.f32 %v3693_v15, %v5334_v33  ;;  %v3702_v56 = vpop.permute.xlu1 %3701  ;;  %v2235_v62 = vadd.f32 %v2227_v49, %v5237_v18 }
 0x201   : > { %2765 = vst.msk [vmem:[%s5408_s13 + $0x4] sm:$0xf] %vm2763_vm1, %v2756_v32  ;;  %v2735_v57 = vadd.f32 %v5382_v31, %v2720_v20  ;;  %v2707_v23 = vadd.f32 %v2689_v11, %v2567_v35  ;;  %v2670_v14 = vrot.slane %v2638_v43, 1  ;;  %v3704_v37 = vunpack.i.h.bf16 %v3702_v56 }
 0x202   : > { %v2669_v53 = vrot.slane %v2637_v27, 1  ;;  %v3703_v47 = vunpack.i.l.bf16 %v3702_v56  ;;  %v2423_v8 = vadd.f32 %v2397_v26, %v2235_v62 }
 0x203   : > { %v2743_v58 = vmax.f32 %v2735_v57, 0.0  ;;  %v2722_v7 = vmul.f32 %v5374_v17, %v2707_v23  ;;  %v2642_v34 = vmul.f32 %v3704_v37, %v5334_v33 }
 0x204   : > { %v2671_v38 = vsel %vm728_vm0, %v2669_v53, %v2670_v14  ;;  %v2641_v54 = vmul.f32 %v3703_v47, %v5334_v33  ;;  %v3707_v16 = vpop.permute.xlu1 %3706  ;;  %v2563_v3 = vadd.f32 %v2537_v22, %v2423_v8 }
 0x205   : > { %v2751_v24 = vmin.f32 %v2743_v58, 6.0  ;;  %v2737_v41 = vadd.f32 %v5382_v31, %v2722_v7  ;;  %v2701_v18 = vadd.f32 %v2671_v38, %v5326_v42  ;;  %v2676_v5 = vrot.slane %v2642_v34, 1 }
 0x206   : > { %v2675_v48 = vrot.slane %v2641_v54, 1  ;;  %v3709_v46 = vunpack.i.h.bf16 %v3707_v16  ;;  %v3708_v39 = vunpack.i.l.bf16 %v3707_v16 }
 0x207   : > { %v2759_v51 = vpack.c.bf16 %v2751_v24, %v2751_v24  ;;  %v2745_v25 = vmax.f32 %v2737_v41, 0.0  ;;  %v2716_v60 = vmul.f32 %v5374_v17, %v2701_v18 }
 0x208   : > { %v2677_v13 = vsel %vm728_vm0, %v2675_v48, %v2676_v5  ;;  %v2644_v10 = vmul.f32 %v3709_v46, %v5334_v33  ;;  %v2643_v9 = vmul.f32 %v3708_v39, %v5334_v33  ;;  %v3717_v29 = vpop.permute.xlu1 %3716 }
 0x209   : > { %2768 = vst.msk [vmem:[%s5408_s13 + $0x10] sm:$0xf] %vm2763_vm1, %v2759_v51  ;;  %v2753_v42 = vmin.f32 %v2745_v25, 6.0  ;;  %v2731_v6 = vadd.f32 %v5382_v31, %v2716_v60  ;;  %v2703_v4 = vadd.f32 %v2677_v13, %v2563_v3  ;;  %v3719_v63 = vunpack.i.h.bf16 %v3717_v29 }
 0x20a   : > { %v2679_v21 = vrot.slane %v2644_v10, 1  ;;  %v2678_v36 = vrot.slane %v2643_v9, 1  ;;  %v3718_v0 = vunpack.i.l.bf16 %v3717_v29 }
 0x20b   : > { %v2761_v44 = vpack.c.bf16 %v2753_v42, %v2753_v42  ;;  %v2739_v52 = vmax.f32 %v2731_v6, 0.0  ;;  %v2718_v1 = vmul.f32 %v5374_v17, %v2703_v4  ;;  %v2648_v30 = vmul.f32 %v3719_v63, %v5334_v33 }
 0x20c   : > { %v2680_v12 = vsel %vm728_vm0, %v2678_v36, %v2679_v21  ;;  %v2647_v19 = vmul.f32 %v3718_v0, %v5334_v33  ;;  %v3727_v61 = vpop.permute.xlu1 %3726 }
 0x20d   : > { %2770 = vst.msk [vmem:[%s5408_s13 + $0x18] sm:$0xf] %vm2763_vm1, %v2761_v44  ;;  %v2747_v28 = vmin.f32 %v2739_v52, 6.0  ;;  %v2733_v15 = vadd.f32 %v5382_v31, %v2718_v1  ;;  %v2704_v11 = vadd.f32 %v2680_v12, %v5348_v50  ;;  %v2685_v49 = vrot.slane %v2648_v30, 1 }
 0x20e   : > { %v2684_v45 = vrot.slane %v2647_v19, 1  ;;  %v3729_v32 = vunpack.i.h.bf16 %v3727_v61  ;;  %v3728_v20 = vunpack.i.l.bf16 %v3727_v61 }
 0x20f   : > { %v2755_v35 = vpack.c.bf16 %v2747_v28, %v2747_v28  ;;  %v2741_v43 = vmax.f32 %v2733_v15, 0.0  ;;  %v2719_v26 = vmul.f32 %v5374_v17, %v2704_v11 }
 0x210   : > { %v2686_v55 = vsel %vm728_vm0, %v2684_v45, %v2685_v49  ;;  %v2652_v40 = vmul.f32 %v3729_v32, %v5334_v33  ;;  %v2651_v27 = vmul.f32 %v3728_v20, %v5334_v33 }
 0x211   : > { %2764 = vst.msk [vmem:[%s5408_s13] sm:$0xf] %vm2763_vm1, %v2755_v35  ;;  %v2749_v56 = vmin.f32 %v2741_v43, 6.0  ;;  %v2734_v50 = vadd.f32 %v5382_v31, %v2719_v26  ;;  %v2706_v57 = vadd.f32 %v2686_v55, %v5356_v2 }
 0x212   : > { %v2691_v23 = vrot.slane %v2652_v40, 1  ;;  %v2690_v14 = vrot.slane %v2651_v27, 1 }
 0x213   : > { %v2757_v37 = vpack.c.bf16 %v2749_v56, %v2749_v56  ;;  %v2742_v62 = vmax.f32 %v2734_v50, 0.0  ;;  %v2721_v53 = vmul.f32 %v5374_v17, %v2706_v57 }
 0x214   : > { %v2692_v47 = vsel %vm728_vm0, %v2690_v14, %v2691_v23 }
 0x215   : > { %2766 = vst.msk [vmem:[%s5408_s13 + $0x8] sm:$0xf] %vm2763_vm1, %v2757_v37  ;;  %v2750_v33 = vmin.f32 %v2742_v62, 6.0  ;;  %v2736_v58 = vadd.f32 %v5382_v31, %v2721_v53  ;;  %v2708_v7 = vadd.f32 %v2692_v47, %v5364_v59 }
 0x217   : > { %v2758_v2 = vpack.c.bf16 %v2750_v33, %v2750_v33  ;;  %v2744_v34 = vmax.f32 %v2736_v58, 0.0  ;;  %v2723_v8 = vmul.f32 %v5374_v17, %v2708_v7 }
 0x219   : > { %2767 = vst.msk [vmem:[%s5408_s13 + $0xc] sm:$0xf] %vm2763_vm1, %v2758_v2  ;;  %v2752_v22 = vmin.f32 %v2744_v34, 6.0  ;;  %v2738_v38 = vadd.f32 %v5382_v31, %v2723_v8 }
 0x21b   : > { %v2760_v54 = vpack.c.bf16 %v2752_v22, %v2752_v22  ;;  %v2746_v16 = vmax.f32 %v2738_v38, 0.0 }
 0x21d   : > { %2769 = vst.msk [vmem:[%s5408_s13 + $0x14] sm:$0xf] %vm2763_vm1, %v2760_v54  ;;  %v2754_v24 = vmin.f32 %v2746_v16, 6.0 }
 0x21f   : > { %v2762_v59 = vpack.c.bf16 %v2754_v24, %v2754_v24 }
 0x221   : > { %2771 = vst.msk [vmem:[%s5408_s13 + $0x1c] sm:$0xf] %vm2763_vm1, %v2762_v59 }
 0x222   : > { %3743 = shalt.err (!%p3740_p3)
}
 0x223   : > { %s3744_s6 = scalar_lea.hbm %s5461_s27, 512  ;;  %s3748_s9 = scalar_lea.hbm %s5514_s4, 1024 }
 0x224   : > { %p3745_p4 = scmp.ne.s32.totalorder %s5461_s27, %s3744_s6  ;;  %p3749_p9 = scmp.lt.u32.totalorder %s5461_s27, %s5514_s4 }
 0x225   : > { %p3750_p10 = scmp.lt.u32.totalorder %s3748_s9, %s3744_s6  ;;  %p3752_p12 = scmp.lt.u32.totalorder %s3744_s6, %s5461_s27 }
 0x226   : > { %p3746_p7 = pnand %p3745_p4, %p3863_p5 }
 0x227   : > { %p3751_p11 = por %p3750_p10, %p3749_p9 }
 0x228   : > { %p3747_p8 = pneg %p3746_p7 }
 0x229   : > { %p3753_p13 = por %p3752_p12, %p3751_p11 }
 0x22b   : > { %p3754_p0 = pnand %p3753_p13, %p3747_p8 }
 0x22d   : > { %3757 = shalt.err (!%p3754_p0)
}
 0x22e   : > { %s3798_s12 = smov 64   ;;  %s3799_s13 = smov 4  }
 0x22f   : > { %2936 = dma.vmem_to_hbm [thread:$0]  (%p3863_p5), %s5463_s20, 512, %s5461_s27, %s5469_s28, %s3798_s12, %s3798_s12, %s3799_s13  }
 0x230 PF: > { %p2942_p1 = scmp.ge.s32.totalorder %s3792_s18, 2  ;;  %s2801_s14 = sand.u32 1, %s3780_s15  }
 0x231   : > { %s2802_s22 = scalar_lea.sflag [#allocation3], %s2801_s14 }
 0x232   : > { %p2939_p2 = pnand %p2942_p1, %p3867_p6 }
 0x234   : > { %3775 = dma.done.wait (!%p2939_p2), %s2802_s22, 512  }
 0x235   : > { %3777 = vsyncadd (!%p2939_p2), %s2802_s22, 4294966784  ;;  %p14_p3 = scmp.ge.s32.totalorder %s3850_s21, 4   ;;  %s5799_s15 = smov %s3784_s16 }
 0x236   : > { %s5800_s16 = smov %s3788_s17  ;;  %s5801_s17 = smov %s3861_s24 }
 0x237   : > { %s5802_s18 = smov %s3850_s21  ;;  %16 = sbr.rel (!%p14_p3) target bundleno = 3 (0x3), region = 76 }
 0x23e   :  { %2807 = vsyncpa [#allocation3], 1 }
 0x23f   :  { %2809 = vsyncpa [#allocation3 + $0x1], 1 }

</bundles_post_ra>
